<compile_context>
chip_gen: v7x
topology: tpu7x:2x2x1
jax: 0.10.0
libtpu: 0.0.40
codegen_flags: <defaults>
</compile_context>

<pallas_src>
import functools

import jax
import jax.numpy as jnp
from jax.experimental import pallas as pl
from jax.experimental.pallas import tpu as pltpu


def _generator_kernel(z_ref,
                      w0_ref, b0_ref,
                      w1_ref, b1_ref, g1_ref, be1_ref,
                      w2_ref, b2_ref, g2_ref, be2_ref,
                      w3_ref, b3_ref, g3_ref, be3_ref,
                      w4_ref, b4_ref,
                      o_ref):
    """Entire generator MLP in one kernel; everything lives in VMEM/vregs."""
    # ---- Block 1: Linear(latent, 128) + LeakyReLU(0.2) (no BatchNorm) ----
    h = jnp.dot(z_ref[...], w0_ref[...], preferred_element_type=jnp.float32) + b0_ref[...]
    h = jnp.maximum(h, 0.2 * h)

    inv_n = 1.0 / h.shape[0]  # 1/B, hoisted constant (batch fits in one block)

    def bn_block(h, w_ref, b_ref, g_ref, be_ref):
        # Linear
        y = jnp.dot(h, w_ref[...], preferred_element_type=jnp.float32) + b_ref[...]
        # BatchNorm1d, training mode: biased batch statistics, eps = 0.8.
        # Single reduction pass: sum and sum-of-squares over the batch axis.
        mean = jnp.sum(y, axis=0, keepdims=True) * inv_n
        msq = jnp.sum(y * y, axis=0, keepdims=True) * inv_n
        var = msq - mean * mean
        y = (y - mean) * jax.lax.rsqrt(var + 0.8) * g_ref[...] + be_ref[...]
        # LeakyReLU(0.2)
        return jnp.maximum(y, 0.2 * y)

    # ---- Blocks 2-4: Linear + BatchNorm1d + LeakyReLU ----
    h = bn_block(h, w1_ref, b1_ref, g1_ref, be1_ref)
    h = bn_block(h, w2_ref, b2_ref, g2_ref, be2_ref)
    h = bn_block(h, w3_ref, b3_ref, g3_ref, be3_ref)

    # ---- Final: Linear(1024, C*H*W) + Tanh ----
    y = jnp.dot(h, w4_ref[...], preferred_element_type=jnp.float32) + b4_ref[...]
    o_ref[...] = jnp.tanh(y)


def init_linear(key, in_feat, out_feat):
    """PyTorch nn.Linear default init: U(-1/sqrt(in), 1/sqrt(in)). W stored as (in, out)."""
    kw, kb = jax.random.split(key)
    bound = 1.0 / (in_feat ** 0.5)
    w = jax.random.uniform(kw, (in_feat, out_feat), jnp.float32, -bound, bound)
    b = jax.random.uniform(kb, (out_feat,), jnp.float32, -bound, bound)
    return w, b


def init_params(key, latent_dim, img_elems):
    dims = [latent_dim, 128, 256, 512, 1024, img_elems]
    params = []
    keys = jax.random.split(key, len(dims) - 1)
    for i in range(len(dims) - 1):
        w, b = init_linear(keys[i], dims[i], dims[i + 1])
        layer = {"w": w, "b": b}
        # BatchNorm only on the 2nd..4th blocks (not the first block, not the last linear)
        if 1 <= i <= 3:
            layer["gamma"] = jnp.ones((dims[i + 1],), jnp.float32)
            layer["beta"] = jnp.zeros((dims[i + 1],), jnp.float32)
        params.append(layer)
    return params


@functools.partial(jax.jit, static_argnums=(2,))
def generator_forward(z, params, img_shape):
    B = z.shape[0]
    out_dim = params[4]["w"].shape[1]

    # Flatten params into the kernel's argument order; 1-D vectors are reshaped
    # to (1, N) so they broadcast over the batch (sublane) axis in-kernel.
    flat = [params[0]["w"], params[0]["b"].reshape(1, -1)]
    for i in (1, 2, 3):
        flat += [params[i]["w"], params[i]["b"].reshape(1, -1),
                 params[i]["gamma"].reshape(1, -1), params[i]["beta"].reshape(1, -1)]
    flat += [params[4]["w"], params[4]["b"].reshape(1, -1)]

    n_inputs = 1 + len(flat)  # z + all params
    img_flat = pl.pallas_call(
        _generator_kernel,
        out_shape=jax.ShapeDtypeStruct((B, out_dim), jnp.float32),
        in_specs=[pl.BlockSpec(memory_space=pltpu.MemorySpace.VMEM)] * n_inputs,
        out_specs=pl.BlockSpec(memory_space=pltpu.MemorySpace.VMEM),
    )(z, *flat)

    return img_flat.reshape(B, *img_shape)


if __name__ == "__main__":
    # Small, BN-consistent shapes: batch=8, latent_dim=32, channels=1, img_size=16
    B, latent_dim = 8, 32
    channels, img_size = 1, 16
    img_shape = (channels, img_size, img_size)
    img_elems = channels * img_size * img_size  # 256

    key = jax.random.PRNGKey(0)
    k_params, k_z = jax.random.split(key)
    params = init_params(k_params, latent_dim, img_elems)
    z = jax.random.normal(k_z, (B, latent_dim), dtype=jnp.float32)

    img = generator_forward(z, params, img_shape)
    img = jax.block_until_ready(img)

    assert img.shape == (B, channels, img_size, img_size), img.shape
    assert img.dtype == jnp.float32
    assert bool(jnp.all(jnp.isfinite(img)))
    assert bool(jnp.all(jnp.abs(img) <= 1.0))  # tanh range
    print("KERNEL_OK")
</pallas_src>

<mosaic_0001>
module attributes {stable_mosaic.version = 11 : i64} {
  func.func @_generator_kernel(%arg0: memref<8x32xf32, #tpu.memory_space<vmem>>, %arg1: memref<32x128xf32, #tpu.memory_space<vmem>>, %arg2: memref<1x128xf32, #tpu.memory_space<vmem>>, %arg3: memref<128x256xf32, #tpu.memory_space<vmem>>, %arg4: memref<1x256xf32, #tpu.memory_space<vmem>>, %arg5: memref<1x256xf32, #tpu.memory_space<vmem>>, %arg6: memref<1x256xf32, #tpu.memory_space<vmem>>, %arg7: memref<256x512xf32, #tpu.memory_space<vmem>>, %arg8: memref<1x512xf32, #tpu.memory_space<vmem>>, %arg9: memref<1x512xf32, #tpu.memory_space<vmem>>, %arg10: memref<1x512xf32, #tpu.memory_space<vmem>>, %arg11: memref<512x1024xf32, #tpu.memory_space<vmem>>, %arg12: memref<1x1024xf32, #tpu.memory_space<vmem>>, %arg13: memref<1x1024xf32, #tpu.memory_space<vmem>>, %arg14: memref<1x1024xf32, #tpu.memory_space<vmem>>, %arg15: memref<1024x256xf32, #tpu.memory_space<vmem>>, %arg16: memref<1x256xf32, #tpu.memory_space<vmem>>, %arg17: memref<8x256xf32, #tpu.memory_space<vmem>>) attributes {dimension_semantics = [], scalar_prefetch = 0 : i64, scratch_operands = 0 : i64, tpu.core_type = #tpu.core_type<tc>} {
    %c0 = arith.constant 0 : index
    %c0_0 = arith.constant 0 : index
    %0 = vector.load %arg0[%c0, %c0_0] : memref<8x32xf32, #tpu.memory_space<vmem>>, vector<8x32xf32>
    %c0_1 = arith.constant 0 : index
    %c0_2 = arith.constant 0 : index
    %1 = vector.load %arg1[%c0_1, %c0_2] : memref<32x128xf32, #tpu.memory_space<vmem>>, vector<32x128xf32>
    %cst = arith.constant dense<0.000000e+00> : vector<8x128xf32>
    %2 = tpu.matmul %0, %1, %cst {dimension_numbers = #tpu.dot_dimension_numbers<[1], [0], [0], [1], [0, 0, 1, 1], [], []>} : vector<8x32xf32>, vector<32x128xf32>, vector<8x128xf32> -> vector<8x128xf32>
    %c0_3 = arith.constant 0 : index
    %c0_4 = arith.constant 0 : index
    %3 = vector.load %arg2[%c0_3, %c0_4] : memref<1x128xf32, #tpu.memory_space<vmem>>, vector<1x128xf32>
    %4 = vector.broadcast %3 : vector<1x128xf32> to vector<8x128xf32>
    %5 = arith.addf %2, %4 : vector<8x128xf32>
    %cst_5 = arith.constant 2.000000e-01 : f32
    %6 = vector.broadcast %cst_5 : f32 to vector<8x128xf32>
    %7 = arith.mulf %6, %5 : vector<8x128xf32>
    %8 = arith.maximumf %5, %7 : vector<8x128xf32>
    %c0_6 = arith.constant 0 : index
    %c0_7 = arith.constant 0 : index
    %9 = vector.load %arg3[%c0_6, %c0_7] : memref<128x256xf32, #tpu.memory_space<vmem>>, vector<128x256xf32>
    %cst_8 = arith.constant dense<0.000000e+00> : vector<8x256xf32>
    %10 = tpu.matmul %8, %9, %cst_8 {dimension_numbers = #tpu.dot_dimension_numbers<[1], [0], [0], [1], [0, 0, 1, 1], [], []>} : vector<8x128xf32>, vector<128x256xf32>, vector<8x256xf32> -> vector<8x256xf32>
    %c0_9 = arith.constant 0 : index
    %c0_10 = arith.constant 0 : index
    %11 = vector.load %arg4[%c0_9, %c0_10] : memref<1x256xf32, #tpu.memory_space<vmem>>, vector<1x256xf32>
    %12 = vector.broadcast %11 : vector<1x256xf32> to vector<8x256xf32>
    %13 = arith.addf %10, %12 : vector<8x256xf32>
    %cst_11 = arith.constant dense<0.000000e+00> : vector<256xf32>
    %14 = vector.multi_reduction <add>, %13, %cst_11 [0] : vector<8x256xf32> to vector<256xf32>
    %15 = vector.shape_cast %14 : vector<256xf32> to vector<1x256xf32>
    %cst_12 = arith.constant 1.250000e-01 : f32
    %16 = vector.broadcast %cst_12 : f32 to vector<1x256xf32>
    %17 = arith.mulf %15, %16 : vector<1x256xf32>
    %18 = arith.mulf %13, %13 : vector<8x256xf32>
    %cst_13 = arith.constant dense<0.000000e+00> : vector<256xf32>
    %19 = vector.multi_reduction <add>, %18, %cst_13 [0] : vector<8x256xf32> to vector<256xf32>
    %20 = vector.shape_cast %19 : vector<256xf32> to vector<1x256xf32>
    %cst_14 = arith.constant 1.250000e-01 : f32
    %21 = vector.broadcast %cst_14 : f32 to vector<1x256xf32>
    %22 = arith.mulf %20, %21 : vector<1x256xf32>
    %23 = arith.mulf %17, %17 : vector<1x256xf32>
    %24 = arith.subf %22, %23 : vector<1x256xf32>
    %25 = vector.broadcast %17 : vector<1x256xf32> to vector<8x256xf32>
    %26 = arith.subf %13, %25 : vector<8x256xf32>
    %cst_15 = arith.constant 8.000000e-01 : f32
    %27 = vector.broadcast %cst_15 : f32 to vector<1x256xf32>
    %28 = arith.addf %24, %27 : vector<1x256xf32>
    %29 = math.rsqrt %28 : vector<1x256xf32>
    %30 = vector.broadcast %29 : vector<1x256xf32> to vector<8x256xf32>
    %31 = arith.mulf %26, %30 : vector<8x256xf32>
    %c0_16 = arith.constant 0 : index
    %c0_17 = arith.constant 0 : index
    %32 = vector.load %arg5[%c0_16, %c0_17] : memref<1x256xf32, #tpu.memory_space<vmem>>, vector<1x256xf32>
    %33 = vector.broadcast %32 : vector<1x256xf32> to vector<8x256xf32>
    %34 = arith.mulf %31, %33 : vector<8x256xf32>
    %c0_18 = arith.constant 0 : index
    %c0_19 = arith.constant 0 : index
    %35 = vector.load %arg6[%c0_18, %c0_19] : memref<1x256xf32, #tpu.memory_space<vmem>>, vector<1x256xf32>
    %36 = vector.broadcast %35 : vector<1x256xf32> to vector<8x256xf32>
    %37 = arith.addf %34, %36 : vector<8x256xf32>
    %cst_20 = arith.constant 2.000000e-01 : f32
    %38 = vector.broadcast %cst_20 : f32 to vector<8x256xf32>
    %39 = arith.mulf %38, %37 : vector<8x256xf32>
    %40 = arith.maximumf %37, %39 : vector<8x256xf32>
    %c0_21 = arith.constant 0 : index
    %c0_22 = arith.constant 0 : index
    %41 = vector.load %arg7[%c0_21, %c0_22] : memref<256x512xf32, #tpu.memory_space<vmem>>, vector<256x512xf32>
    %cst_23 = arith.constant dense<0.000000e+00> : vector<8x512xf32>
    %42 = tpu.matmul %40, %41, %cst_23 {dimension_numbers = #tpu.dot_dimension_numbers<[1], [0], [0], [1], [0, 0, 1, 1], [], []>} : vector<8x256xf32>, vector<256x512xf32>, vector<8x512xf32> -> vector<8x512xf32>
    %c0_24 = arith.constant 0 : index
    %c0_25 = arith.constant 0 : index
    %43 = vector.load %arg8[%c0_24, %c0_25] : memref<1x512xf32, #tpu.memory_space<vmem>>, vector<1x512xf32>
    %44 = vector.broadcast %43 : vector<1x512xf32> to vector<8x512xf32>
    %45 = arith.addf %42, %44 : vector<8x512xf32>
    %cst_26 = arith.constant dense<0.000000e+00> : vector<512xf32>
    %46 = vector.multi_reduction <add>, %45, %cst_26 [0] : vector<8x512xf32> to vector<512xf32>
    %47 = vector.shape_cast %46 : vector<512xf32> to vector<1x512xf32>
    %cst_27 = arith.constant 1.250000e-01 : f32
    %48 = vector.broadcast %cst_27 : f32 to vector<1x512xf32>
    %49 = arith.mulf %47, %48 : vector<1x512xf32>
    %50 = arith.mulf %45, %45 : vector<8x512xf32>
    %cst_28 = arith.constant dense<0.000000e+00> : vector<512xf32>
    %51 = vector.multi_reduction <add>, %50, %cst_28 [0] : vector<8x512xf32> to vector<512xf32>
    %52 = vector.shape_cast %51 : vector<512xf32> to vector<1x512xf32>
    %cst_29 = arith.constant 1.250000e-01 : f32
    %53 = vector.broadcast %cst_29 : f32 to vector<1x512xf32>
    %54 = arith.mulf %52, %53 : vector<1x512xf32>
    %55 = arith.mulf %49, %49 : vector<1x512xf32>
    %56 = arith.subf %54, %55 : vector<1x512xf32>
    %57 = vector.broadcast %49 : vector<1x512xf32> to vector<8x512xf32>
    %58 = arith.subf %45, %57 : vector<8x512xf32>
    %cst_30 = arith.constant 8.000000e-01 : f32
    %59 = vector.broadcast %cst_30 : f32 to vector<1x512xf32>
    %60 = arith.addf %56, %59 : vector<1x512xf32>
    %61 = math.rsqrt %60 : vector<1x512xf32>
    %62 = vector.broadcast %61 : vector<1x512xf32> to vector<8x512xf32>
    %63 = arith.mulf %58, %62 : vector<8x512xf32>
    %c0_31 = arith.constant 0 : index
    %c0_32 = arith.constant 0 : index
    %64 = vector.load %arg9[%c0_31, %c0_32] : memref<1x512xf32, #tpu.memory_space<vmem>>, vector<1x512xf32>
    %65 = vector.broadcast %64 : vector<1x512xf32> to vector<8x512xf32>
    %66 = arith.mulf %63, %65 : vector<8x512xf32>
    %c0_33 = arith.constant 0 : index
    %c0_34 = arith.constant 0 : index
    %67 = vector.load %arg10[%c0_33, %c0_34] : memref<1x512xf32, #tpu.memory_space<vmem>>, vector<1x512xf32>
    %68 = vector.broadcast %67 : vector<1x512xf32> to vector<8x512xf32>
    %69 = arith.addf %66, %68 : vector<8x512xf32>
    %cst_35 = arith.constant 2.000000e-01 : f32
    %70 = vector.broadcast %cst_35 : f32 to vector<8x512xf32>
    %71 = arith.mulf %70, %69 : vector<8x512xf32>
    %72 = arith.maximumf %69, %71 : vector<8x512xf32>
    %c0_36 = arith.constant 0 : index
    %c0_37 = arith.constant 0 : index
    %73 = vector.load %arg11[%c0_36, %c0_37] : memref<512x1024xf32, #tpu.memory_space<vmem>>, vector<512x1024xf32>
    %cst_38 = arith.constant dense<0.000000e+00> : vector<8x1024xf32>
    %74 = tpu.matmul %72, %73, %cst_38 {dimension_numbers = #tpu.dot_dimension_numbers<[1], [0], [0], [1], [0, 0, 1, 1], [], []>} : vector<8x512xf32>, vector<512x1024xf32>, vector<8x1024xf32> -> vector<8x1024xf32>
    %c0_39 = arith.constant 0 : index
    %c0_40 = arith.constant 0 : index
    %75 = vector.load %arg12[%c0_39, %c0_40] : memref<1x1024xf32, #tpu.memory_space<vmem>>, vector<1x1024xf32>
    %76 = vector.broadcast %75 : vector<1x1024xf32> to vector<8x1024xf32>
    %77 = arith.addf %74, %76 : vector<8x1024xf32>
    %cst_41 = arith.constant dense<0.000000e+00> : vector<1024xf32>
    %78 = vector.multi_reduction <add>, %77, %cst_41 [0] : vector<8x1024xf32> to vector<1024xf32>
    %79 = vector.shape_cast %78 : vector<1024xf32> to vector<1x1024xf32>
    %cst_42 = arith.constant 1.250000e-01 : f32
    %80 = vector.broadcast %cst_42 : f32 to vector<1x1024xf32>
    %81 = arith.mulf %79, %80 : vector<1x1024xf32>
    %82 = arith.mulf %77, %77 : vector<8x1024xf32>
    %cst_43 = arith.constant dense<0.000000e+00> : vector<1024xf32>
    %83 = vector.multi_reduction <add>, %82, %cst_43 [0] : vector<8x1024xf32> to vector<1024xf32>
    %84 = vector.shape_cast %83 : vector<1024xf32> to vector<1x1024xf32>
    %cst_44 = arith.constant 1.250000e-01 : f32
    %85 = vector.broadcast %cst_44 : f32 to vector<1x1024xf32>
    %86 = arith.mulf %84, %85 : vector<1x1024xf32>
    %87 = arith.mulf %81, %81 : vector<1x1024xf32>
    %88 = arith.subf %86, %87 : vector<1x1024xf32>
    %89 = vector.broadcast %81 : vector<1x1024xf32> to vector<8x1024xf32>
    %90 = arith.subf %77, %89 : vector<8x1024xf32>
    %cst_45 = arith.constant 8.000000e-01 : f32
    %91 = vector.broadcast %cst_45 : f32 to vector<1x1024xf32>
    %92 = arith.addf %88, %91 : vector<1x1024xf32>
    %93 = math.rsqrt %92 : vector<1x1024xf32>
    %94 = vector.broadcast %93 : vector<1x1024xf32> to vector<8x1024xf32>
    %95 = arith.mulf %90, %94 : vector<8x1024xf32>
    %c0_46 = arith.constant 0 : index
    %c0_47 = arith.constant 0 : index
    %96 = vector.load %arg13[%c0_46, %c0_47] : memref<1x1024xf32, #tpu.memory_space<vmem>>, vector<1x1024xf32>
    %97 = vector.broadcast %96 : vector<1x1024xf32> to vector<8x1024xf32>
    %98 = arith.mulf %95, %97 : vector<8x1024xf32>
    %c0_48 = arith.constant 0 : index
    %c0_49 = arith.constant 0 : index
    %99 = vector.load %arg14[%c0_48, %c0_49] : memref<1x1024xf32, #tpu.memory_space<vmem>>, vector<1x1024xf32>
    %100 = vector.broadcast %99 : vector<1x1024xf32> to vector<8x1024xf32>
    %101 = arith.addf %98, %100 : vector<8x1024xf32>
    %cst_50 = arith.constant 2.000000e-01 : f32
    %102 = vector.broadcast %cst_50 : f32 to vector<8x1024xf32>
    %103 = arith.mulf %102, %101 : vector<8x1024xf32>
    %104 = arith.maximumf %101, %103 : vector<8x1024xf32>
    %c0_51 = arith.constant 0 : index
    %c0_52 = arith.constant 0 : index
    %105 = vector.load %arg15[%c0_51, %c0_52] : memref<1024x256xf32, #tpu.memory_space<vmem>>, vector<1024x256xf32>
    %cst_53 = arith.constant dense<0.000000e+00> : vector<8x256xf32>
    %106 = tpu.matmul %104, %105, %cst_53 {dimension_numbers = #tpu.dot_dimension_numbers<[1], [0], [0], [1], [0, 0, 1, 1], [], []>} : vector<8x1024xf32>, vector<1024x256xf32>, vector<8x256xf32> -> vector<8x256xf32>
    %c0_54 = arith.constant 0 : index
    %c0_55 = arith.constant 0 : index
    %107 = vector.load %arg16[%c0_54, %c0_55] : memref<1x256xf32, #tpu.memory_space<vmem>>, vector<1x256xf32>
    %108 = vector.broadcast %107 : vector<1x256xf32> to vector<8x256xf32>
    %109 = arith.addf %106, %108 : vector<8x256xf32>
    %110 = math.tanh %109 : vector<8x256xf32>
    %c0_56 = arith.constant 0 : index
    %c0_57 = arith.constant 0 : index
    %111 = vector.load %arg17[%c0_56, %c0_57] : memref<8x256xf32, #tpu.memory_space<vmem>>, vector<8x256xf32>
    tpu.vector_store %arg17[%c0_56, %c0_57], %110 {strides = array<i32>} : memref<8x256xf32, #tpu.memory_space<vmem>>, vector<8x256xf32>,
    return
  }
}

</mosaic_0001>

<bundles_post_ra>
// kernel: generator_forward.1
= control target key start
LH: loop header
LB: loop body
LE: loop exit
PB: predicated region body
PF: predicated region fallthrough
CT: control target
= control target key end

     0   :  { %s4944_s0 = inlined_call_operand.hbm [shape: f32[8,32], index: 0, kind: input, shape index: {}]   ;;  %s4945_s1 = inlined_call_operand.hbm [shape: f32[32,128], index: 1, kind: input, shape index: {}]   ;;  %s4946_s2 = inlined_call_operand.hbm [shape: f32[1,128], index: 2, kind: input, shape index: {}]   ;;  %s4947_s3 = inlined_call_operand.hbm [shape: f32[128,256], index: 3, kind: input, shape index: {}]   ;;  %s4948_s4 = inlined_call_operand.hbm [shape: f32[1,256], index: 4, kind: input, shape index: {}]   ;;  %s4949_s5 = inlined_call_operand.hbm [shape: f32[1,256], index: 5, kind: input, shape index: {}]   ;;  %s4950_s6 = inlined_call_operand.hbm [shape: f32[1,256], index: 6, kind: input, shape index: {}]   ;;  %s4951_s7 = inlined_call_operand.hbm [shape: f32[256,512], index: 7, kind: input, shape index: {}]   ;;  %s4952_s8 = inlined_call_operand.hbm [shape: f32[1,512], index: 8, kind: input, shape index: {}]   ;;  %s4953_s9 = inlined_call_operand.hbm [shape: f32[1,512], index: 9, kind: input, shape index: {}]   ;;  %s4954_s10 = inlined_call_operand.hbm [shape: f32[1,512], index: 10, kind: input, shape index: {}]   ;;  %s4955_s11 = inlined_call_operand.hbm [shape: f32[512,1024], index: 11, kind: input, shape index: {}]   ;;  %s4956_s12 = inlined_call_operand.hbm [shape: f32[1,1024], index: 12, kind: input, shape index: {}]   ;;  %s4957_s13 = inlined_call_operand.hbm [shape: f32[1,1024], index: 13, kind: input, shape index: {}]   ;;  %s4958_s14 = inlined_call_operand.hbm [shape: f32[1,1024], index: 14, kind: input, shape index: {}]   ;;  %s4959_s15 = inlined_call_operand.hbm [shape: f32[1024,256], index: 15, kind: input, shape index: {}]   ;;  %s4960_s16 = inlined_call_operand.hbm [shape: f32[1,256], index: 16, kind: input, shape index: {}]   ;;  %s4961_s17 = inlined_call_operand.vmem [shape: f32[8,256], index: 17, kind: output, shape index: {}]  }
   0x1   :  { %4965 = sst [smem:[#allocation37_spill]] %s4944_s0 }
   0x2   :  { %4966 = sst [smem:[#allocation38_spill]] %s4945_s1 }
   0x3   :  { %4967 = sst [smem:[#allocation39_spill]] %s4961_s17 }
   0x4   :  { %22 = vsyncpa [#allocation3], 0 }
   0x5   :  { %23 = vsyncpa [#allocation5], 0 }
   0x6   :  { %24 = vsyncpa [#allocation8], 0 }
   0x7   :  { %25 = vsyncpa [#allocation11], 0 }
   0x8   :  { %26 = vsyncpa [#allocation14], 0 }
   0x9   :  { %27 = vsyncpa [#allocation17], 0 }
   0xa   :  { %28 = vsyncpa [#allocation20], 0 }
   0xb   :  { %29 = vsyncpa [#allocation23], 0 }
   0xc   :  { %30 = vsyncpa [#allocation26], 0  ;;  %s4380_s24 = smov [#allocation4]   ;;  %s4968_s28 = sld [smem:[#allocation38_spill]] }
   0xd   :  { %s46_s25 = sshll.u32 %s4380_s24, 4  ;;  %s47_s25 = int_to_ptr.vmem [resolvable:$true] %s46_s25 }
  0x12   :  { %s3988_s29 = scalar_lea.hbm %s4968_s28, 512 }
  0x13   :  { %p3989_p0 = scmp.ne.s32.totalorder %s4968_s28, %s3988_s29  ;;  %p3992_p1 = scmp.lt.u32.totalorder %s3988_s29, %s4968_s28 }
  0x15   :  { %p3994_p2 = pnand %p3992_p1, %p3989_p0 }
  0x17   :  { %3997 = shalt.err (!%p3994_p2)
}
  0x18   :  { %s3998_s1 = scalar_lea.vmem %s47_s25, 512  ;;  %p4003_p4 = scmp.lt.s32.totalorder %s47_s25, %s47_s25 }
  0x19   :  { %p3999_p3 = scmp.ne.s32.totalorder %s47_s25, %s3998_s1  ;;  %p4004_p5 = scmp.lt.s32.totalorder %s3998_s1, %s3998_s1 }
  0x1b   :  { %p4005_p6 = por %p4004_p5, %p4003_p4 }
  0x1d   :  { %p4006_p7 = pnand %p4005_p6, %p3999_p3 }
  0x1f   :  { %4009 = shalt.err (!%p4006_p7)
}
  0x20   :  { %s4381_s20 = smov 128   ;;  %s4382_s21 = smov 8  }
  0x21   :  { %52 = dma.hbm_to_vmem [thread:$0]  %s4968_s28, 512, %s47_s25, [#allocation5], %s4381_s20, %s4381_s20, %s4382_s21  }
  0x22   :  { %s4383_s24 = smov [#allocation7]   ;;  %s4010_s0 = scalar_lea.hbm %s4947_s3, 4096 }
  0x23   :  { %s68_s26 = sshll.u32 %s4383_s24, 4  ;;  %p4011_p8 = scmp.ne.s32.totalorder %s4947_s3, %s4010_s0  ;;  %s69_s26 = int_to_ptr.vmem [resolvable:$true] %s68_s26 }
  0x24   :  { %p4014_p9 = scmp.lt.u32.totalorder %s4010_s0, %s4947_s3 }
  0x26   :  { %p4016_p10 = pnand %p4014_p9, %p4011_p8 }
  0x28   :  { %4019 = shalt.err (!%p4016_p10)
}
  0x29   :  { %s4020_s17 = scalar_lea.vmem %s69_s26, 4096  ;;  %p4025_p12 = scmp.lt.s32.totalorder %s69_s26, %s69_s26 }
  0x2a   :  { %p4021_p11 = scmp.ne.s32.totalorder %s69_s26, %s4020_s17  ;;  %p4026_p13 = scmp.lt.s32.totalorder %s4020_s17, %s4020_s17 }
  0x2c   :  { %p4027_p0 = por %p4026_p13, %p4025_p12 }
  0x2e   :  { %p4028_p1 = pnand %p4027_p0, %p4021_p11 }
  0x30   :  { %4031 = shalt.err (!%p4028_p1)
}
  0x31   :  { %s4384_s25 = smov 256   ;;  %s4385_s28 = smov 16  }
  0x32   :  { %74 = dma.hbm_to_vmem [thread:$0]  %s4947_s3, 4096, %s69_s26, [#allocation8], %s4384_s25, %s4384_s25, %s4385_s28  }
  0x33   :  { %s4386_s22 = smov [#allocation10]   ;;  %s4387_s24 = smov [#allocation13]  }
  0x34   :  { %s91_s23 = sshll.u32 %s4386_s22, 4  ;;  %s110_s27 = sshll.u32 %s4387_s24, 4  ;;  %s92_s23 = int_to_ptr.vmem [resolvable:$true] %s91_s23  ;;  %s4525_s27 = int_to_ptr.vmem [resolvable:$true] %s110_s27 }
  0x35   :  { %s4032_s0 = scalar_lea.hbm %s4949_s5, 32 }
  0x36   :  { %p4033_p2 = scmp.ne.s32.totalorder %s4949_s5, %s4032_s0  ;;  %p4036_p3 = scmp.lt.u32.totalorder %s4032_s0, %s4949_s5 }
  0x38   :  { %p4038_p4 = pnand %p4036_p3, %p4033_p2 }
  0x3a   :  { %4041 = shalt.err (!%p4038_p4)
}
  0x3b   :  { %s4042_s3 = scalar_lea.vmem %s92_s23, 32  ;;  %p4047_p6 = scmp.lt.s32.totalorder %s92_s23, %s92_s23 }
  0x3c   :  { %p4043_p5 = scmp.ne.s32.totalorder %s92_s23, %s4042_s3  ;;  %p4048_p7 = scmp.lt.s32.totalorder %s4042_s3, %s4042_s3 }
  0x3e   :  { %p4049_p8 = por %p4048_p7, %p4047_p6 }
  0x40   :  { %p4050_p9 = pnand %p4049_p8, %p4043_p5 }
  0x42   :  { %4053 = shalt.err (!%p4050_p9)
}
  0x43   :  { %94 = dma.hbm_to_vmem [thread:$0]  %s4949_s5, 32, %s92_s23, [#allocation11]  }
  0x44   :  { %s4054_s24 = scalar_lea.hbm %s4951_s7, 16384 }
  0x45   :  { %p4055_p10 = scmp.ne.s32.totalorder %s4951_s7, %s4054_s24  ;;  %p4058_p11 = scmp.lt.u32.totalorder %s4054_s24, %s4951_s7 }
  0x47   :  { %p4060_p12 = pnand %p4058_p11, %p4055_p10 }
  0x49   :  { %4063 = shalt.err (!%p4060_p12)
}
  0x4a   :  { %s4064_s18 = scalar_lea.vmem %s4525_s27, 16384  ;;  %p4069_p0 = scmp.lt.s32.totalorder %s4525_s27, %s4525_s27 }
  0x4b   :  { %p4065_p13 = scmp.ne.s32.totalorder %s4525_s27, %s4064_s18  ;;  %p4070_p1 = scmp.lt.s32.totalorder %s4064_s18, %s4064_s18 }
  0x4d   :  { %p4071_p2 = por %p4070_p1, %p4069_p0 }
  0x4f   :  { %p4072_p3 = pnand %p4071_p2, %p4065_p13 }
  0x51   :  { %4075 = shalt.err (!%p4072_p3)
}
  0x52   :  { %s4388_s5 = smov 512   ;;  %s4389_s23 = smov 32  }
  0x53   :  { %116 = dma.hbm_to_vmem [thread:$0]  %s4951_s7, 16384, %s4525_s27, [#allocation14], %s4388_s5, %s4388_s5, %s4389_s23  }
  0x54   :  { %s4390_s3 = smov [#allocation16]   ;;  %s4391_s20 = smov [#allocation19]  }
  0x55   :  { %s133_s26 = sshll.u32 %s4390_s3, 4  ;;  %s152_s21 = sshll.u32 %s4391_s20, 4  ;;  %s134_s26 = int_to_ptr.vmem [resolvable:$true] %s133_s26  ;;  %s4556_s21 = int_to_ptr.vmem [resolvable:$true] %s152_s21 }
  0x56   :  { %s4076_s17 = scalar_lea.hbm %s4953_s9, 64 }
  0x57   :  { %p4077_p4 = scmp.ne.s32.totalorder %s4953_s9, %s4076_s17  ;;  %p4080_p5 = scmp.lt.u32.totalorder %s4076_s17, %s4953_s9 }
  0x59   :  { %p4082_p6 = pnand %p4080_p5, %p4077_p4 }
  0x5b   :  { %4085 = shalt.err (!%p4082_p6)
}
  0x5c   :  { %s4086_s7 = scalar_lea.vmem %s134_s26, 64  ;;  %p4091_p8 = scmp.lt.s32.totalorder %s134_s26, %s134_s26 }
  0x5d   :  { %p4087_p7 = scmp.ne.s32.totalorder %s134_s26, %s4086_s7  ;;  %p4092_p9 = scmp.lt.s32.totalorder %s4086_s7, %s4086_s7 }
  0x5f   :  { %p4093_p10 = por %p4092_p9, %p4091_p8 }
  0x61   :  { %p4094_p11 = pnand %p4093_p10, %p4087_p7 }
  0x63   :  { %4097 = shalt.err (!%p4094_p11)
}
  0x64   :  { %136 = dma.hbm_to_vmem [thread:$0]  %s4953_s9, 64, %s134_s26, [#allocation17]  }
  0x65   :  { %s4098_s1 = scalar_lea.hbm %s4955_s11, 65536 }
  0x66   :  { %p4099_p12 = scmp.ne.s32.totalorder %s4955_s11, %s4098_s1  ;;  %p4102_p13 = scmp.lt.u32.totalorder %s4098_s1, %s4955_s11 }
  0x68   :  { %p4104_p0 = pnand %p4102_p13, %p4099_p12 }
  0x6a   :  { %4107 = shalt.err (!%p4104_p0)
}
  0x6b   :  { %s4108_s17 = scalar_lea.vmem %s4556_s21, 65536  ;;  %p4113_p2 = scmp.lt.s32.totalorder %s4556_s21, %s4556_s21 }
  0x6c   :  { %p4109_p1 = scmp.ne.s32.totalorder %s4556_s21, %s4108_s17  ;;  %p4114_p3 = scmp.lt.s32.totalorder %s4108_s17, %s4108_s17 }
  0x6e   :  { %p4115_p4 = por %p4114_p3, %p4113_p2 }
  0x70   :  { %p4116_p5 = pnand %p4115_p4, %p4109_p1 }
  0x72   :  { %4119 = shalt.err (!%p4116_p5)
}
  0x73   :  { %s4392_s9 = smov 1024   ;;  %s4393_s26 = smov 64  }
  0x74   :  { %158 = dma.hbm_to_vmem [thread:$0]  %s4955_s11, 65536, %s4556_s21, [#allocation20], %s4392_s9, %s4392_s9, %s4393_s26  }
  0x75   :  { %s4394_s30 = smov [#allocation22]   ;;  %s4395_s7 = smov [#allocation25]  }
  0x76   :  { %s175_s18 = sshll.u32 %s4394_s30, 4  ;;  %s194_s27 = sshll.u32 %s4395_s7, 4  ;;  %s176_s18 = int_to_ptr.vmem [resolvable:$true] %s175_s18  ;;  %s4587_s27 = int_to_ptr.vmem [resolvable:$true] %s194_s27 }
  0x77   :  { %s4120_s19 = scalar_lea.hbm %s4957_s13, 128 }
  0x78   :  { %p4121_p6 = scmp.ne.s32.totalorder %s4957_s13, %s4120_s19  ;;  %p4124_p7 = scmp.lt.u32.totalorder %s4120_s19, %s4957_s13 }
  0x7a   :  { %p4126_p8 = pnand %p4124_p7, %p4121_p6 }
  0x7c   :  { %4129 = shalt.err (!%p4126_p8)
}
  0x7d   :  { %s4130_s11 = scalar_lea.vmem %s176_s18, 128  ;;  %p4135_p10 = scmp.lt.s32.totalorder %s176_s18, %s176_s18 }
  0x7e   :  { %p4131_p9 = scmp.ne.s32.totalorder %s176_s18, %s4130_s11  ;;  %p4136_p11 = scmp.lt.s32.totalorder %s4130_s11, %s4130_s11 }
  0x80   :  { %p4137_p12 = por %p4136_p11, %p4135_p10 }
  0x82   :  { %p4138_p13 = pnand %p4137_p12, %p4131_p9 }
  0x84   :  { %4141 = shalt.err (!%p4138_p13)
}
  0x85   :  { %178 = dma.hbm_to_vmem [thread:$0]  %s4957_s13, 128, %s176_s18, [#allocation23]  }
  0x86   :  { %s4142_s26 = scalar_lea.hbm %s4959_s15, 32768 }
  0x87   :  { %p4143_p0 = scmp.ne.s32.totalorder %s4959_s15, %s4142_s26  ;;  %p4146_p1 = scmp.lt.u32.totalorder %s4142_s26, %s4959_s15 }
  0x89   :  { %p4148_p2 = pnand %p4146_p1, %p4143_p0 }
  0x8b   :  { %4151 = shalt.err (!%p4148_p2)
}
  0x8c   :  { %s4152_s5 = scalar_lea.vmem %s4587_s27, 32768  ;;  %p4157_p4 = scmp.lt.s32.totalorder %s4587_s27, %s4587_s27 }
  0x8d   :  { %p4153_p3 = scmp.ne.s32.totalorder %s4587_s27, %s4152_s5  ;;  %p4158_p5 = scmp.lt.s32.totalorder %s4152_s5, %s4152_s5 }
  0x8f   :  { %p4159_p6 = por %p4158_p5, %p4157_p4 }
  0x91   :  { %p4160_p7 = pnand %p4159_p6, %p4153_p3 }
  0x93   :  { %4163 = shalt.err (!%p4160_p7)
}
  0x94   :  { %200 = dma.hbm_to_vmem [thread:$0]  %s4959_s15, 32768, %s4587_s27, [#allocation26], %s4384_s25, %s4384_s25, %s4385_s28  }
  0x95   :  { %s4396_s23 = smov [#allocation2]   ;;  %s4397_s1 = smov [#allocation6]  }
  0x96   :  { %s37_s19 = sshll.u32 %s4396_s23, 4  ;;  %s59_s3 = sshll.u32 %s4397_s1, 4  ;;  %s38_s19 = int_to_ptr.vmem [resolvable:$true] %s37_s19  ;;  %s60_s3 = int_to_ptr.vmem [resolvable:$true] %s59_s3 }
  0x97   :  { %s4969_s11 = sld [smem:[#allocation37_spill]] }
  0x9d   :  { %s4164_s21 = scalar_lea.hbm %s4969_s11, 128 }
  0x9e   :  { %p4165_p8 = scmp.ne.s32.totalorder %s4969_s11, %s4164_s21  ;;  %p4168_p9 = scmp.lt.u32.totalorder %s4164_s21, %s4969_s11 }
  0xa0   :  { %p4170_p10 = pnand %p4168_p9, %p4165_p8 }
  0xa2   :  { %4173 = shalt.err (!%p4170_p10)
}
  0xa3   :  { %s4174_s15 = scalar_lea.vmem %s38_s19, 128  ;;  %p4179_p12 = scmp.lt.s32.totalorder %s38_s19, %s38_s19 }
  0xa4   :  { %p4175_p11 = scmp.ne.s32.totalorder %s38_s19, %s4174_s15  ;;  %p4180_p13 = scmp.lt.s32.totalorder %s4174_s15, %s4174_s15 }
  0xa6   :  { %p4181_p0 = por %p4180_p13, %p4179_p12 }
  0xa8   :  { %p4182_p1 = pnand %p4181_p0, %p4175_p11 }
  0xaa   :  { %4185 = shalt.err (!%p4182_p1)
}
  0xab   :  { %40 = dma.hbm_to_vmem [thread:$0]  %s4969_s11, 128, %s38_s19, [#allocation3]  }
  0xac   :  { %s4186_s0 = scalar_lea.hbm %s4946_s2, 16 }
  0xad   :  { %p4187_p2 = scmp.ne.s32.totalorder %s4946_s2, %s4186_s0  ;;  %p4190_p3 = scmp.lt.u32.totalorder %s4186_s0, %s4946_s2 }
  0xaf   :  { %p4192_p4 = pnand %p4190_p3, %p4187_p2 }
  0xb1   :  { %4195 = shalt.err (!%p4192_p4)
}
  0xb2   :  { %s4196_s18 = scalar_lea.vmem %s60_s3, 16  ;;  %s4200_s23 = scalar_lea.vmem %s60_s3, 32 }
  0xb3   :  { %p4197_p5 = scmp.ne.s32.totalorder %s60_s3, %s4196_s18  ;;  %p4201_p6 = scmp.lt.s32.totalorder %s60_s3, %s60_s3 }
  0xb4   :  { %p4202_p7 = scmp.lt.s32.totalorder %s4200_s23, %s4196_s18 }
  0xb6   :  { %p4203_p8 = por %p4202_p7, %p4201_p6 }
  0xb8   :  { %p4204_p9 = pnand %p4203_p8, %p4197_p5 }
  0xba   :  { %4207 = shalt.err (!%p4204_p9)
}
  0xbb   :  { %62 = dma.hbm_to_vmem [thread:$0]  %s4946_s2, 16, %s60_s3, [#allocation5]  }
  0xbc   :  { %s4398_s20 = smov [#allocation9]   ;;  %s4399_s11 = smov [#allocation12]  }
  0xbd   :  { %s81_s22 = sshll.u32 %s4398_s20, 4  ;;  %s101_s21 = sshll.u32 %s4399_s11, 4  ;;  %s82_s22 = int_to_ptr.vmem [resolvable:$true] %s81_s22  ;;  %s102_s21 = int_to_ptr.vmem [resolvable:$true] %s101_s21 }
  0xbe   :  { %s4208_s9 = scalar_lea.hbm %s4948_s4, 32 }
  0xbf   :  { %p4209_p10 = scmp.ne.s32.totalorder %s4948_s4, %s4208_s9  ;;  %p4212_p11 = scmp.lt.u32.totalorder %s4208_s9, %s4948_s4 }
  0xc1   :  { %p4214_p12 = pnand %p4212_p11, %p4209_p10 }
  0xc3   :  { %4217 = shalt.err (!%p4214_p12)
}
  0xc4   :  { %s4218_s2 = scalar_lea.vmem %s82_s22, 32  ;;  %p4223_p0 = scmp.lt.s32.totalorder %s82_s22, %s82_s22 }
  0xc5   :  { %p4219_p13 = scmp.ne.s32.totalorder %s82_s22, %s4218_s2  ;;  %p4224_p1 = scmp.lt.s32.totalorder %s4218_s2, %s4218_s2 }
  0xc7   :  { %p4225_p2 = por %p4224_p1, %p4223_p0 }
  0xc9   :  { %p4226_p3 = pnand %p4225_p2, %p4219_p13 }
  0xcb   :  { %4229 = shalt.err (!%p4226_p3)
}
  0xcc   :  { %84 = dma.hbm_to_vmem [thread:$0]  %s4948_s4, 32, %s82_s22, [#allocation8]  }
  0xcd   :  { %s4230_s30 = scalar_lea.hbm %s4950_s6, 32 }
  0xce   :  { %p4231_p4 = scmp.ne.s32.totalorder %s4950_s6, %s4230_s30  ;;  %p4234_p5 = scmp.lt.u32.totalorder %s4230_s30, %s4950_s6 }
  0xd0   :  { %p4236_p6 = pnand %p4234_p5, %p4231_p4 }
  0xd2   :  { %4239 = shalt.err (!%p4236_p6)
}
  0xd3   :  { %s4240_s23 = scalar_lea.vmem %s102_s21, 32  ;;  %p4245_p8 = scmp.lt.s32.totalorder %s102_s21, %s102_s21 }
  0xd4   :  { %p4241_p7 = scmp.ne.s32.totalorder %s102_s21, %s4240_s23  ;;  %p4246_p9 = scmp.lt.s32.totalorder %s4240_s23, %s4240_s23 }
  0xd6   :  { %p4247_p10 = por %p4246_p9, %p4245_p8 }
  0xd8   :  { %p4248_p11 = pnand %p4247_p10, %p4241_p7 }
  0xda   :  { %4251 = shalt.err (!%p4248_p11)
}
  0xdb   :  { %104 = dma.hbm_to_vmem [thread:$0]  %s4950_s6, 32, %s102_s21, [#allocation11]  }
  0xdc   :  { %s4400_s1 = smov [#allocation15]   ;;  %s4401_s22 = smov [#allocation18]  }
  0xdd   :  { %s123_s20 = sshll.u32 %s4400_s1, 4  ;;  %s143_s11 = sshll.u32 %s4401_s22, 4  ;;  %s124_s20 = int_to_ptr.vmem [resolvable:$true] %s123_s20  ;;  %s144_s11 = int_to_ptr.vmem [resolvable:$true] %s143_s11 }
  0xde   :  { %s4252_s9 = scalar_lea.hbm %s4952_s8, 64 }
  0xdf   :  { %p4253_p12 = scmp.ne.s32.totalorder %s4952_s8, %s4252_s9  ;;  %p4256_p13 = scmp.lt.u32.totalorder %s4252_s9, %s4952_s8 }
  0xe1   :  { %p4258_p0 = pnand %p4256_p13, %p4253_p12 }
  0xe3   :  { %4261 = shalt.err (!%p4258_p0)
}
  0xe4   :  { %s4262_s6 = scalar_lea.vmem %s124_s20, 64  ;;  %p4267_p2 = scmp.lt.s32.totalorder %s124_s20, %s124_s20 }
  0xe5   :  { %p4263_p1 = scmp.ne.s32.totalorder %s124_s20, %s4262_s6  ;;  %p4268_p3 = scmp.lt.s32.totalorder %s4262_s6, %s4262_s6 }
  0xe7   :  { %p4269_p4 = por %p4268_p3, %p4267_p2 }
  0xe9   :  { %p4270_p5 = pnand %p4269_p4, %p4263_p1 }
  0xeb   :  { %4273 = shalt.err (!%p4270_p5)
}
  0xec   :  { %126 = dma.hbm_to_vmem [thread:$0]  %s4952_s8, 64, %s124_s20, [#allocation14]  }
  0xed   :  { %s4274_s29 = scalar_lea.hbm %s4954_s10, 64 }
  0xee   :  { %p4275_p6 = scmp.ne.s32.totalorder %s4954_s10, %s4274_s29  ;;  %p4278_p7 = scmp.lt.u32.totalorder %s4274_s29, %s4954_s10 }
  0xf0   :  { %p4280_p8 = pnand %p4278_p7, %p4275_p6 }
  0xf2   :  { %4283 = shalt.err (!%p4280_p8)
}
  0xf3   :  { %s4284_s13 = scalar_lea.vmem %s144_s11, 64  ;;  %p4289_p10 = scmp.lt.s32.totalorder %s144_s11, %s144_s11 }
  0xf4   :  { %p4285_p9 = scmp.ne.s32.totalorder %s144_s11, %s4284_s13  ;;  %p4290_p11 = scmp.lt.s32.totalorder %s4284_s13, %s4284_s13 }
  0xf6   :  { %p4291_p12 = por %p4290_p11, %p4289_p10 }
  0xf8   :  { %p4292_p13 = pnand %p4291_p12, %p4285_p9 }
  0xfa   :  { %4295 = shalt.err (!%p4292_p13)
}
  0xfb   :  { %146 = dma.hbm_to_vmem [thread:$0]  %s4954_s10, 64, %s144_s11, [#allocation17]  }
  0xfc   :  { %s4402_s23 = smov [#allocation21]   ;;  %s4403_s19 = smov [#allocation24]  }
  0xfd   :  { %s165_s4 = sshll.u32 %s4402_s23, 4  ;;  %s185_s1 = sshll.u32 %s4403_s19, 4  ;;  %s166_s4 = int_to_ptr.vmem [resolvable:$true] %s165_s4  ;;  %s186_s1 = int_to_ptr.vmem [resolvable:$true] %s185_s1 }
  0xfe   :  { %s4296_s24 = scalar_lea.hbm %s4956_s12, 128 }
  0xff   :  { %p4297_p0 = scmp.ne.s32.totalorder %s4956_s12, %s4296_s24  ;;  %p4300_p1 = scmp.lt.u32.totalorder %s4296_s24, %s4956_s12 }
 0x101   :  { %p4302_p2 = pnand %p4300_p1, %p4297_p0 }
 0x103   :  { %4305 = shalt.err (!%p4302_p2)
}
 0x104   :  { %s4306_s10 = scalar_lea.vmem %s166_s4, 128  ;;  %p4311_p4 = scmp.lt.s32.totalorder %s166_s4, %s166_s4 }
 0x105   :  { %p4307_p3 = scmp.ne.s32.totalorder %s166_s4, %s4306_s10  ;;  %p4312_p5 = scmp.lt.s32.totalorder %s4306_s10, %s4306_s10 }
 0x107   :  { %p4313_p6 = por %p4312_p5, %p4311_p4 }
 0x109   :  { %p4314_p7 = pnand %p4313_p6, %p4307_p3 }
 0x10b   :  { %4317 = shalt.err (!%p4314_p7)
}
 0x10c   :  { %168 = dma.hbm_to_vmem [thread:$0]  %s4956_s12, 128, %s166_s4, [#allocation20]  }
 0x10d   :  { %s4318_s21 = scalar_lea.hbm %s4958_s14, 128 }
 0x10e   :  { %p4319_p8 = scmp.ne.s32.totalorder %s4958_s14, %s4318_s21  ;;  %p4322_p9 = scmp.lt.u32.totalorder %s4318_s21, %s4958_s14 }
 0x110   :  { %p4324_p10 = pnand %p4322_p9, %p4319_p8 }
 0x112   :  { %4327 = shalt.err (!%p4324_p10)
}
 0x113   :  { %s4328_s0 = scalar_lea.vmem %s186_s1, 128  ;;  %p4333_p12 = scmp.lt.s32.totalorder %s186_s1, %s186_s1 }
 0x114   :  { %p4329_p11 = scmp.ne.s32.totalorder %s186_s1, %s4328_s0  ;;  %p4334_p13 = scmp.lt.s32.totalorder %s4328_s0, %s4328_s0 }
 0x116   :  { %p4335_p0 = por %p4334_p13, %p4333_p12 }
 0x118   :  { %p4336_p1 = pnand %p4335_p0, %p4329_p11 }
 0x11a   :  { %4339 = shalt.err (!%p4336_p1)
}
 0x11b   :  { %188 = dma.hbm_to_vmem [thread:$0]  %s4958_s14, 128, %s186_s1, [#allocation23]  }
 0x11c   :  { %s4404_s7 = smov [#allocation27]   ;;  %s4340_s18 = scalar_lea.hbm %s4960_s16, 32 }
 0x11d   :  { %s207_s5 = sshll.u32 %s4404_s7, 4  ;;  %p4341_p2 = scmp.ne.s32.totalorder %s4960_s16, %s4340_s18  ;;  %s208_s5 = int_to_ptr.vmem [resolvable:$true] %s207_s5 }
 0x11e   :  { %p4344_p3 = scmp.lt.u32.totalorder %s4340_s18, %s4960_s16 }
 0x120   :  { %p4346_p4 = pnand %p4344_p3, %p4341_p2 }
 0x122   :  { %4349 = shalt.err (!%p4346_p4)
}
 0x123   :  { %s4350_s22 = scalar_lea.vmem %s208_s5, 32  ;;  %p4355_p6 = scmp.lt.s32.totalorder %s208_s5, %s208_s5 }
 0x124   :  { %p4351_p5 = scmp.ne.s32.totalorder %s208_s5, %s4350_s22  ;;  %p4356_p7 = scmp.lt.s32.totalorder %s4350_s22, %s4350_s22 }
 0x126   :  { %p4357_p8 = por %p4356_p7, %p4355_p6 }
 0x128   :  { %p4358_p9 = pnand %p4357_p8, %p4351_p5 }
 0x12a   :  { %4361 = shalt.err (!%p4358_p9)
}
 0x12b   :  { %210 = dma.hbm_to_vmem [thread:$0]  %s4960_s16, 32, %s208_s5, [#allocation26]  }
 0x12c   :  { %4362 = dma.done.wait [#allocation3], 128  }
 0x12d   :  { %4363 = vsyncadd [#allocation3], 4294967168 }
 0x12e   :  { %4364 = dma.done.wait [#allocation5], 528  }
 0x12f   :  { %4365 = vsyncadd [#allocation5], 4294966768 }
 0x130   :  { %4366 = dma.done.wait [#allocation8], 4128  }
 0x131   :  { %4367 = vsyncadd [#allocation8], 4294963168 }
 0x132   :  { %4368 = dma.done.wait [#allocation11], 64  }
 0x133   :  { %4369 = vsyncadd [#allocation11], 4294967232 }
 0x134   :  { %4370 = dma.done.wait [#allocation14], 16448  }
 0x135   :  { %4371 = vsyncadd [#allocation14], 4294950848 }
 0x136   :  { %4372 = dma.done.wait [#allocation17], 128  }
 0x137   :  { %4373 = vsyncadd [#allocation17], 4294967168 }
 0x138   :  { %4374 = dma.done.wait [#allocation20], 65664  }
 0x139   :  { %4375 = vsyncadd [#allocation20], 4294901632 }
 0x13a   :  { %4376 = dma.done.wait [#allocation23], 256  }
 0x13b   :  { %4377 = vsyncadd [#allocation23], 4294967040 }
 0x13c   :  { %4378 = dma.done.wait [#allocation26], 32800  }
 0x13d   :  { %4379 = vsyncadd [#allocation26], 4294934496  ;;  %v4405_v0 = vmov 0.0|0.0   ;;  %vm4406_vm0 = vmmov 0   ;;  %v4407_v1 = vmov 0.0   ;;  %v263_v2 = vld [vmem:[#allocation4] sm:$0xff] }
 0x13e   :  { %2968 = vmatprep.subr.bf16.mxu0 %v4405_v0  ;;  %2965 = vmatprep.mubr.msk.f32.mxu0 %vm4406_vm0, %v4407_v1  ;;  %v264_v3 = vld [vmem:[#allocation4 + $0x8] sm:$0xff]  ;;  %v265_v4 = vld [vmem:[#allocation4 + $0x10] sm:$0xff]  ;;  %v266_v6 = vld [vmem:[#allocation4 + $0x18] sm:$0xff]  ;;  %vm274_vm1 = vcmask 261120   ;;  %s4970_s17 = sld [smem:[#allocation39_spill]] }
 0x13f   :  { %458 = vmatprep.mubr.f32.mxu1 %v4407_v1  ;;  %v2969_v5 = vpack.c.bf16 %v264_v3, %v263_v2  ;;  %v351_v7 = vld [vmem:[#allocation7 + $0x8] sm:$0xff]  ;;  %v353_v8 = vld [vmem:[#allocation7 + $0x18] sm:$0xff]  ;;  %v350_v9 = vld [vmem:[#allocation7] sm:$0xff]  ;;  %v2972_v11 = vpack.c.bf16 %v266_v6, %v265_v4 }
 0x140   :  { %v352_v10 = vld [vmem:[#allocation7 + $0x10] sm:$0xff]  ;;  %v2974_v12 = vpack.c.bf16 %v353_v8, %v351_v7  ;;  %v355_v14 = vld [vmem:[#allocation7 + $0x28] sm:$0xff]  ;;  %v357_v15 = vld [vmem:[#allocation7 + $0x38] sm:$0xff] }
 0x141   :  { %2970 = vmatpush3.bf16.msra.mxu0 %v2969_v5  ;;  %v2976_v13 = vpack.c.bf16 %v352_v10, %v350_v9  ;;  %v354_v16 = vld [vmem:[#allocation7 + $0x20] sm:$0xff]  ;;  %v2978_v17 = vpack.c.bf16 %v357_v15, %v355_v14  ;;  %v356_v18 = vld [vmem:[#allocation7 + $0x30] sm:$0xff]  ;;  %v359_v19 = vld [vmem:[#allocation7 + $0x48] sm:$0xff] }
 0x142   :  { %2971 = vmatprep.subr.bf16.mxu0 %v4405_v0  ;;  %v361_v20 = vld [vmem:[#allocation7 + $0x58] sm:$0xff]  ;;  %2975 = vmatprep.subr.bf16.mxu1 %v2974_v12  ;;  %v2980_v21 = vpack.c.bf16 %v356_v18, %v354_v16  ;;  %v358_v24 = vld [vmem:[#allocation7 + $0x40] sm:$0xff]  ;;  %v360_v25 = vld [vmem:[#allocation7 + $0x50] sm:$0xff] }
 0x143   :  { %2977 = vmatpush1.bf16.msra.mxu1 %v2976_v13  ;;  %v262_v22 = vld [vmem:[#allocation2] sm:$0xff]  ;;  %v2982_v23 = vpack.c.bf16 %v361_v20, %v359_v19  ;;  %v363_v26 = vld [vmem:[#allocation7 + $0x68] sm:$0xff]  ;;  %v2984_v28 = vpack.c.bf16 %v360_v25, %v358_v24  ;;  %v362_v30 = vld [vmem:[#allocation7 + $0x60] sm:$0xff] }
 0x144   :  { %2979 = vmatprep.subr.bf16.mxu1 %v2978_v17  ;;  %v365_v27 = vld [vmem:[#allocation7 + $0x78] sm:$0xff]  ;;  %v364_v31 = vld [vmem:[#allocation7 + $0x70] sm:$0xff]  ;;  %v367_v32 = vld [vmem:[#allocation7 + $0x88] sm:$0xff] }
 0x145   :  { %2973 = vmatpush3.bf16.msra.mxu0 %v2972_v11  ;;  %v2986_v29 = vpack.c.bf16 %v365_v27, %v363_v26  ;;  %v369_v33 = vld [vmem:[#allocation7 + $0x98] sm:$0xff]  ;;  %v2988_v34 = vpack.c.bf16 %v364_v31, %v362_v30  ;;  %v366_v36 = vld [vmem:[#allocation7 + $0x80] sm:$0xff]  ;;  %v368_v37 = vld [vmem:[#allocation7 + $0x90] sm:$0xff] }
 0x146   :  { %v2990_v35 = vpack.c.bf16 %v369_v33, %v367_v32  ;;  %v371_v38 = vld [vmem:[#allocation7 + $0xa8] sm:$0xff]  ;;  %v373_v39 = vld [vmem:[#allocation7 + $0xb8] sm:$0xff]  ;;  %v2992_v40 = vpack.c.bf16 %v368_v37, %v366_v36  ;;  %v370_v42 = vld [vmem:[#allocation7 + $0xa0] sm:$0xff] }
 0x147   :  { %2981 = vmatpush1.bf16.msra.mxu1 %v2980_v21  ;;  %v2994_v41 = vpack.c.bf16 %v373_v39, %v371_v38  ;;  %v372_v43 = vld [vmem:[#allocation7 + $0xb0] sm:$0xff]  ;;  %v375_v44 = vld [vmem:[#allocation7 + $0xc8] sm:$0xff]  ;;  %v377_v45 = vld [vmem:[#allocation7 + $0xd8] sm:$0xff] }
 0x148   :  { %2966 = vmatmul.mubr.msk.f32.vlgmr.msra.gmra.mrb[0].mxu0 %vm274_vm1, %v262_v22  ;;  %2983 = vmatprep.subr.bf16.mxu1 %v2982_v23  ;;  %v2996_v46 = vpack.c.bf16 %v372_v43, %v370_v42  ;;  %v2998_v47 = vpack.c.bf16 %v377_v45, %v375_v44  ;;  %v374_v48 = vld [vmem:[#allocation7 + $0xc0] sm:$0xff]  ;;  %v376_v49 = vld [vmem:[#allocation7 + $0xd0] sm:$0xff]  ;;  %v379_v51 = vld [vmem:[#allocation7 + $0xe8] sm:$0xff] }
 0x149   :  { %v3000_v50 = vpack.c.bf16 %v376_v49, %v374_v48  ;;  %v381_v52 = vld [vmem:[#allocation7 + $0xf8] sm:$0xff]  ;;  %v378_v54 = vld [vmem:[#allocation7 + $0xe0] sm:$0xff]  ;;  %v380_v55 = vld [vmem:[#allocation7 + $0xf0] sm:$0xff] }
 0x14a   :  { %v3002_v53 = vpack.c.bf16 %v381_v52, %v379_v51  ;;  %v3004_v56 = vpack.c.bf16 %v380_v55, %v378_v54  ;;  %v540_v57 = vld [vmem:[#allocation13 + $0x8] sm:$0xff]  ;;  %v2950_v60 = vld [vmem:[#allocation6] ss:$0 sm:$0xff]  ;;  %v539_v0 = vld [vmem:[#allocation13] sm:$0xff] }
 0x14b   :  { %2985 = vmatpush1.bf16.msra.mxu1 %v2984_v28  ;;  %v544_v58 = vld [vmem:[#allocation13 + $0x28] sm:$0xff]  ;;  %v543_v1 = vld [vmem:[#allocation13 + $0x20] sm:$0xff] }
 0x14c   :  { %2987 = vmatprep.subr.bf16.mxu1 %v2986_v29  ;;  %v3006_v59 = vpack.c.bf16 %v544_v58, %v540_v57  ;;  %v548_v2 = vld [vmem:[#allocation13 + $0x48] sm:$0xff]  ;;  %v3008_v5 = vpack.c.bf16 %v543_v1, %v539_v0  ;;  %v547_v8 = vld [vmem:[#allocation13 + $0x40] sm:$0xff] }
 0x14d   :  { %v552_v3 = vld [vmem:[#allocation13 + $0x68] sm:$0xff]  ;;  %v551_v9 = vld [vmem:[#allocation13 + $0x60] sm:$0xff] }
 0x14e   :  { %v3010_v7 = vpack.c.bf16 %v552_v3, %v548_v2  ;;  %v556_v10 = vld [vmem:[#allocation13 + $0x88] sm:$0xff]  ;;  %v3012_v12 = vpack.c.bf16 %v551_v9, %v547_v8  ;;  %v555_v14 = vld [vmem:[#allocation13 + $0x80] sm:$0xff] }
 0x14f   :  { %2989 = vmatpush1.bf16.msra.mxu1 %v2988_v34  ;;  %v560_v11 = vld [vmem:[#allocation13 + $0xa8] sm:$0xff]  ;;  %v559_v15 = vld [vmem:[#allocation13 + $0xa0] sm:$0xff] }
 0x150   :  { %2991 = vmatprep.subr.bf16.mxu1 %v2990_v35  ;;  %v3014_v13 = vpack.c.bf16 %v560_v11, %v556_v10  ;;  %v564_v16 = vld [vmem:[#allocation13 + $0xc8] sm:$0xff]  ;;  %v3016_v18 = vpack.c.bf16 %v559_v15, %v555_v14  ;;  %v563_v20 = vld [vmem:[#allocation13 + $0xc0] sm:$0xff] }
 0x151   :  { %v568_v17 = vld [vmem:[#allocation13 + $0xe8] sm:$0xff]  ;;  %v567_v21 = vld [vmem:[#allocation13 + $0xe0] sm:$0xff] }
 0x152   :  { %v3018_v19 = vpack.c.bf16 %v568_v17, %v564_v16  ;;  %v572_v22 = vld [vmem:[#allocation13 + $0x108] sm:$0xff]  ;;  %v3020_v24 = vpack.c.bf16 %v567_v21, %v563_v20  ;;  %v571_v26 = vld [vmem:[#allocation13 + $0x100] sm:$0xff] }
 0x153   :  { %2993 = vmatpush1.bf16.msra.mxu1 %v2992_v40  ;;  %v576_v23 = vld [vmem:[#allocation13 + $0x128] sm:$0xff]  ;;  %v575_v27 = vld [vmem:[#allocation13 + $0x120] sm:$0xff] }
 0x154   :  { %2995 = vmatprep.subr.bf16.mxu1 %v2994_v41  ;;  %v3022_v25 = vpack.c.bf16 %v576_v23, %v572_v22  ;;  %v3024_v28 = vpack.c.bf16 %v575_v27, %v571_v26  ;;  %v580_v29 = vld [vmem:[#allocation13 + $0x148] sm:$0xff]  ;;  %v579_v32 = vld [vmem:[#allocation13 + $0x140] sm:$0xff] }
 0x155   :  { %v584_v30 = vld [vmem:[#allocation13 + $0x168] sm:$0xff]  ;;  %v583_v33 = vld [vmem:[#allocation13 + $0x160] sm:$0xff] }
 0x156   :  { %v3026_v31 = vpack.c.bf16 %v584_v30, %v580_v29  ;;  %v3028_v34 = vpack.c.bf16 %v583_v33, %v579_v32  ;;  %v588_v35 = vld [vmem:[#allocation13 + $0x188] sm:$0xff]  ;;  %v587_v38 = vld [vmem:[#allocation13 + $0x180] sm:$0xff]  ;;  %v546_v32 = vld [vmem:[#allocation13 + $0x38] sm:$0xff] }
 0x157   :  { %2997 = vmatpush1.bf16.msra.mxu1 %v2996_v46  ;;  %v592_v36 = vld [vmem:[#allocation13 + $0x1a8] sm:$0xff]  ;;  %v591_v39 = vld [vmem:[#allocation13 + $0x1a0] sm:$0xff] }
 0x158   :  { %2999 = vmatprep.subr.bf16.mxu1 %v2998_v47  ;;  %v3030_v37 = vpack.c.bf16 %v592_v36, %v588_v35  ;;  %v3032_v40 = vpack.c.bf16 %v591_v39, %v587_v38  ;;  %v596_v41 = vld [vmem:[#allocation13 + $0x1c8] sm:$0xff]  ;;  %v595_v44 = vld [vmem:[#allocation13 + $0x1c0] sm:$0xff] }
 0x159   :  { %v600_v42 = vld [vmem:[#allocation13 + $0x1e8] sm:$0xff]  ;;  %v599_v45 = vld [vmem:[#allocation13 + $0x1e0] sm:$0xff] }
 0x15a   :  { %v3034_v43 = vpack.c.bf16 %v600_v42, %v596_v41  ;;  %v3036_v46 = vpack.c.bf16 %v599_v45, %v595_v44  ;;  %v604_v47 = vld [vmem:[#allocation13 + $0x208] sm:$0xff]  ;;  %v607_v51 = vld [vmem:[#allocation13 + $0x220] sm:$0xff] }
 0x15b   :  { %3001 = vmatpush1.bf16.msra.mxu1 %v3000_v50  ;;  %v608_v48 = vld [vmem:[#allocation13 + $0x228] sm:$0xff]  ;;  %v603_v50 = vld [vmem:[#allocation13 + $0x200] sm:$0xff] }
 0x15c   :  { %3003 = vmatprep.subr.bf16.mxu1 %v3002_v53  ;;  %v3038_v49 = vpack.c.bf16 %v608_v48, %v604_v47  ;;  %v3040_v52 = vpack.c.bf16 %v607_v51, %v603_v50  ;;  %v612_v53 = vld [vmem:[#allocation13 + $0x248] sm:$0xff]  ;;  %v615_v57 = vld [vmem:[#allocation13 + $0x260] sm:$0xff] }
 0x15d   :  { %v616_v54 = vld [vmem:[#allocation13 + $0x268] sm:$0xff]  ;;  %v635_v10 = vld [vmem:[#allocation13 + $0x300] sm:$0xff] }
 0x15e   :  { %v3042_v55 = vpack.c.bf16 %v616_v54, %v612_v53  ;;  %v628_v1 = vld [vmem:[#allocation13 + $0x2c8] sm:$0xff]  ;;  %v639_v11 = vld [vmem:[#allocation13 + $0x320] sm:$0xff] }
 0x15f   :  { %3005 = vmatpush1.bf16.msra.mxu1 %v3004_v56  ;;  %v611_v56 = vld [vmem:[#allocation13 + $0x240] sm:$0xff]  ;;  %v632_v2 = vld [vmem:[#allocation13 + $0x2e8] sm:$0xff] }
 0x160   :  { %3007 = vmatprep.subr.bf16.mxu1 %v3006_v59  ;;  %v3044_v58 = vpack.c.bf16 %v615_v57, %v611_v56  ;;  %v620_v59 = vld [vmem:[#allocation13 + $0x288] sm:$0xff]  ;;  %v3050_v3 = vpack.c.bf16 %v632_v2, %v628_v1  ;;  %v643_v16 = vld [vmem:[#allocation13 + $0x340] sm:$0xff] }
 0x161   :  { %v640_v8 = vld [vmem:[#allocation13 + $0x328] sm:$0xff]  ;;  %v647_v17 = vld [vmem:[#allocation13 + $0x360] sm:$0xff] }
 0x162   :  { %v648_v14 = vld [vmem:[#allocation13 + $0x368] sm:$0xff]  ;;  %v651_v21 = vld [vmem:[#allocation13 + $0x380] sm:$0xff] }
 0x163   :  { %v656_v20 = vld [vmem:[#allocation13 + $0x3a8] sm:$0xff]  ;;  %v655_v23 = vld [vmem:[#allocation13 + $0x3a0] sm:$0xff] }
 0x164   :  { %v3064_v26 = vpack.c.bf16 %v655_v23, %v651_v21  ;;  %v663_v29 = vld [vmem:[#allocation13 + $0x3e0] sm:$0xff] }
 0x21b   :  { %v344_v61 = vpop.f32.mrb[0].mxu0 }
 0x21c   :  { %v345_v62 = vadd.f32 %v2950_v60, %v344_v61  ;;  %v2967_v63 = vpop.f32.mrb[1].mxu0  ;;  %v624_v60 = vld [vmem:[#allocation13 + $0x2a8] sm:$0xff] }
 0x21d   :  { %v3046_v61 = vpack.c.bf16 %v624_v60, %v620_v59  ;;  %v623_v63 = vld [vmem:[#allocation13 + $0x2a0] sm:$0xff] }
 0x21e   :  { %v348_v4 = vmul.f32 0.2, %v345_v62 }
 0x220   :  { %v349_v6 = vmax.f32 %v345_v62, %v348_v4  ;;  %v619_v62 = vld [vmem:[#allocation13 + $0x280] sm:$0xff] }
 0x221   :  { %v3048_v0 = vpack.c.bf16 %v623_v63, %v619_v62  ;;  %v627_v4 = vld [vmem:[#allocation13 + $0x2c0] sm:$0xff] }
 0x222   :  { %459 = vmatmul.mubr.f32.vlgmr.msra.gmra.mrb[0].mxu1 %v349_v6 }
 0x223   :  { %3009 = vmatpush1.bf16.msra.mxu1 %v3008_v5  ;;  %v631_v5 = vld [vmem:[#allocation13 + $0x2e0] sm:$0xff] }
 0x224   :  { %3011 = vmatprep.subr.bf16.mxu1 %v3010_v7  ;;  %v3052_v6 = vpack.c.bf16 %v631_v5, %v627_v4  ;;  %v636_v7 = vld [vmem:[#allocation13 + $0x308] sm:$0xff] }
 0x225   :  { %v3054_v9 = vpack.c.bf16 %v640_v8, %v636_v7 }
 0x227   :  { %3013 = vmatpush1.bf16.msra.mxu1 %v3012_v12  ;;  %v3056_v12 = vpack.c.bf16 %v639_v11, %v635_v10 }
 0x228   :  { %3015 = vmatprep.subr.bf16.mxu1 %v3014_v13  ;;  %v644_v13 = vld [vmem:[#allocation13 + $0x348] sm:$0xff] }
 0x229   :  { %v3058_v15 = vpack.c.bf16 %v648_v14, %v644_v13 }
 0x22b   :  { %3017 = vmatpush1.bf16.msra.mxu1 %v3016_v18  ;;  %v3060_v18 = vpack.c.bf16 %v647_v17, %v643_v16  ;;  %v507_v17 = vld [vmem:[#allocation10] sm:$0x3] }
 0x22c   :  { %3019 = vmatprep.subr.bf16.mxu1 %v3018_v19  ;;  %v652_v19 = vld [vmem:[#allocation13 + $0x388] sm:$0xff] }
 0x22d   :  { %v3062_v22 = vpack.c.bf16 %v656_v20, %v652_v19 }
 0x22f   :  { %3021 = vmatpush1.bf16.msra.mxu1 %v3020_v24  ;;  %v660_v24 = vld [vmem:[#allocation13 + $0x3c8] sm:$0xff] }
 0x230   :  { %3023 = vmatprep.subr.bf16.mxu1 %v3022_v25  ;;  %v664_v25 = vld [vmem:[#allocation13 + $0x3e8] sm:$0xff] }
 0x231   :  { %v3066_v27 = vpack.c.bf16 %v664_v25, %v660_v24 }
 0x233   :  { %3025 = vmatpush1.bf16.msra.mxu1 %v3024_v28  ;;  %v659_v28 = vld [vmem:[#allocation13 + $0x3c0] sm:$0xff] }
 0x234   :  { %3027 = vmatprep.subr.bf16.mxu1 %v3026_v31  ;;  %v3068_v30 = vpack.c.bf16 %v663_v29, %v659_v28  ;;  %v542_v31 = vld [vmem:[#allocation13 + $0x18] sm:$0xff] }
 0x235   :  { %v3070_v33 = vpack.c.bf16 %v546_v32, %v542_v31 }
 0x237   :  { %3029 = vmatpush1.bf16.msra.mxu1 %v3028_v34  ;;  %v384_v34 = vlaneseq }
 0x238   :  { %3031 = vmatprep.subr.bf16.mxu1 %v3030_v37  ;;  %v382_v37 = vld [vmem:[#allocation9] sm:$0x3] }
 0x239   :  { %v4729_v35 = vshrl.u32 %v384_v34, 7  ;;  %v541_v34 = vld [vmem:[#allocation13 + $0x10] sm:$0xff] }
 0x23b   :  { %3033 = vmatpush1.bf16.msra.mxu1 %v3032_v40  ;;  %v4732_v36 = vsub.s32 0, %v4729_v35  ;;  %v4735_v38 = vsub.s32 1, %v4729_v35 }
 0x23c   :  { %3035 = vmatprep.subr.bf16.mxu1 %v3034_v43 }
 0x23d   :  { %v387_v39 = vrot.slane %v382_v37, %v4732_v36  ;;  %v391_v40 = vrot.slane %v382_v37, %v4735_v38  ;;  %v512_v20 = vrot.slane %v507_v17, %v4732_v36  ;;  %v516_v23 = vrot.slane %v507_v17, %v4735_v38  ;;  %v545_v37 = vld [vmem:[#allocation13 + $0x30] sm:$0xff] }
 0x23f   :  { %3037 = vmatpush1.bf16.msra.mxu1 %v3036_v46 }
 0x240   :  { %3039 = vmatprep.subr.bf16.mxu1 %v3038_v49 }
 0x243   :  { %3041 = vmatpush1.bf16.msra.mxu1 %v3040_v52 }
 0x244   :  { %3043 = vmatprep.subr.bf16.mxu1 %v3042_v55 }
 0x247   :  { %3045 = vmatpush1.bf16.msra.mxu1 %v3044_v58 }
 0x248   :  { %3047 = vmatprep.subr.bf16.mxu1 %v3046_v61 }
 0x24b   :  { %3049 = vmatpush1.bf16.msra.mxu1 %v3048_v0 }
 0x24c   :  { %3051 = vmatprep.subr.bf16.mxu1 %v3050_v3 }
 0x24f   :  { %3053 = vmatpush1.bf16.msra.mxu1 %v3052_v6 }
 0x250   :  { %3055 = vmatprep.subr.bf16.mxu1 %v3054_v9 }
 0x253   :  { %3057 = vmatpush1.bf16.msra.mxu1 %v3056_v12 }
 0x254   :  { %3059 = vmatprep.subr.bf16.mxu1 %v3058_v15 }
 0x257   :  { %3061 = vmatpush1.bf16.msra.mxu1 %v3060_v18  ;;  %v521_v18 = vld [vmem:[#allocation12] sm:$0x3] }
 0x258   :  { %3063 = vmatprep.subr.bf16.mxu1 %v3062_v22  ;;  %v530_v28 = vrot.slane %v521_v18, %v4735_v38 }
 0x25b   :  { %3065 = vmatpush1.bf16.msra.mxu1 %v3064_v26  ;;  %v526_v26 = vrot.slane %v521_v18, %v4732_v36  ;;  %v597_v18 = vld [vmem:[#allocation13 + $0x1d0] sm:$0xff] }
 0x25c   :  { %3067 = vmatprep.subr.bf16.mxu1 %v3066_v27 }
 0x25f   :  { %3069 = vmatpush1.bf16.msra.mxu1 %v3068_v30 }
 0x260   :  { %3071 = vmatprep.subr.bf16.mxu1 %v3070_v33 }
 0x2f5   :  { %v460_v41 = vpop.f32.mrb[0].mxu1 }
 0x2f6   :  { %v461_v42 = vadd.f32 %v460_v41, %v387_v39  ;;  %v462_v43 = vpop.f32.mrb[1].mxu1  ;;  %v554_v41 = vld [vmem:[#allocation13 + $0x78] sm:$0xff] }
 0x2f7   :  { %v463_v44 = vadd.f32 %v462_v43, %v391_v40  ;;  %v550_v40 = vld [vmem:[#allocation13 + $0x58] sm:$0xff]  ;;  %v3072_v43 = vpack.c.bf16 %v545_v37, %v541_v34 }
 0x2f8   :  { %v465_v45 = vrot.slane %v461_v42, 4  ;;  %v479_v46 = vmul.f32 %v461_v42, %v461_v42 }
 0x2f9   :  { %v471_v47 = vrot.slane %v463_v44, 4  ;;  %v480_v48 = vmul.f32 %v463_v44, %v463_v44 }
 0x2fa   :  { %v466_v49 = vadd.f32 %v465_v45, %v461_v42  ;;  %v481_v50 = vrot.slane %v479_v46, 4  ;;  %v3074_v45 = vpack.c.bf16 %v554_v41, %v550_v40  ;;  %v625_v40 = vld [vmem:[#allocation13 + $0x2b0] sm:$0xff]  ;;  %v630_v41 = vld [vmem:[#allocation13 + $0x2d8] sm:$0xff] }
 0x2fb   :  { %v472_v51 = vadd.f32 %v471_v47, %v463_v44  ;;  %v487_v52 = vrot.slane %v480_v48, 4  ;;  %v553_v47 = vld [vmem:[#allocation13 + $0x70] sm:$0xff] }
 0x2fc   :  { %v467_v53 = vrot.slane %v466_v49, 2  ;;  %v482_v54 = vadd.f32 %v481_v50, %v479_v46  ;;  %v549_v46 = vld [vmem:[#allocation13 + $0x50] sm:$0xff] }
 0x2fd   :  { %v473_v55 = vrot.slane %v472_v51, 2  ;;  %v488_v56 = vadd.f32 %v487_v52, %v480_v48  ;;  %v558_v48 = vld [vmem:[#allocation13 + $0x98] sm:$0xff]  ;;  %v3076_v50 = vpack.c.bf16 %v553_v47, %v549_v46  ;;  %v557_v52 = vld [vmem:[#allocation13 + $0x90] sm:$0xff] }
 0x2fe   :  { %v468_v57 = vadd.f32 %v467_v53, %v466_v49  ;;  %v483_v58 = vrot.slane %v482_v54, 2  ;;  %v562_v49 = vld [vmem:[#allocation13 + $0xb8] sm:$0xff]  ;;  %v561_v53 = vld [vmem:[#allocation13 + $0xb0] sm:$0xff] }
 0x2ff   :  { %v474_v59 = vadd.f32 %v473_v55, %v472_v51  ;;  %v489_v60 = vrot.slane %v488_v56, 2  ;;  %v3078_v51 = vpack.c.bf16 %v562_v49, %v558_v48  ;;  %v570_v55 = vld [vmem:[#allocation13 + $0xf8] sm:$0xff]  ;;  %v629_v46 = vld [vmem:[#allocation13 + $0x2d0] sm:$0xff] }
 0x300   :  { %v469_v61 = vrot.slane %v468_v57, 1  ;;  %v484_v62 = vadd.f32 %v483_v58, %v482_v54  ;;  %v566_v54 = vld [vmem:[#allocation13 + $0xd8] sm:$0xff]  ;;  %v565_v58 = vld [vmem:[#allocation13 + $0xd0] sm:$0xff] }
 0x301   :  { %v475_v63 = vrot.slane %v474_v59, 1  ;;  %v490_v0 = vadd.f32 %v489_v60, %v488_v56  ;;  %v3080_v56 = vpack.c.bf16 %v561_v53, %v557_v52  ;;  %v574_v60 = vld [vmem:[#allocation13 + $0x118] sm:$0xff]  ;;  %v633_v47 = vld [vmem:[#allocation13 + $0x2f0] sm:$0xff] }
 0x302   :  { %v470_v1 = vadd.f32 %v469_v61, %v468_v57  ;;  %v485_v2 = vrot.slane %v484_v62, 1  ;;  %v3082_v57 = vpack.c.bf16 %v570_v55, %v566_v54  ;;  %v578_v61 = vld [vmem:[#allocation13 + $0x138] sm:$0xff]  ;;  %v637_v52 = vld [vmem:[#allocation13 + $0x310] sm:$0xff] }
 0x303   :  { %v476_v3 = vadd.f32 %v475_v63, %v474_v59  ;;  %v491_v4 = vrot.slane %v490_v0, 1  ;;  %v569_v59 = vld [vmem:[#allocation13 + $0xf0] sm:$0xff]  ;;  %v3086_v63 = vpack.c.bf16 %v578_v61, %v574_v60  ;;  %v638_v48 = vld [vmem:[#allocation13 + $0x318] sm:$0xff] }
 0x304   :  { %v477_v5 = vmul.f32 0.125, %v470_v1  ;;  %v486_v6 = vadd.f32 %v485_v2, %v484_v62  ;;  %v3084_v62 = vpack.c.bf16 %v569_v59, %v565_v58  ;;  %v577_v1 = vld [vmem:[#allocation13 + $0x130] sm:$0xff]  ;;  %v582_v2 = vld [vmem:[#allocation13 + $0x158] sm:$0xff] }
 0x305   :  { %v478_v7 = vmul.f32 0.125, %v476_v3  ;;  %v492_v8 = vadd.f32 %v491_v4, %v490_v0  ;;  %v573_v0 = vld [vmem:[#allocation13 + $0x110] sm:$0xff]  ;;  %v586_v3 = vld [vmem:[#allocation13 + $0x178] sm:$0xff] }
 0x306   :  { %v493_v9 = vmul.f32 0.125, %v486_v6  ;;  %v495_v10 = vmul.f32 %v477_v5, %v477_v5  ;;  %v499_v19 = vsub.f32 %v461_v42, %v477_v5  ;;  %v3088_v4 = vpack.c.bf16 %v577_v1, %v573_v0  ;;  %v581_v6 = vld [vmem:[#allocation13 + $0x150] sm:$0xff]  ;;  %v642_v49 = vld [vmem:[#allocation13 + $0x338] sm:$0xff] }
 0x307   :  { %v494_v11 = vmul.f32 0.125, %v492_v8  ;;  %v496_v12 = vmul.f32 %v478_v7, %v478_v7  ;;  %v500_v22 = vsub.f32 %v463_v44, %v478_v7  ;;  %v3090_v5 = vpack.c.bf16 %v586_v3, %v582_v2  ;;  %v585_v7 = vld [vmem:[#allocation13 + $0x170] sm:$0xff]  ;;  %v590_v8 = vld [vmem:[#allocation13 + $0x198] sm:$0xff] }
 0x308   :  { %v497_v13 = vsub.f32 %v493_v9, %v495_v10  ;;  %v594_v9 = vld [vmem:[#allocation13 + $0x1b8] sm:$0xff]  ;;  %v3092_v10 = vpack.c.bf16 %v585_v7, %v581_v6  ;;  %v641_v53 = vld [vmem:[#allocation13 + $0x330] sm:$0xff] }
 0x309   :  { %v498_v14 = vsub.f32 %v494_v11, %v496_v12  ;;  %v3094_v11 = vpack.c.bf16 %v594_v9, %v590_v8  ;;  %v589_v12 = vld [vmem:[#allocation13 + $0x190] sm:$0xff]  ;;  %v646_v54 = vld [vmem:[#allocation13 + $0x358] sm:$0xff] }
 0x30a   :  { %v501_v15 = vadd.f32 0.8, %v497_v13  ;;  %v593_v13 = vld [vmem:[#allocation13 + $0x1b0] sm:$0xff]  ;;  %v650_v55 = vld [vmem:[#allocation13 + $0x378] sm:$0xff] }
 0x30b   :  { %v502_v16 = vadd.f32 0.8, %v498_v14  ;;  %v598_v14 = vld [vmem:[#allocation13 + $0x1d8] sm:$0xff]  ;;  %v645_v58 = vld [vmem:[#allocation13 + $0x350] sm:$0xff] }
 0x30c   :  { %3954 = vrsqrt.f32 %v501_v15  ;;  %v602_v15 = vld [vmem:[#allocation13 + $0x1f8] sm:$0xff]  ;;  %v649_v59 = vld [vmem:[#allocation13 + $0x370] sm:$0xff] }
 0x30d   :  { %3956 = vrsqrt.f32 %v502_v16  ;;  %v3096_v16 = vpack.c.bf16 %v593_v13, %v589_v12  ;;  %v3098_v17 = vpack.c.bf16 %v602_v15, %v598_v14  ;;  %v654_v60 = vld [vmem:[#allocation13 + $0x398] sm:$0xff]  ;;  %v653_v0 = vld [vmem:[#allocation13 + $0x390] sm:$0xff] }
 0x30e   :  { %v658_v61 = vld [vmem:[#allocation13 + $0x3b8] sm:$0xff]  ;;  %v657_v1 = vld [vmem:[#allocation13 + $0x3b0] sm:$0xff] }
 0x30f   :  { %v662_v2 = vld [vmem:[#allocation13 + $0x3d8] sm:$0xff]  ;;  %v661_v6 = vld [vmem:[#allocation13 + $0x3d0] sm:$0xff] }
 0x310   :  { %v666_v3 = vld [vmem:[#allocation13 + $0x3f8] sm:$0xff]  ;;  %v665_v7 = vld [vmem:[#allocation13 + $0x3f0] sm:$0xff] }
 0x311   :  { %v976_v8 = vld [vmem:[#allocation19 + $0x8] sm:$0xff]  ;;  %v975_v12 = vld [vmem:[#allocation19] sm:$0xff] }
 0x312   :  { %v984_v9 = vld [vmem:[#allocation19 + $0x48] sm:$0xff]  ;;  %v983_v13 = vld [vmem:[#allocation19 + $0x40] sm:$0xff] }
 0x313   :  { %v992_v14 = vld [vmem:[#allocation19 + $0x88] sm:$0xff] }
 0x314   :  { %v1000_v15 = vld [vmem:[#allocation19 + $0xc8] sm:$0xff] }
 0x316   :  { %v3955_v21 = vpop.eup %3954 }
 0x317   :  { %v3957_v24 = vpop.eup %3956  ;;  %v505_v25 = vmul.f32 %v3955_v21, %v499_v19  ;;  %v601_v19 = vld [vmem:[#allocation13 + $0x1f0] sm:$0xff]  ;;  %v610_v21 = vld [vmem:[#allocation13 + $0x238] sm:$0xff] }
 0x318   :  { %v506_v27 = vmul.f32 %v3957_v24, %v500_v22  ;;  %v3100_v22 = vpack.c.bf16 %v601_v19, %v597_v18  ;;  %v605_v24 = vld [vmem:[#allocation13 + $0x210] sm:$0xff] }
 0x319   :  { %v519_v29 = vmul.f32 %v512_v20, %v505_v25  ;;  %v606_v20 = vld [vmem:[#allocation13 + $0x218] sm:$0xff]  ;;  %v609_v25 = vld [vmem:[#allocation13 + $0x230] sm:$0xff] }
 0x31a   :  { %v520_v30 = vmul.f32 %v516_v23, %v506_v27  ;;  %v3102_v23 = vpack.c.bf16 %v610_v21, %v606_v20  ;;  %v618_v27 = vld [vmem:[#allocation13 + $0x278] sm:$0xff]  ;;  %v991_v18 = vld [vmem:[#allocation19 + $0x80] sm:$0xff] }
 0x31b   :  { %v533_v31 = vadd.f32 %v526_v26, %v519_v29  ;;  %v614_v26 = vld [vmem:[#allocation13 + $0x258] sm:$0xff]  ;;  %v999_v19 = vld [vmem:[#allocation19 + $0xc0] sm:$0xff] }
 0x31c   :  { %v534_v32 = vadd.f32 %v530_v28, %v520_v30  ;;  %v3104_v28 = vpack.c.bf16 %v609_v25, %v605_v24  ;;  %v3106_v29 = vpack.c.bf16 %v618_v27, %v614_v26  ;;  %v613_v30 = vld [vmem:[#allocation13 + $0x250] sm:$0xff] }
 0x31d   :  { %v535_v33 = vmul.f32 0.2, %v533_v31  ;;  %v1008_v20 = vld [vmem:[#allocation19 + $0x108] sm:$0xff]  ;;  %v1007_v24 = vld [vmem:[#allocation19 + $0x100] sm:$0xff] }
 0x31e   :  { %v536_v39 = vmul.f32 0.2, %v534_v32  ;;  %v1016_v21 = vld [vmem:[#allocation19 + $0x148] sm:$0xff]  ;;  %v1015_v25 = vld [vmem:[#allocation19 + $0x140] sm:$0xff] }
 0x31f   :  { %v4743_v44 = vmax.f32 %v533_v31, %v535_v33  ;;  %v617_v31 = vld [vmem:[#allocation13 + $0x270] sm:$0xff]  ;;  %v626_v33 = vld [vmem:[#allocation13 + $0x2b8] sm:$0xff] }
 0x320   :  { %v538_v42 = vmax.f32 %v534_v32, %v536_v39  ;;  %v622_v32 = vld [vmem:[#allocation13 + $0x298] sm:$0xff]  ;;  %v3108_v34 = vpack.c.bf16 %v617_v31, %v613_v30  ;;  %v621_v39 = vld [vmem:[#allocation13 + $0x290] sm:$0xff] }
 0x321   :  { %v3110_v37 = vpack.c.bf16 %v626_v33, %v622_v32  ;;  %v1024_v26 = vld [vmem:[#allocation19 + $0x188] sm:$0xff]  ;;  %v1023_v30 = vld [vmem:[#allocation19 + $0x180] sm:$0xff] }
 0x322   :  { %753 = vmatprep.mubr.f32.mxu1 %v538_v42  ;;  %v1032_v27 = vld [vmem:[#allocation19 + $0x1c8] sm:$0xff]  ;;  %v1031_v31 = vld [vmem:[#allocation19 + $0x1c0] sm:$0xff] }
 0x323   :  { %754 = vmatmul.mubr.f32.vlgmr.msra.gmra.mrb[2].mxu1 %v4743_v44  ;;  %v1040_v32 = vld [vmem:[#allocation19 + $0x208] sm:$0xff] }
 0x324   :  { %3073 = vmatpush1.bf16.msra.mxu1 %v3072_v43  ;;  %824 = vmatprep.mubr.f32.mxu1 %v538_v42  ;;  %v634_v42 = vld [vmem:[#allocation13 + $0x2f8] sm:$0xff]  ;;  %v3112_v43 = vpack.c.bf16 %v625_v40, %v621_v39  ;;  %v1047_v39 = vld [vmem:[#allocation19 + $0x240] sm:$0xff] }
 0x325   :  { %3075 = vmatprep.subr.bf16.mxu1 %v3074_v45  ;;  %v3114_v45 = vpack.c.bf16 %v634_v42, %v630_v41  ;;  %v1048_v33 = vld [vmem:[#allocation19 + $0x248] sm:$0xff] }
 0x326   :  { %v1056_v41 = vld [vmem:[#allocation19 + $0x288] sm:$0xff] }
 0x327   :  { %v1064_v42 = vld [vmem:[#allocation19 + $0x2c8] sm:$0xff] }
 0x328   :  { %3077 = vmatpush1.bf16.msra.mxu1 %v3076_v50  ;;  %v3116_v50 = vpack.c.bf16 %v633_v47, %v629_v46  ;;  %v1063_v46 = vld [vmem:[#allocation19 + $0x2c0] sm:$0xff] }
 0x329   :  { %3079 = vmatprep.subr.bf16.mxu1 %v3078_v51  ;;  %v3118_v51 = vpack.c.bf16 %v642_v49, %v638_v48  ;;  %v1072_v48 = vld [vmem:[#allocation19 + $0x308] sm:$0xff] }
 0x32a   :  { %v1080_v49 = vld [vmem:[#allocation19 + $0x348] sm:$0xff] }
 0x32c   :  { %3081 = vmatpush1.bf16.msra.mxu1 %v3080_v56  ;;  %v3120_v56 = vpack.c.bf16 %v641_v53, %v637_v52  ;;  %v1079_v52 = vld [vmem:[#allocation19 + $0x340] sm:$0xff] }
 0x32d   :  { %3083 = vmatprep.subr.bf16.mxu1 %v3082_v57  ;;  %v3122_v57 = vpack.c.bf16 %v650_v55, %v646_v54  ;;  %v1088_v54 = vld [vmem:[#allocation19 + $0x388] sm:$0xff] }
 0x32e   :  { %v1096_v55 = vld [vmem:[#allocation19 + $0x3c8] sm:$0xff] }
 0x330   :  { %3085 = vmatpush1.bf16.msra.mxu1 %v3084_v62  ;;  %v3124_v62 = vpack.c.bf16 %v649_v59, %v645_v58  ;;  %v1095_v58 = vld [vmem:[#allocation19 + $0x3c0] sm:$0xff] }
 0x331   :  { %3087 = vmatprep.subr.bf16.mxu1 %v3086_v63  ;;  %v3126_v63 = vpack.c.bf16 %v658_v61, %v654_v60  ;;  %v1104_v60 = vld [vmem:[#allocation19 + $0x408] sm:$0xff] }
 0x332   :  { %v1112_v61 = vld [vmem:[#allocation19 + $0x448] sm:$0xff] }
 0x334   :  { %3089 = vmatpush1.bf16.msra.mxu1 %v3088_v4  ;;  %v3128_v4 = vpack.c.bf16 %v657_v1, %v653_v0  ;;  %v1111_v0 = vld [vmem:[#allocation19 + $0x440] sm:$0xff] }
 0x335   :  { %3091 = vmatprep.subr.bf16.mxu1 %v3090_v5  ;;  %v3130_v5 = vpack.c.bf16 %v666_v3, %v662_v2  ;;  %v1120_v2 = vld [vmem:[#allocation19 + $0x488] sm:$0xff] }
 0x336   :  { %v1128_v3 = vld [vmem:[#allocation19 + $0x4c8] sm:$0xff] }
 0x338   :  { %3093 = vmatpush1.bf16.msra.mxu1 %v3092_v10  ;;  %v3132_v10 = vpack.c.bf16 %v665_v7, %v661_v6  ;;  %v1127_v6 = vld [vmem:[#allocation19 + $0x4c0] sm:$0xff] }
 0x339   :  { %3095 = vmatprep.subr.bf16.mxu1 %v3094_v11  ;;  %v3134_v11 = vpack.c.bf16 %v984_v9, %v976_v8  ;;  %v1136_v8 = vld [vmem:[#allocation19 + $0x508] sm:$0xff] }
 0x33a   :  { %v1144_v9 = vld [vmem:[#allocation19 + $0x548] sm:$0xff] }
 0x33c   :  { %3097 = vmatpush1.bf16.msra.mxu1 %v3096_v16  ;;  %v3136_v16 = vpack.c.bf16 %v983_v13, %v975_v12  ;;  %v1143_v12 = vld [vmem:[#allocation19 + $0x540] sm:$0xff] }
 0x33d   :  { %3099 = vmatprep.subr.bf16.mxu1 %v3098_v17  ;;  %v3138_v17 = vpack.c.bf16 %v1000_v15, %v992_v14  ;;  %v1152_v14 = vld [vmem:[#allocation19 + $0x588] sm:$0xff] }
 0x33e   :  { %v1160_v15 = vld [vmem:[#allocation19 + $0x5c8] sm:$0xff] }
 0x340   :  { %3101 = vmatpush1.bf16.msra.mxu1 %v3100_v22  ;;  %v3140_v22 = vpack.c.bf16 %v999_v19, %v991_v18  ;;  %v1159_v18 = vld [vmem:[#allocation19 + $0x5c0] sm:$0xff] }
 0x341   :  { %3103 = vmatprep.subr.bf16.mxu1 %v3102_v23  ;;  %v3142_v23 = vpack.c.bf16 %v1016_v21, %v1008_v20  ;;  %v1168_v20 = vld [vmem:[#allocation19 + $0x608] sm:$0xff] }
 0x342   :  { %v1176_v21 = vld [vmem:[#allocation19 + $0x648] sm:$0xff] }
 0x344   :  { %3105 = vmatpush1.bf16.msra.mxu1 %v3104_v28  ;;  %v3144_v28 = vpack.c.bf16 %v1015_v25, %v1007_v24  ;;  %v1175_v24 = vld [vmem:[#allocation19 + $0x640] sm:$0xff] }
 0x345   :  { %3107 = vmatprep.subr.bf16.mxu1 %v3106_v29  ;;  %v3146_v29 = vpack.c.bf16 %v1032_v27, %v1024_v26  ;;  %v1184_v26 = vld [vmem:[#allocation19 + $0x688] sm:$0xff] }
 0x346   :  { %v1192_v27 = vld [vmem:[#allocation19 + $0x6c8] sm:$0xff] }
 0x348   :  { %3109 = vmatpush1.bf16.msra.mxu1 %v3108_v34  ;;  %v3148_v34 = vpack.c.bf16 %v1031_v31, %v1023_v30  ;;  %v1191_v30 = vld [vmem:[#allocation19 + $0x6c0] sm:$0xff] }
 0x349   :  { %3111 = vmatprep.subr.bf16.mxu1 %v3110_v37  ;;  %v1039_v37 = vld [vmem:[#allocation19 + $0x200] sm:$0xff] }
 0x34a   :  { %v3152_v40 = vpack.c.bf16 %v1047_v39, %v1039_v37  ;;  %v1207_v37 = vld [vmem:[#allocation19 + $0x740] sm:$0xff]  ;;  %v1216_v39 = vld [vmem:[#allocation19 + $0x788] sm:$0xff] }
 0x34c   :  { %3113 = vmatpush1.bf16.msra.mxu1 %v3112_v43  ;;  %v3154_v43 = vpack.c.bf16 %v1064_v42, %v1056_v41 }
 0x34d   :  { %3115 = vmatprep.subr.bf16.mxu1 %v3114_v45  ;;  %v1055_v45 = vld [vmem:[#allocation19 + $0x280] sm:$0xff] }
 0x34e   :  { %v3156_v47 = vpack.c.bf16 %v1063_v46, %v1055_v45  ;;  %v1223_v45 = vld [vmem:[#allocation19 + $0x7c0] sm:$0xff]  ;;  %v1232_v46 = vld [vmem:[#allocation19 + $0x808] sm:$0xff] }
 0x350   :  { %3117 = vmatpush1.bf16.msra.mxu1 %v3116_v50  ;;  %v3158_v50 = vpack.c.bf16 %v1080_v49, %v1072_v48 }
 0x351   :  { %3119 = vmatprep.subr.bf16.mxu1 %v3118_v51  ;;  %v1071_v51 = vld [vmem:[#allocation19 + $0x300] sm:$0xff] }
 0x352   :  { %v3160_v53 = vpack.c.bf16 %v1079_v52, %v1071_v51  ;;  %v1239_v51 = vld [vmem:[#allocation19 + $0x840] sm:$0xff]  ;;  %v978_v52 = vld [vmem:[#allocation19 + $0x18] sm:$0xff] }
 0x354   :  { %3121 = vmatpush1.bf16.msra.mxu1 %v3120_v56  ;;  %v3162_v56 = vpack.c.bf16 %v1096_v55, %v1088_v54  ;;  %v986_v54 = vld [vmem:[#allocation19 + $0x58] sm:$0xff] }
 0x355   :  { %3123 = vmatprep.subr.bf16.mxu1 %v3122_v57  ;;  %v1087_v57 = vld [vmem:[#allocation19 + $0x380] sm:$0xff]  ;;  %v3262_v55 = vpack.c.bf16 %v986_v54, %v978_v52 }
 0x356   :  { %v3164_v59 = vpack.c.bf16 %v1095_v58, %v1087_v57  ;;  %v1256_v57 = vld [vmem:[#allocation19 + $0x8c8] sm:$0xff]  ;;  %v1391_v52 = vld [vmem:[#allocation19 + $0xd00] sm:$0xff] }
 0x358   :  { %3125 = vmatpush1.bf16.msra.mxu1 %v3124_v62  ;;  %v3166_v62 = vpack.c.bf16 %v1112_v61, %v1104_v60  ;;  %v1255_v60 = vld [vmem:[#allocation19 + $0x8c0] sm:$0xff] }
 0x359   :  { %3127 = vmatprep.subr.bf16.mxu1 %v3126_v63  ;;  %v1103_v63 = vld [vmem:[#allocation19 + $0x400] sm:$0xff] }
 0x35a   :  { %v3168_v1 = vpack.c.bf16 %v1111_v0, %v1103_v63  ;;  %v1272_v63 = vld [vmem:[#allocation19 + $0x948] sm:$0xff] }
 0x35c   :  { %3129 = vmatpush1.bf16.msra.mxu1 %v3128_v4  ;;  %v3170_v4 = vpack.c.bf16 %v1128_v3, %v1120_v2  ;;  %v1271_v2 = vld [vmem:[#allocation19 + $0x940] sm:$0xff] }
 0x35d   :  { %3131 = vmatprep.subr.bf16.mxu1 %v3130_v5  ;;  %v1119_v5 = vld [vmem:[#allocation19 + $0x480] sm:$0xff] }
 0x35e   :  { %v3172_v7 = vpack.c.bf16 %v1127_v6, %v1119_v5  ;;  %v1288_v5 = vld [vmem:[#allocation19 + $0x9c8] sm:$0xff] }
 0x360   :  { %3133 = vmatpush1.bf16.msra.mxu1 %v3132_v10  ;;  %v3174_v10 = vpack.c.bf16 %v1144_v9, %v1136_v8  ;;  %v1287_v8 = vld [vmem:[#allocation19 + $0x9c0] sm:$0xff] }
 0x361   :  { %3135 = vmatprep.subr.bf16.mxu1 %v3134_v11  ;;  %v1135_v11 = vld [vmem:[#allocation19 + $0x500] sm:$0xff] }
 0x362   :  { %v3176_v13 = vpack.c.bf16 %v1143_v12, %v1135_v11  ;;  %v1304_v11 = vld [vmem:[#allocation19 + $0xa48] sm:$0xff] }
 0x363   :  { %825 = vmatmul.mubr.f32.vlgmr.msra.gmra.mrb[4].mxu1 %v4743_v44  ;;  %v3150_v44 = vpack.c.bf16 %v1048_v33, %v1040_v32  ;;  %v1200_v32 = vld [vmem:[#allocation19 + $0x708] sm:$0xff] }
 0x364   :  { %3137 = vmatpush1.bf16.msra.mxu1 %v3136_v16  ;;  %v3178_v16 = vpack.c.bf16 %v1160_v15, %v1152_v14  ;;  %v1208_v33 = vld [vmem:[#allocation19 + $0x748] sm:$0xff]  ;;  %v1303_v14 = vld [vmem:[#allocation19 + $0xa40] sm:$0xff] }
 0x365   :  { %3139 = vmatprep.subr.bf16.mxu1 %v3138_v17  ;;  %v1151_v17 = vld [vmem:[#allocation19 + $0x580] sm:$0xff] }
 0x366   :  { %v3180_v19 = vpack.c.bf16 %v1159_v18, %v1151_v17  ;;  %v1320_v17 = vld [vmem:[#allocation19 + $0xac8] sm:$0xff] }
 0x368   :  { %3141 = vmatpush1.bf16.msra.mxu1 %v3140_v22  ;;  %v3182_v22 = vpack.c.bf16 %v1176_v21, %v1168_v20  ;;  %v1319_v20 = vld [vmem:[#allocation19 + $0xac0] sm:$0xff] }
 0x369   :  { %3143 = vmatprep.subr.bf16.mxu1 %v3142_v23  ;;  %v1167_v23 = vld [vmem:[#allocation19 + $0x600] sm:$0xff] }
 0x36a   :  { %v3184_v25 = vpack.c.bf16 %v1175_v24, %v1167_v23  ;;  %v1336_v23 = vld [vmem:[#allocation19 + $0xb48] sm:$0xff] }
 0x36c   :  { %3145 = vmatpush1.bf16.msra.mxu1 %v3144_v28  ;;  %v3186_v28 = vpack.c.bf16 %v1192_v27, %v1184_v26  ;;  %v1335_v26 = vld [vmem:[#allocation19 + $0xb40] sm:$0xff] }
 0x36d   :  { %3147 = vmatprep.subr.bf16.mxu1 %v3146_v29  ;;  %v1183_v29 = vld [vmem:[#allocation19 + $0x680] sm:$0xff] }
 0x36e   :  { %v3188_v31 = vpack.c.bf16 %v1191_v30, %v1183_v29  ;;  %v1352_v29 = vld [vmem:[#allocation19 + $0xbc8] sm:$0xff] }
 0x370   :  { %3149 = vmatpush1.bf16.msra.mxu1 %v3148_v34  ;;  %v1199_v34 = vld [vmem:[#allocation19 + $0x700] sm:$0xff] }
 0x371   :  { %3151 = vmatprep.subr.bf16.mxu1 %v3150_v44  ;;  %v3190_v44 = vpack.c.bf16 %v1208_v33, %v1200_v32  ;;  %v3192_v41 = vpack.c.bf16 %v1207_v37, %v1199_v34  ;;  %v1351_v32 = vld [vmem:[#allocation19 + $0xbc0] sm:$0xff]  ;;  %v1360_v34 = vld [vmem:[#allocation19 + $0xc08] sm:$0xff] }
 0x374   :  { %3153 = vmatpush1.bf16.msra.mxu1 %v3152_v40  ;;  %v1224_v40 = vld [vmem:[#allocation19 + $0x7c8] sm:$0xff] }
 0x375   :  { %3155 = vmatprep.subr.bf16.mxu1 %v3154_v43  ;;  %v3194_v42 = vpack.c.bf16 %v1224_v40, %v1216_v39  ;;  %v1215_v43 = vld [vmem:[#allocation19 + $0x780] sm:$0xff] }
 0x376   :  { %v3196_v48 = vpack.c.bf16 %v1223_v45, %v1215_v43  ;;  %v1359_v39 = vld [vmem:[#allocation19 + $0xc00] sm:$0xff]  ;;  %v1384_v43 = vld [vmem:[#allocation19 + $0xcc8] sm:$0xff] }
 0x377   :  { %v1367_v40 = vld [vmem:[#allocation19 + $0xc40] sm:$0xff] }
 0x378   :  { %3157 = vmatpush1.bf16.msra.mxu1 %v3156_v47  ;;  %v1240_v47 = vld [vmem:[#allocation19 + $0x848] sm:$0xff] }
 0x379   :  { %3159 = vmatprep.subr.bf16.mxu1 %v3158_v50  ;;  %v3198_v49 = vpack.c.bf16 %v1240_v47, %v1232_v46  ;;  %v1231_v50 = vld [vmem:[#allocation19 + $0x800] sm:$0xff] }
 0x37a   :  { %v1375_v46 = vld [vmem:[#allocation19 + $0xc80] sm:$0xff] }
 0x37b   :  { %3199 = vmatprep.subr.bf16.mxu0 %v3198_v49  ;;  %v1383_v47 = vld [vmem:[#allocation19 + $0xcc0] sm:$0xff]  ;;  %v1392_v49 = vld [vmem:[#allocation19 + $0xd08] sm:$0xff] }
 0x37c   :  { %3161 = vmatpush1.bf16.msra.mxu1 %v3160_v53  ;;  %v3200_v53 = vpack.c.bf16 %v1239_v51, %v1231_v50  ;;  %v1400_v50 = vld [vmem:[#allocation19 + $0xd48] sm:$0xff] }
 0x37d   :  { %3163 = vmatprep.subr.bf16.mxu1 %v3162_v56  ;;  %v1248_v56 = vld [vmem:[#allocation19 + $0x888] sm:$0xff]  ;;  %v3238_v51 = vpack.c.bf16 %v1400_v50, %v1392_v49 }
 0x37e   :  { %3201 = vmatpush1.bf16.msra.mxu0 %v3200_v53  ;;  %v3202_v58 = vpack.c.bf16 %v1256_v57, %v1248_v56  ;;  %v1399_v53 = vld [vmem:[#allocation19 + $0xd40] sm:$0xff]  ;;  %v1416_v56 = vld [vmem:[#allocation19 + $0xdc8] sm:$0xff] }
 0x37f   :  { %v3240_v54 = vpack.c.bf16 %v1399_v53, %v1391_v52 }
 0x380   :  { %3165 = vmatpush1.bf16.msra.mxu1 %v3164_v59  ;;  %v1247_v59 = vld [vmem:[#allocation19 + $0x880] sm:$0xff]  ;;  %3203 = vmatprep.subr.bf16.mxu0 %v3202_v58 }
 0x381   :  { %3167 = vmatprep.subr.bf16.mxu1 %v3166_v62  ;;  %v3204_v61 = vpack.c.bf16 %v1255_v60, %v1247_v59  ;;  %v1264_v62 = vld [vmem:[#allocation19 + $0x908] sm:$0xff]  ;;  %v1407_v58 = vld [vmem:[#allocation19 + $0xd80] sm:$0xff] }
 0x382   :  { %v3206_v0 = vpack.c.bf16 %v1272_v63, %v1264_v62  ;;  %v1415_v59 = vld [vmem:[#allocation19 + $0xdc0] sm:$0xff]  ;;  %v1432_v62 = vld [vmem:[#allocation19 + $0xe48] sm:$0xff] }
 0x383   :  { %3205 = vmatpush1.bf16.msra.mxu0 %v3204_v61  ;;  %v3244_v60 = vpack.c.bf16 %v1415_v59, %v1407_v58  ;;  %v1424_v61 = vld [vmem:[#allocation19 + $0xe08] sm:$0xff] }
 0x384   :  { %3169 = vmatpush1.bf16.msra.mxu1 %v3168_v1  ;;  %v1263_v1 = vld [vmem:[#allocation19 + $0x900] sm:$0xff]  ;;  %3207 = vmatprep.subr.bf16.mxu0 %v3206_v0  ;;  %v3246_v63 = vpack.c.bf16 %v1432_v62, %v1424_v61 }
 0x385   :  { %3171 = vmatprep.subr.bf16.mxu1 %v3170_v4  ;;  %v3208_v3 = vpack.c.bf16 %v1271_v2, %v1263_v1  ;;  %v1280_v4 = vld [vmem:[#allocation19 + $0x988] sm:$0xff]  ;;  %v1423_v0 = vld [vmem:[#allocation19 + $0xe00] sm:$0xff] }
 0x386   :  { %v3210_v6 = vpack.c.bf16 %v1288_v5, %v1280_v4  ;;  %v1431_v1 = vld [vmem:[#allocation19 + $0xe40] sm:$0xff]  ;;  %v1448_v4 = vld [vmem:[#allocation19 + $0xec8] sm:$0xff] }
 0x387   :  { %3209 = vmatpush1.bf16.msra.mxu0 %v3208_v3  ;;  %v3248_v2 = vpack.c.bf16 %v1431_v1, %v1423_v0  ;;  %v1440_v3 = vld [vmem:[#allocation19 + $0xe88] sm:$0xff] }
 0x388   :  { %3173 = vmatpush1.bf16.msra.mxu1 %v3172_v7  ;;  %v1279_v7 = vld [vmem:[#allocation19 + $0x980] sm:$0xff]  ;;  %3211 = vmatprep.subr.bf16.mxu0 %v3210_v6  ;;  %v3250_v5 = vpack.c.bf16 %v1448_v4, %v1440_v3 }
 0x389   :  { %3175 = vmatprep.subr.bf16.mxu1 %v3174_v10  ;;  %v3212_v9 = vpack.c.bf16 %v1287_v8, %v1279_v7  ;;  %v1296_v10 = vld [vmem:[#allocation19 + $0xa08] sm:$0xff]  ;;  %v1439_v6 = vld [vmem:[#allocation19 + $0xe80] sm:$0xff] }
 0x38a   :  { %v3214_v12 = vpack.c.bf16 %v1304_v11, %v1296_v10  ;;  %v1447_v7 = vld [vmem:[#allocation19 + $0xec0] sm:$0xff]  ;;  %v1464_v10 = vld [vmem:[#allocation19 + $0xf48] sm:$0xff] }
 0x38b   :  { %3213 = vmatpush1.bf16.msra.mxu0 %v3212_v9  ;;  %v3252_v8 = vpack.c.bf16 %v1447_v7, %v1439_v6  ;;  %v1456_v9 = vld [vmem:[#allocation19 + $0xf08] sm:$0xff]  ;;  %v4753_v6 = vld [vmem:[#allocation16] sm:$0xf]  ;;  %v4755_v7 = vld [vmem:[#allocation18] sm:$0xf] }
 0x38c   :  { %3177 = vmatpush1.bf16.msra.mxu1 %v3176_v13  ;;  %v1295_v13 = vld [vmem:[#allocation19 + $0xa00] sm:$0xff]  ;;  %3215 = vmatprep.subr.bf16.mxu0 %v3214_v12  ;;  %v3254_v11 = vpack.c.bf16 %v1464_v10, %v1456_v9  ;;  %v920_v9 = vrot.slane %v4753_v6, %v4732_v36 }
 0x38d   :  { %3179 = vmatprep.subr.bf16.mxu1 %v3178_v16  ;;  %v3216_v15 = vpack.c.bf16 %v1303_v14, %v1295_v13  ;;  %v1312_v16 = vld [vmem:[#allocation19 + $0xa88] sm:$0xff]  ;;  %v1455_v12 = vld [vmem:[#allocation19 + $0xf00] sm:$0xff] }
 0x38e   :  { %v3218_v18 = vpack.c.bf16 %v1320_v17, %v1312_v16  ;;  %v1463_v13 = vld [vmem:[#allocation19 + $0xf40] sm:$0xff]  ;;  %v1480_v16 = vld [vmem:[#allocation19 + $0xfc8] sm:$0xff] }
 0x38f   :  { %3217 = vmatpush1.bf16.msra.mxu0 %v3216_v15  ;;  %v3256_v14 = vpack.c.bf16 %v1463_v13, %v1455_v12  ;;  %v1472_v15 = vld [vmem:[#allocation19 + $0xf88] sm:$0xff]  ;;  %v924_v12 = vrot.slane %v4753_v6, %v4735_v38 }
 0x390   :  { %3181 = vmatpush1.bf16.msra.mxu1 %v3180_v19  ;;  %v1311_v19 = vld [vmem:[#allocation19 + $0xa80] sm:$0xff]  ;;  %3219 = vmatprep.subr.bf16.mxu0 %v3218_v18  ;;  %v3258_v17 = vpack.c.bf16 %v1480_v16, %v1472_v15  ;;  %v946_v15 = vrot.slane %v4755_v7, %v4732_v36 }
 0x391   :  { %3183 = vmatprep.subr.bf16.mxu1 %v3182_v22  ;;  %v3220_v21 = vpack.c.bf16 %v1319_v20, %v1311_v19  ;;  %v1328_v22 = vld [vmem:[#allocation19 + $0xb08] sm:$0xff]  ;;  %v1471_v18 = vld [vmem:[#allocation19 + $0xf80] sm:$0xff] }
 0x392   :  { %v3222_v24 = vpack.c.bf16 %v1336_v23, %v1328_v22  ;;  %v1479_v19 = vld [vmem:[#allocation19 + $0xfc0] sm:$0xff]  ;;  %v988_v22 = vld [vmem:[#allocation19 + $0x68] sm:$0xff] }
 0x393   :  { %3221 = vmatpush1.bf16.msra.mxu0 %v3220_v21  ;;  %v3260_v20 = vpack.c.bf16 %v1479_v19, %v1471_v18  ;;  %v980_v21 = vld [vmem:[#allocation19 + $0x28] sm:$0xff] }
 0x394   :  { %3185 = vmatpush1.bf16.msra.mxu1 %v3184_v25  ;;  %v1327_v25 = vld [vmem:[#allocation19 + $0xb00] sm:$0xff]  ;;  %3223 = vmatprep.subr.bf16.mxu0 %v3222_v24  ;;  %v3390_v23 = vpack.c.bf16 %v988_v22, %v980_v21  ;;  %v4747_v24 = vld [vmem:[#allocation15] sm:$0xf] }
 0x395   :  { %3187 = vmatprep.subr.bf16.mxu1 %v3186_v28  ;;  %v3224_v27 = vpack.c.bf16 %v1335_v26, %v1327_v25  ;;  %v1344_v28 = vld [vmem:[#allocation19 + $0xb88] sm:$0xff]  ;;  %v672_v25 = vrot.slane %v4747_v24, %v4732_v36  ;;  %v676_v26 = vrot.slane %v4747_v24, %v4735_v38 }
 0x396   :  { %v3226_v30 = vpack.c.bf16 %v1352_v29, %v1344_v28 }
 0x397   :  { %3225 = vmatpush1.bf16.msra.mxu0 %v3224_v27 }
 0x398   :  { %3189 = vmatpush1.bf16.msra.mxu1 %v3188_v31  ;;  %v1343_v31 = vld [vmem:[#allocation19 + $0xb80] sm:$0xff]  ;;  %3227 = vmatprep.subr.bf16.mxu0 %v3226_v30 }
 0x399   :  { %3191 = vmatprep.subr.bf16.mxu1 %v3190_v44  ;;  %v3228_v33 = vpack.c.bf16 %v1351_v32, %v1343_v31  ;;  %v1368_v44 = vld [vmem:[#allocation19 + $0xc48] sm:$0xff] }
 0x39a   :  { %v3230_v37 = vpack.c.bf16 %v1368_v44, %v1360_v34 }
 0x39b   :  { %3229 = vmatpush1.bf16.msra.mxu0 %v3228_v33 }
 0x39c   :  { %3193 = vmatpush1.bf16.msra.mxu1 %v3192_v41  ;;  %v3232_v41 = vpack.c.bf16 %v1367_v40, %v1359_v39  ;;  %3231 = vmatprep.subr.bf16.mxu0 %v3230_v37 }
 0x39d   :  { %3195 = vmatprep.subr.bf16.mxu1 %v3194_v42  ;;  %v1376_v42 = vld [vmem:[#allocation19 + $0xc88] sm:$0xff] }
 0x39e   :  { %v3234_v45 = vpack.c.bf16 %v1384_v43, %v1376_v42 }
 0x39f   :  { %3233 = vmatpush1.bf16.msra.mxu0 %v3232_v41 }
 0x3a0   :  { %3197 = vmatpush1.bf16.msra.mxu1 %v3196_v48  ;;  %v3236_v48 = vpack.c.bf16 %v1383_v47, %v1375_v46  ;;  %3235 = vmatprep.subr.bf16.mxu0 %v3234_v45 }
 0x3a1   :  { %3263 = vmatprep.subr.bf16.mxu1 %v3262_v55  ;;  %v1408_v55 = vld [vmem:[#allocation19 + $0xd88] sm:$0xff] }
 0x3a2   :  { %v3242_v57 = vpack.c.bf16 %v1416_v56, %v1408_v55 }
 0x3a3   :  { %3237 = vmatpush1.bf16.msra.mxu0 %v3236_v48 }
 0x3a4   :  { %3239 = vmatprep.subr.bf16.mxu0 %v3238_v51 }
 0x3a7   :  { %3241 = vmatpush1.bf16.msra.mxu0 %v3240_v54 }
 0x3a8   :  { %3243 = vmatprep.subr.bf16.mxu0 %v3242_v57 }
 0x3ab   :  { %3245 = vmatpush1.bf16.msra.mxu0 %v3244_v60 }
 0x3ac   :  { %3247 = vmatprep.subr.bf16.mxu0 %v3246_v63 }
 0x3af   :  { %3249 = vmatpush1.bf16.msra.mxu0 %v3248_v2 }
 0x3b0   :  { %3251 = vmatprep.subr.bf16.mxu0 %v3250_v5 }
 0x3b3   :  { %3253 = vmatpush1.bf16.msra.mxu0 %v3252_v8 }
 0x3b4   :  { %3255 = vmatprep.subr.bf16.mxu0 %v3254_v11 }
 0x3b7   :  { %3257 = vmatpush1.bf16.msra.mxu0 %v3256_v14 }
 0x3b8   :  { %3259 = vmatprep.subr.bf16.mxu0 %v3258_v17  ;;  %v950_v17 = vrot.slane %v4755_v7, %v4735_v38 }
 0x3bb   :  { %3261 = vmatpush1.bf16.msra.mxu0 %v3260_v20 }
 0x3bc   :  { %3391 = vmatprep.subr.bf16.mxu0 %v3390_v23  ;;  %v977_v23 = vld [vmem:[#allocation19 + $0x10] sm:$0xff] }
 0x3f6   :  { %v755_v27 = vpop.f32.mrb[2].mxu1 }
 0x3f7   :  { %v756_v28 = vadd.f32 %v755_v27, %v672_v25  ;;  %v757_v29 = vpop.f32.mrb[3].mxu1  ;;  %v985_v25 = vld [vmem:[#allocation19 + $0x50] sm:$0xff]  ;;  %v994_v27 = vld [vmem:[#allocation19 + $0x98] sm:$0xff] }
 0x3f8   :  { %v758_v30 = vadd.f32 %v757_v29, %v676_v26 }
 0x3f9   :  { %v831_v31 = vrot.slane %v756_v28, 4  ;;  %v859_v32 = vmul.f32 %v756_v28, %v756_v28 }
 0x3fa   :  { %v837_v33 = vrot.slane %v758_v30, 4  ;;  %v860_v34 = vmul.f32 %v758_v30, %v758_v30 }
 0x3fb   :  { %v832_v44 = vadd.f32 %v831_v31, %v756_v28  ;;  %v863_v37 = vrot.slane %v859_v32, 4 }
 0x3fc   :  { %v838_v39 = vadd.f32 %v837_v33, %v758_v30  ;;  %v869_v40 = vrot.slane %v860_v34, 4  ;;  %v993_v33 = vld [vmem:[#allocation19 + $0x90] sm:$0xff] }
 0x3fd   :  { %v833_v41 = vrot.slane %v832_v44, 2  ;;  %v864_v42 = vadd.f32 %v863_v37, %v859_v32  ;;  %v1018_v37 = vld [vmem:[#allocation19 + $0x158] sm:$0xff] }
 0x3fe   :  { %v839_v43 = vrot.slane %v838_v39, 2  ;;  %v870_v45 = vadd.f32 %v869_v40, %v860_v34  ;;  %v1001_v34 = vld [vmem:[#allocation19 + $0xd0] sm:$0xff] }
 0x3ff   :  { %v834_v46 = vadd.f32 %v833_v41, %v832_v44  ;;  %v865_v47 = vrot.slane %v864_v42, 2  ;;  %v1010_v44 = vld [vmem:[#allocation19 + $0x118] sm:$0xff]  ;;  %v1009_v41 = vld [vmem:[#allocation19 + $0x110] sm:$0xff] }
 0x400   :  { %v840_v48 = vadd.f32 %v839_v43, %v838_v39  ;;  %v871_v49 = vrot.slane %v870_v45, 2  ;;  %v3268_v39 = vpack.c.bf16 %v1001_v34, %v993_v33  ;;  %v3270_v40 = vpack.c.bf16 %v1018_v37, %v1010_v44  ;;  %v1026_v43 = vld [vmem:[#allocation19 + $0x198] sm:$0xff] }
 0x401   :  { %v835_v50 = vrot.slane %v834_v46, 1  ;;  %v866_v51 = vadd.f32 %v865_v47, %v864_v42  ;;  %v1017_v42 = vld [vmem:[#allocation19 + $0x150] sm:$0xff] }
 0x402   :  { %v841_v52 = vrot.slane %v840_v48, 1  ;;  %v872_v53 = vadd.f32 %v871_v49, %v870_v45  ;;  %v1034_v45 = vld [vmem:[#allocation19 + $0x1d8] sm:$0xff]  ;;  %v1033_v49 = vld [vmem:[#allocation19 + $0x1d0] sm:$0xff] }
 0x403   :  { %v836_v54 = vadd.f32 %v835_v50, %v834_v46  ;;  %v867_v55 = vrot.slane %v866_v51, 1  ;;  %v3272_v46 = vpack.c.bf16 %v1017_v42, %v1009_v41  ;;  %v3274_v47 = vpack.c.bf16 %v1034_v45, %v1026_v43  ;;  %v1042_v50 = vld [vmem:[#allocation19 + $0x218] sm:$0xff]  ;;  %v1113_v41 = vld [vmem:[#allocation19 + $0x450] sm:$0xff] }
 0x404   :  { %v842_v56 = vadd.f32 %v841_v52, %v840_v48  ;;  %v873_v57 = vrot.slane %v872_v53, 1  ;;  %v1025_v48 = vld [vmem:[#allocation19 + $0x190] sm:$0xff]  ;;  %v1122_v45 = vld [vmem:[#allocation19 + $0x498] sm:$0xff] }
 0x405   :  { %v855_v58 = vmul.f32 0.125, %v836_v54  ;;  %v868_v59 = vadd.f32 %v867_v55, %v866_v51  ;;  %v1050_v51 = vld [vmem:[#allocation19 + $0x258] sm:$0xff]  ;;  %v3276_v52 = vpack.c.bf16 %v1033_v49, %v1025_v48  ;;  %v1041_v54 = vld [vmem:[#allocation19 + $0x210] sm:$0xff] }
 0x406   :  { %v856_v60 = vmul.f32 0.125, %v842_v56  ;;  %v874_v61 = vadd.f32 %v873_v57, %v872_v53  ;;  %v3278_v53 = vpack.c.bf16 %v1050_v51, %v1042_v50  ;;  %v1049_v55 = vld [vmem:[#allocation19 + $0x250] sm:$0xff]  ;;  %v4773_v56 = vsub.s32 2, %v4729_v35  ;;  %v1058_v57 = vld [vmem:[#allocation19 + $0x298] sm:$0xff] }
 0x407   :  { %v887_v62 = vmul.f32 0.125, %v868_v59  ;;  %v891_v63 = vmul.f32 %v855_v58, %v855_v58  ;;  %v899_v8 = vsub.f32 %v756_v28, %v855_v58  ;;  %v1002_v28 = vld [vmem:[#allocation19 + $0xd8] sm:$0xff]  ;;  %v4776_v59 = vsub.s32 3, %v4729_v35 }
 0x408   :  { %v888_v0 = vmul.f32 0.125, %v874_v61  ;;  %v892_v1 = vmul.f32 %v856_v60, %v856_v60  ;;  %v900_v11 = vsub.f32 %v758_v30, %v856_v60  ;;  %v3264_v30 = vpack.c.bf16 %v985_v25, %v977_v23  ;;  %v1066_v58 = vld [vmem:[#allocation19 + $0x2d8] sm:$0xff] }
 0x409   :  { %v895_v2 = vsub.f32 %v887_v62, %v891_v63  ;;  %v3266_v32 = vpack.c.bf16 %v1002_v28, %v994_v27  ;;  %v3280_v60 = vpack.c.bf16 %v1049_v55, %v1041_v54  ;;  %v3282_v61 = vpack.c.bf16 %v1066_v58, %v1058_v57  ;;  %v1057_v62 = vld [vmem:[#allocation19 + $0x290] sm:$0xff]  ;;  %v1114_v27 = vld [vmem:[#allocation19 + $0x458] sm:$0xff] }
 0x40a   :  { %v896_v3 = vsub.f32 %v888_v0, %v892_v1  ;;  %v1065_v63 = vld [vmem:[#allocation19 + $0x2d0] sm:$0xff]  ;;  %v680_v0 = vrot.slane %v4747_v24, %v4773_v56  ;;  %v1074_v1 = vld [vmem:[#allocation19 + $0x318] sm:$0xff] }
 0x40b   :  { %v903_v4 = vadd.f32 0.8, %v895_v2  ;;  %v1082_v2 = vld [vmem:[#allocation19 + $0x358] sm:$0xff]  ;;  %v1121_v55 = vld [vmem:[#allocation19 + $0x490] sm:$0xff] }
 0x40c   :  { %v904_v5 = vadd.f32 0.8, %v896_v3  ;;  %v684_v3 = vrot.slane %v4747_v24, %v4776_v59  ;;  %v1129_v57 = vld [vmem:[#allocation19 + $0x4d0] sm:$0xff] }
 0x40d   :  { %3958 = vrsqrt.f32 %v903_v4  ;;  %v3284_v4 = vpack.c.bf16 %v1065_v63, %v1057_v62  ;;  %v1146_v62 = vld [vmem:[#allocation19 + $0x558] sm:$0xff] }
 0x40e   :  { %3960 = vrsqrt.f32 %v904_v5 }
 0x417   :  { %v3959_v10 = vpop.eup %3958 }
 0x418   :  { %v3961_v13 = vpop.eup %3960  ;;  %v911_v14 = vmul.f32 %v3959_v10, %v899_v8  ;;  %v3286_v8 = vpack.c.bf16 %v1082_v2, %v1074_v1  ;;  %v1081_v10 = vld [vmem:[#allocation19 + $0x350] sm:$0xff] }
 0x419   :  { %v912_v16 = vmul.f32 %v3961_v13, %v900_v11  ;;  %v1090_v13 = vld [vmem:[#allocation19 + $0x398] sm:$0xff] }
 0x41a   :  { %v937_v18 = vmul.f32 %v920_v9, %v911_v14  ;;  %v1073_v9 = vld [vmem:[#allocation19 + $0x310] sm:$0xff]  ;;  %v1098_v14 = vld [vmem:[#allocation19 + $0x3d8] sm:$0xff] }
 0x41b   :  { %v938_v19 = vmul.f32 %v924_v12, %v912_v16  ;;  %v3288_v24 = vpack.c.bf16 %v1081_v10, %v1073_v9  ;;  %v1137_v9 = vld [vmem:[#allocation19 + $0x510] sm:$0xff] }
 0x41c   :  { %v963_v20 = vadd.f32 %v946_v15, %v937_v18  ;;  %v1145_v10 = vld [vmem:[#allocation19 + $0x550] sm:$0xff] }
 0x41d   :  { %v964_v21 = vadd.f32 %v950_v17, %v938_v19 }
 0x41e   :  { %v967_v22 = vmul.f32 0.2, %v963_v20 }
 0x41f   :  { %v968_v26 = vmul.f32 0.2, %v964_v21 }
 0x420   :  { %v4767_v31 = vmax.f32 %v963_v20, %v967_v22  ;;  %v3290_v20 = vpack.c.bf16 %v1098_v14, %v1090_v13  ;;  %v1097_v22 = vld [vmem:[#allocation19 + $0x3d0] sm:$0xff]  ;;  %v1154_v14 = vld [vmem:[#allocation19 + $0x598] sm:$0xff] }
 0x421   :  { %v4765_v29 = vmax.f32 %v964_v21, %v968_v26  ;;  %v1089_v21 = vld [vmem:[#allocation19 + $0x390] sm:$0xff]  ;;  %v1106_v26 = vld [vmem:[#allocation19 + $0x418] sm:$0xff] }
 0x422   :  { %v3292_v34 = vpack.c.bf16 %v1097_v22, %v1089_v21  ;;  %v1153_v22 = vld [vmem:[#allocation19 + $0x590] sm:$0xff] }
 0x423   :  { %1593 = vmatprep.mubr.f32.mxu1 %v4765_v29 }
 0x424   :  { %1594 = vmatmul.mubr.f32.vlgmr.msra.gmra.mrb[6].mxu1 %v4767_v31 }
 0x425   :  { %3265 = vmatpush1.bf16.msra.mxu1 %v3264_v30  ;;  %1735 = vmatprep.mubr.f32.mxu1 %v4765_v29 }
 0x426   :  { %3267 = vmatprep.subr.bf16.mxu1 %v3266_v32 }
 0x429   :  { %3269 = vmatpush1.bf16.msra.mxu1 %v3268_v39  ;;  %v3294_v39 = vpack.c.bf16 %v1114_v27, %v1106_v26  ;;  %v1170_v26 = vld [vmem:[#allocation19 + $0x618] sm:$0xff] }
 0x42a   :  { %3271 = vmatprep.subr.bf16.mxu1 %v3270_v40  ;;  %v1105_v40 = vld [vmem:[#allocation19 + $0x410] sm:$0xff]  ;;  %v1178_v27 = vld [vmem:[#allocation19 + $0x658] sm:$0xff] }
 0x42b   :  { %v3296_v51 = vpack.c.bf16 %v1113_v41, %v1105_v40  ;;  %v1185_v41 = vld [vmem:[#allocation19 + $0x690] sm:$0xff] }
 0x42d   :  { %3273 = vmatpush1.bf16.msra.mxu1 %v3272_v46  ;;  %v1130_v46 = vld [vmem:[#allocation19 + $0x4d8] sm:$0xff] }
 0x42e   :  { %3275 = vmatprep.subr.bf16.mxu1 %v3274_v47  ;;  %v3298_v54 = vpack.c.bf16 %v1130_v46, %v1122_v45  ;;  %v1210_v45 = vld [vmem:[#allocation19 + $0x758] sm:$0xff] }
 0x431   :  { %3277 = vmatpush1.bf16.msra.mxu1 %v3276_v52 }
 0x432   :  { %3279 = vmatprep.subr.bf16.mxu1 %v3278_v53 }
 0x435   :  { %3281 = vmatpush1.bf16.msra.mxu1 %v3280_v60 }
 0x436   :  { %v826_v5 = vpop.f32.mrb[4].mxu1  ;;  %3283 = vmatprep.subr.bf16.mxu1 %v3282_v61  ;;  %v1138_v61 = vld [vmem:[#allocation19 + $0x518] sm:$0xff] }
 0x437   :  { %v4782_v11 = vadd.f32 %v826_v5, %v680_v0  ;;  %v828_v12 = vpop.f32.mrb[5].mxu1 }
 0x438   :  { %v4784_v15 = vadd.f32 %v828_v12, %v684_v3  ;;  %v3300_v3 = vpack.c.bf16 %v1129_v57, %v1121_v55  ;;  %v1226_v55 = vld [vmem:[#allocation19 + $0x7d8] sm:$0xff]  ;;  %v932_v57 = vrot.slane %v4753_v6, %v4776_v59 }
 0x439   :  { %v843_v16 = vrot.slane %v4782_v11, 4  ;;  %v861_v17 = vmul.f32 %v4782_v11, %v4782_v11  ;;  %3285 = vmatpush1.bf16.msra.mxu1 %v3284_v4 }
 0x43a   :  { %v849_v18 = vrot.slane %v4784_v15, 4  ;;  %v862_v19 = vmul.f32 %v4784_v15, %v4784_v15  ;;  %3287 = vmatprep.subr.bf16.mxu1 %v3286_v8  ;;  %v3302_v8 = vpack.c.bf16 %v1146_v62, %v1138_v61 }
 0x43b   :  { %v844_v23 = vadd.f32 %v843_v16, %v4782_v11  ;;  %v875_v25 = vrot.slane %v861_v17, 4  ;;  %v1162_v16 = vld [vmem:[#allocation19 + $0x5d8] sm:$0xff] }
 0x43c   :  { %v850_v28 = vadd.f32 %v849_v18, %v4784_v15  ;;  %v881_v30 = vrot.slane %v862_v19, 4  ;;  %v3306_v21 = vpack.c.bf16 %v1162_v16, %v1154_v14  ;;  %v987_v14 = vld [vmem:[#allocation19 + $0x60] sm:$0xff]  ;;  %v1233_v16 = vld [vmem:[#allocation19 + $0x810] sm:$0xff] }
 0x43d   :  { %v845_v32 = vrot.slane %v844_v23, 2  ;;  %v876_v33 = vadd.f32 %v875_v25, %v861_v17  ;;  %3289 = vmatpush1.bf16.msra.mxu1 %v3288_v24 }
 0x43e   :  { %v851_v44 = vrot.slane %v850_v28, 2  ;;  %v882_v37 = vadd.f32 %v881_v30, %v862_v19  ;;  %3291 = vmatprep.subr.bf16.mxu1 %v3290_v20  ;;  %v3304_v19 = vpack.c.bf16 %v1145_v10, %v1137_v9  ;;  %v979_v10 = vld [vmem:[#allocation19 + $0x20] sm:$0xff] }
 0x43f   :  { %v846_v42 = vadd.f32 %v845_v32, %v844_v23  ;;  %v877_v43 = vrot.slane %v876_v33, 2  ;;  %v1161_v23 = vld [vmem:[#allocation19 + $0x5d0] sm:$0xff]  ;;  %v3310_v32 = vpack.c.bf16 %v1178_v27, %v1170_v26  ;;  %v1003_v26 = vld [vmem:[#allocation19 + $0xe0] sm:$0xff] }
 0x440   :  { %v852_v47 = vadd.f32 %v851_v44, %v850_v28  ;;  %v883_v48 = vrot.slane %v882_v37, 2  ;;  %v3308_v30 = vpack.c.bf16 %v1161_v23, %v1153_v22  ;;  %v1186_v44 = vld [vmem:[#allocation19 + $0x698] sm:$0xff]  ;;  %v3392_v22 = vpack.c.bf16 %v987_v14, %v979_v10  ;;  %v1060_v10 = vld [vmem:[#allocation19 + $0x2a8] sm:$0xff] }
 0x441   :  { %v847_v49 = vrot.slane %v846_v42, 1  ;;  %v878_v50 = vadd.f32 %v877_v43, %v876_v33  ;;  %3293 = vmatpush1.bf16.msra.mxu1 %v3292_v34  ;;  %v1169_v33 = vld [vmem:[#allocation19 + $0x610] sm:$0xff]  ;;  %v1202_v43 = vld [vmem:[#allocation19 + $0x718] sm:$0xff] }
 0x442   :  { %v853_v52 = vrot.slane %v852_v47, 1  ;;  %v884_v53 = vadd.f32 %v883_v48, %v882_v37  ;;  %3295 = vmatprep.subr.bf16.mxu1 %v3294_v39  ;;  %v1177_v34 = vld [vmem:[#allocation19 + $0x650] sm:$0xff]  ;;  %v1194_v37 = vld [vmem:[#allocation19 + $0x6d8] sm:$0xff]  ;;  %v3318_v48 = vpack.c.bf16 %v1210_v45, %v1202_v43  ;;  %v1019_v43 = vld [vmem:[#allocation19 + $0x160] sm:$0xff] }
 0x443   :  { %v848_v58 = vadd.f32 %v847_v49, %v846_v42  ;;  %v879_v60 = vrot.slane %v878_v50, 1  ;;  %v3312_v39 = vpack.c.bf16 %v1177_v34, %v1169_v33  ;;  %v3314_v40 = vpack.c.bf16 %v1194_v37, %v1186_v44  ;;  %v1193_v42 = vld [vmem:[#allocation19 + $0x6d0] sm:$0xff]  ;;  %v1020_v44 = vld [vmem:[#allocation19 + $0x168] sm:$0xff]  ;;  %v1266_v37 = vld [vmem:[#allocation19 + $0x918] sm:$0xff] }
 0x444   :  { %v854_v63 = vadd.f32 %v853_v52, %v852_v47  ;;  %v885_v0 = vrot.slane %v884_v53, 1  ;;  %v3316_v46 = vpack.c.bf16 %v1193_v42, %v1185_v41  ;;  %v1201_v49 = vld [vmem:[#allocation19 + $0x710] sm:$0xff]  ;;  %v1011_v42 = vld [vmem:[#allocation19 + $0x120] sm:$0xff]  ;;  %v1322_v14 = vld [vmem:[#allocation19 + $0xad8] sm:$0xff] }
 0x445   :  { %v857_v1 = vmul.f32 0.125, %v848_v58  ;;  %v880_v2 = vadd.f32 %v879_v60, %v878_v50  ;;  %3297 = vmatpush1.bf16.msra.mxu1 %v3296_v51  ;;  %v1209_v50 = vld [vmem:[#allocation19 + $0x750] sm:$0xff]  ;;  %v928_v51 = vrot.slane %v4753_v6, %v4773_v56 }
 0x446   :  { %v858_v4 = vmul.f32 0.125, %v854_v63  ;;  %v886_v5 = vadd.f32 %v885_v0, %v884_v53  ;;  %3299 = vmatprep.subr.bf16.mxu1 %v3298_v54  ;;  %v1218_v54 = vld [vmem:[#allocation19 + $0x798] sm:$0xff]  ;;  %v3320_v62 = vpack.c.bf16 %v1209_v50, %v1201_v49  ;;  %v958_v63 = vrot.slane %v4755_v7, %v4776_v59  ;;  %v1028_v49 = vld [vmem:[#allocation19 + $0x1a8] sm:$0xff] }
 0x447   :  { %v889_v12 = vmul.f32 0.125, %v880_v2  ;;  %v893_v13 = vmul.f32 %v857_v1, %v857_v1  ;;  %v901_v47 = vsub.f32 %v4782_v11, %v857_v1  ;;  %v954_v11 = vrot.slane %v4755_v7, %v4773_v56  ;;  %v1217_v1 = vld [vmem:[#allocation19 + $0x790] sm:$0xff]  ;;  %v1036_v50 = vld [vmem:[#allocation19 + $0x1e8] sm:$0xff] }
 0x448   :  { %v890_v17 = vmul.f32 0.125, %v886_v5  ;;  %v894_v24 = vmul.f32 %v858_v4, %v858_v4  ;;  %v902_v53 = vsub.f32 %v4784_v15, %v858_v4  ;;  %v3322_v0 = vpack.c.bf16 %v1226_v55, %v1218_v54  ;;  %v1225_v15 = vld [vmem:[#allocation19 + $0x7d0] sm:$0xff]  ;;  %v1234_v4 = vld [vmem:[#allocation19 + $0x818] sm:$0xff]  ;;  %v1027_v55 = vld [vmem:[#allocation19 + $0x1a0] sm:$0xff] }
 0x449   :  { %v897_v18 = vsub.f32 %v889_v12, %v893_v13  ;;  %3301 = vmatpush1.bf16.msra.mxu1 %v3300_v3  ;;  %v1242_v5 = vld [vmem:[#allocation19 + $0x858] sm:$0xff] }
 0x44a   :  { %v898_v20 = vsub.f32 %v890_v17, %v894_v24  ;;  %3303 = vmatprep.subr.bf16.mxu1 %v3302_v8  ;;  %v3324_v8 = vpack.c.bf16 %v1225_v15, %v1217_v1  ;;  %v3326_v13 = vpack.c.bf16 %v1242_v5, %v1234_v4  ;;  %v1241_v17 = vld [vmem:[#allocation19 + $0x850] sm:$0xff]  ;;  %v996_v24 = vld [vmem:[#allocation19 + $0xa8] sm:$0xff]  ;;  %v1306_v1 = vld [vmem:[#allocation19 + $0xa58] sm:$0xff] }
 0x44b   :  { %v905_v25 = vadd.f32 0.8, %v897_v18  ;;  %v1004_v18 = vld [vmem:[#allocation19 + $0xe8] sm:$0xff]  ;;  %v3328_v23 = vpack.c.bf16 %v1241_v17, %v1233_v16  ;;  %v1051_v4 = vld [vmem:[#allocation19 + $0x260] sm:$0xff] }
 0x44c   :  { %v906_v28 = vadd.f32 0.8, %v898_v20  ;;  %v1258_v20 = vld [vmem:[#allocation19 + $0x8d8] sm:$0xff]  ;;  %v3394_v33 = vpack.c.bf16 %v1004_v18, %v996_v24  ;;  %v1067_v24 = vld [vmem:[#allocation19 + $0x2e0] sm:$0xff] }
 0x44d   :  { %3962 = vrsqrt.f32 %v905_v25  ;;  %3305 = vmatpush1.bf16.msra.mxu1 %v3304_v19  ;;  %v1250_v19 = vld [vmem:[#allocation19 + $0x898] sm:$0xff]  ;;  %v995_v25 = vld [vmem:[#allocation19 + $0xa0] sm:$0xff] }
 0x44e   :  { %3964 = vrsqrt.f32 %v906_v28  ;;  %3307 = vmatprep.subr.bf16.mxu1 %v3306_v21  ;;  %v1249_v28 = vld [vmem:[#allocation19 + $0x890] sm:$0xff]  ;;  %v3330_v34 = vpack.c.bf16 %v1258_v20, %v1250_v19 }
 0x44f   :  { %v1313_v20 = vld [vmem:[#allocation19 + $0xa90] sm:$0xff] }
 0x451   :  { %3309 = vmatpush1.bf16.msra.mxu1 %v3308_v30  ;;  %v1257_v30 = vld [vmem:[#allocation19 + $0x8d0] sm:$0xff] }
 0x452   :  { %3311 = vmatprep.subr.bf16.mxu1 %v3310_v32  ;;  %v1012_v32 = vld [vmem:[#allocation19 + $0x128] sm:$0xff]  ;;  %v3332_v41 = vpack.c.bf16 %v1257_v30, %v1249_v28  ;;  %v1338_v28 = vld [vmem:[#allocation19 + $0xb58] sm:$0xff] }
 0x453   :  { %v3398_v45 = vpack.c.bf16 %v1020_v44, %v1012_v32 }
 0x455   :  { %3313 = vmatpush1.bf16.msra.mxu1 %v3312_v39  ;;  %v1274_v39 = vld [vmem:[#allocation19 + $0x958] sm:$0xff] }
 0x456   :  { %3315 = vmatprep.subr.bf16.mxu1 %v3314_v40  ;;  %v3396_v40 = vpack.c.bf16 %v1003_v26, %v995_v25  ;;  %v1084_v25 = vld [vmem:[#allocation19 + $0x368] sm:$0xff]  ;;  %v1330_v26 = vld [vmem:[#allocation19 + $0xb18] sm:$0xff] }
 0x457   :  { %v3963_v52 = vpop.eup %3962 }
 0x458   :  { %v3965_v58 = vpop.eup %3964  ;;  %v913_v60 = vmul.f32 %v3963_v52, %v901_v47  ;;  %v1265_v47 = vld [vmem:[#allocation19 + $0x910] sm:$0xff]  ;;  %v1290_v52 = vld [vmem:[#allocation19 + $0x9d8] sm:$0xff] }
 0x459   :  { %v914_v61 = vmul.f32 %v3965_v58, %v902_v53  ;;  %3317 = vmatpush1.bf16.msra.mxu1 %v3316_v46  ;;  %v3334_v46 = vpack.c.bf16 %v1274_v39, %v1266_v37  ;;  %v3400_v53 = vpack.c.bf16 %v1019_v43, %v1011_v42  ;;  %v3402_v58 = vpack.c.bf16 %v1036_v50, %v1028_v49  ;;  %v1329_v39 = vld [vmem:[#allocation19 + $0xb10] sm:$0xff]  ;;  %v1100_v42 = vld [vmem:[#allocation19 + $0x3e8] sm:$0xff]  ;;  %v1346_v43 = vld [vmem:[#allocation19 + $0xb98] sm:$0xff] }
 0x45a   :  { %3319 = vmatprep.subr.bf16.mxu1 %v3318_v48  ;;  %v939_v2 = vmul.f32 %v928_v51, %v913_v60  ;;  %v1273_v48 = vld [vmem:[#allocation19 + $0x950] sm:$0xff]  ;;  %v1282_v51 = vld [vmem:[#allocation19 + $0x998] sm:$0xff]  ;;  %v3350_v37 = vpack.c.bf16 %v1338_v28, %v1330_v26  ;;  %v1099_v49 = vld [vmem:[#allocation19 + $0x3e0] sm:$0xff] }
 0x45b   :  { %v940_v3 = vmul.f32 %v932_v57, %v914_v61  ;;  %v3336_v54 = vpack.c.bf16 %v1273_v48, %v1265_v47  ;;  %v1035_v57 = vld [vmem:[#allocation19 + $0x1e0] sm:$0xff]  ;;  %v3338_v60 = vpack.c.bf16 %v1290_v52, %v1282_v51  ;;  %v1289_v61 = vld [vmem:[#allocation19 + $0x9d0] sm:$0xff] }
 0x45c   :  { %v965_v6 = vadd.f32 %v954_v11, %v939_v2  ;;  %v1281_v11 = vld [vmem:[#allocation19 + $0x990] sm:$0xff]  ;;  %v3404_v15 = vpack.c.bf16 %v1035_v57, %v1027_v55  ;;  %v1091_v48 = vld [vmem:[#allocation19 + $0x3a0] sm:$0xff]  ;;  %v1116_v55 = vld [vmem:[#allocation19 + $0x468] sm:$0xff] }
 0x45d   :  { %3321 = vmatpush1.bf16.msra.mxu1 %v3320_v62  ;;  %v966_v9 = vadd.f32 %v958_v63, %v940_v3  ;;  %v1044_v62 = vld [vmem:[#allocation19 + $0x228] sm:$0xff]  ;;  %v3340_v2 = vpack.c.bf16 %v1289_v61, %v1281_v11  ;;  %v1043_v3 = vld [vmem:[#allocation19 + $0x220] sm:$0xff]  ;;  %v1345_v52 = vld [vmem:[#allocation19 + $0xb90] sm:$0xff] }
 0x45e   :  { %3323 = vmatprep.subr.bf16.mxu1 %v3322_v0  ;;  %v969_v12 = vmul.f32 0.2, %v965_v6  ;;  %v1052_v63 = vld [vmem:[#allocation19 + $0x268] sm:$0xff]  ;;  %v1298_v0 = vld [vmem:[#allocation19 + $0xa18] sm:$0xff]  ;;  %v3408_v16 = vpack.c.bf16 %v1051_v4, %v1043_v3  ;;  %v1107_v61 = vld [vmem:[#allocation19 + $0x420] sm:$0xff] }
 0x45f   :  { %v970_v7 = vmul.f32 0.2, %v966_v9  ;;  %v3406_v5 = vpack.c.bf16 %v1052_v63, %v1044_v62  ;;  %v1362_v57 = vld [vmem:[#allocation19 + $0xc18] sm:$0xff]  ;;  %v1115_v62 = vld [vmem:[#allocation19 + $0x460] sm:$0xff]  ;;  %v1132_v3 = vld [vmem:[#allocation19 + $0x4e8] sm:$0xff] }
 0x460   :  { %v4806_v27 = vmax.f32 %v965_v6, %v969_v12  ;;  %v3342_v6 = vpack.c.bf16 %v1306_v1, %v1298_v0  ;;  %v1068_v12 = vld [vmem:[#allocation19 + $0x2e8] sm:$0xff]  ;;  %v1361_v1 = vld [vmem:[#allocation19 + $0xc10] sm:$0xff]  ;;  %v1378_v4 = vld [vmem:[#allocation19 + $0xc98] sm:$0xff] }
 0x461   :  { %3325 = vmatpush1.bf16.msra.mxu1 %v3324_v8  ;;  %v4804_v21 = vmax.f32 %v966_v9, %v970_v7  ;;  %v1297_v8 = vld [vmem:[#allocation19 + $0xa10] sm:$0xff]  ;;  %v1059_v7 = vld [vmem:[#allocation19 + $0x2a0] sm:$0xff]  ;;  %v3410_v18 = vpack.c.bf16 %v1068_v12, %v1060_v10 }
 0x462   :  { %3327 = vmatprep.subr.bf16.mxu1 %v3326_v13  ;;  %v1305_v9 = vld [vmem:[#allocation19 + $0xa50] sm:$0xff]  ;;  %v1314_v13 = vld [vmem:[#allocation19 + $0xa98] sm:$0xff]  ;;  %v3412_v30 = vpack.c.bf16 %v1067_v24, %v1059_v7  ;;  %v1131_v10 = vld [vmem:[#allocation19 + $0x4e0] sm:$0xff] }
 0x463   :  { %1664 = vmatprep.mubr.f32.mxu0 %v4804_v21  ;;  %v3344_v17 = vpack.c.bf16 %v1305_v9, %v1297_v8  ;;  %v3346_v19 = vpack.c.bf16 %v1322_v14, %v1314_v13  ;;  %v1123_v9 = vld [vmem:[#allocation19 + $0x4a0] sm:$0xff]  ;;  %v1377_v14 = vld [vmem:[#allocation19 + $0xc90] sm:$0xff]  ;;  %v1148_v7 = vld [vmem:[#allocation19 + $0x568] sm:$0xff] }
 0x464   :  { %1665 = vmatmul.mubr.f32.vlgmr.msra.gmra.mrb[2].mxu0 %v4806_v27  ;;  %1736 = vmatmul.mubr.f32.vlgmr.msra.gmra.mrb[8].mxu1 %v4767_v31  ;;  %v1394_v24 = vld [vmem:[#allocation19 + $0xd18] sm:$0xff]  ;;  %v1393_v28 = vld [vmem:[#allocation19 + $0xd10] sm:$0xff] }
 0x465   :  { %3393 = vmatpush1.bf16.msra.mxu0 %v3392_v22  ;;  %3329 = vmatpush1.bf16.msra.mxu1 %v3328_v23  ;;  %v1321_v22 = vld [vmem:[#allocation19 + $0xad0] sm:$0xff]  ;;  %v1076_v23 = vld [vmem:[#allocation19 + $0x328] sm:$0xff] }
 0x466   :  { %1806 = vmatprep.mubr.f32.mxu1 %v4804_v21  ;;  %1877 = vmatprep.mubr.f32.mxu0 %v4765_v29  ;;  %v3348_v32 = vpack.c.bf16 %v1321_v22, %v1313_v20  ;;  %v3414_v44 = vpack.c.bf16 %v1084_v25, %v1076_v23  ;;  %v1139_v22 = vld [vmem:[#allocation19 + $0x520] sm:$0xff] }
 0x467   :  { %3395 = vmatprep.subr.bf16.mxu0 %v3394_v33  ;;  %3331 = vmatprep.subr.bf16.mxu1 %v3330_v34  ;;  %v1075_v33 = vld [vmem:[#allocation19 + $0x320] sm:$0xff] }
 0x468   :  { %v1083_v34 = vld [vmem:[#allocation19 + $0x360] sm:$0xff] }
 0x469   :  { %3397 = vmatpush1.bf16.msra.mxu0 %v3396_v40  ;;  %3333 = vmatpush1.bf16.msra.mxu1 %v3332_v41  ;;  %v1337_v40 = vld [vmem:[#allocation19 + $0xb50] sm:$0xff]  ;;  %v1092_v41 = vld [vmem:[#allocation19 + $0x3a8] sm:$0xff]  ;;  %v1147_v23 = vld [vmem:[#allocation19 + $0x560] sm:$0xff] }
 0x46a   :  { %3399 = vmatprep.subr.bf16.mxu0 %v3398_v45  ;;  %3335 = vmatprep.subr.bf16.mxu1 %v3334_v46  ;;  %v1354_v45 = vld [vmem:[#allocation19 + $0xbd8] sm:$0xff]  ;;  %v3416_v46 = vpack.c.bf16 %v1083_v34, %v1075_v33  ;;  %v3352_v47 = vpack.c.bf16 %v1337_v40, %v1329_v39  ;;  %v3418_v50 = vpack.c.bf16 %v1100_v42, %v1092_v41  ;;  %v1164_v33 = vld [vmem:[#allocation19 + $0x5e8] sm:$0xff]  ;;  %v1155_v40 = vld [vmem:[#allocation19 + $0x5a0] sm:$0xff] }
 0x46b   :  { %v3354_v51 = vpack.c.bf16 %v1354_v45, %v1346_v43  ;;  %v1410_v34 = vld [vmem:[#allocation19 + $0xd98] sm:$0xff]  ;;  %v1163_v41 = vld [vmem:[#allocation19 + $0x5e0] sm:$0xff]  ;;  %v1409_v45 = vld [vmem:[#allocation19 + $0xd90] sm:$0xff] }
 0x46d   :  { %3401 = vmatpush1.bf16.msra.mxu0 %v3400_v53  ;;  %3337 = vmatpush1.bf16.msra.mxu1 %v3336_v54  ;;  %v1353_v53 = vld [vmem:[#allocation19 + $0xbd0] sm:$0xff]  ;;  %v1108_v54 = vld [vmem:[#allocation19 + $0x428] sm:$0xff] }
 0x46e   :  { %3403 = vmatprep.subr.bf16.mxu0 %v3402_v58  ;;  %3339 = vmatprep.subr.bf16.mxu1 %v3338_v60  ;;  %v1370_v58 = vld [vmem:[#allocation19 + $0xc58] sm:$0xff]  ;;  %v3420_v60 = vpack.c.bf16 %v1099_v49, %v1091_v48  ;;  %v3356_v11 = vpack.c.bf16 %v1353_v53, %v1345_v52  ;;  %v3422_v63 = vpack.c.bf16 %v1116_v55, %v1108_v54  ;;  %v1180_v48 = vld [vmem:[#allocation19 + $0x668] sm:$0xff]  ;;  %v1171_v53 = vld [vmem:[#allocation19 + $0x620] sm:$0xff] }
 0x46f   :  { %v3358_v0 = vpack.c.bf16 %v1370_v58, %v1362_v57  ;;  %v1426_v49 = vld [vmem:[#allocation19 + $0xe18] sm:$0xff]  ;;  %v1179_v54 = vld [vmem:[#allocation19 + $0x660] sm:$0xff]  ;;  %v1425_v58 = vld [vmem:[#allocation19 + $0xe10] sm:$0xff] }
 0x471   :  { %3405 = vmatpush1.bf16.msra.mxu0 %v3404_v15  ;;  %3341 = vmatpush1.bf16.msra.mxu1 %v3340_v2  ;;  %v1369_v15 = vld [vmem:[#allocation19 + $0xc50] sm:$0xff]  ;;  %v1124_v2 = vld [vmem:[#allocation19 + $0x4a8] sm:$0xff] }
 0x472   :  { %3407 = vmatprep.subr.bf16.mxu0 %v3406_v5  ;;  %3343 = vmatprep.subr.bf16.mxu1 %v3342_v6  ;;  %v1386_v5 = vld [vmem:[#allocation19 + $0xcd8] sm:$0xff]  ;;  %v3424_v6 = vpack.c.bf16 %v1115_v62, %v1107_v61  ;;  %v3360_v8 = vpack.c.bf16 %v1369_v15, %v1361_v1  ;;  %v3426_v12 = vpack.c.bf16 %v1132_v3, %v1124_v2  ;;  %v1196_v61 = vld [vmem:[#allocation19 + $0x6e8] sm:$0xff]  ;;  %v1187_v15 = vld [vmem:[#allocation19 + $0x6a0] sm:$0xff] }
 0x473   :  { %v3362_v13 = vpack.c.bf16 %v1386_v5, %v1378_v4  ;;  %v1442_v62 = vld [vmem:[#allocation19 + $0xe98] sm:$0xff]  ;;  %v1195_v2 = vld [vmem:[#allocation19 + $0x6e0] sm:$0xff]  ;;  %v1441_v5 = vld [vmem:[#allocation19 + $0xe90] sm:$0xff] }
 0x475   :  { %3409 = vmatpush1.bf16.msra.mxu0 %v3408_v16  ;;  %3345 = vmatpush1.bf16.msra.mxu1 %v3344_v17  ;;  %v1385_v16 = vld [vmem:[#allocation19 + $0xcd0] sm:$0xff]  ;;  %v1140_v17 = vld [vmem:[#allocation19 + $0x528] sm:$0xff] }
 0x476   :  { %3411 = vmatprep.subr.bf16.mxu0 %v3410_v18  ;;  %3347 = vmatprep.subr.bf16.mxu1 %v3346_v19  ;;  %v1402_v18 = vld [vmem:[#allocation19 + $0xd58] sm:$0xff]  ;;  %v3428_v19 = vpack.c.bf16 %v1131_v10, %v1123_v9  ;;  %v3364_v20 = vpack.c.bf16 %v1385_v16, %v1377_v14  ;;  %v3430_v25 = vpack.c.bf16 %v1148_v7, %v1140_v17  ;;  %v1212_v9 = vld [vmem:[#allocation19 + $0x768] sm:$0xff]  ;;  %v1203_v16 = vld [vmem:[#allocation19 + $0x720] sm:$0xff] }
 0x477   :  { %v3366_v26 = vpack.c.bf16 %v1402_v18, %v1394_v24  ;;  %v1458_v10 = vld [vmem:[#allocation19 + $0xf18] sm:$0xff]  ;;  %v1211_v17 = vld [vmem:[#allocation19 + $0x760] sm:$0xff]  ;;  %v1457_v18 = vld [vmem:[#allocation19 + $0xf10] sm:$0xff] }
 0x479   :  { %3413 = vmatpush1.bf16.msra.mxu0 %v3412_v30  ;;  %3349 = vmatpush1.bf16.msra.mxu1 %v3348_v32  ;;  %v1401_v30 = vld [vmem:[#allocation19 + $0xd50] sm:$0xff]  ;;  %v1156_v32 = vld [vmem:[#allocation19 + $0x5a8] sm:$0xff] }
 0x47a   :  { %3415 = vmatprep.subr.bf16.mxu0 %v3414_v44  ;;  %3351 = vmatprep.subr.bf16.mxu1 %v3350_v37  ;;  %v1418_v44 = vld [vmem:[#allocation19 + $0xdd8] sm:$0xff]  ;;  %v3432_v37 = vpack.c.bf16 %v1147_v23, %v1139_v22  ;;  %v3368_v39 = vpack.c.bf16 %v1401_v30, %v1393_v28  ;;  %v3434_v42 = vpack.c.bf16 %v1164_v33, %v1156_v32  ;;  %v1228_v22 = vld [vmem:[#allocation19 + $0x7e8] sm:$0xff]  ;;  %v1219_v30 = vld [vmem:[#allocation19 + $0x7a0] sm:$0xff] }
 0x47b   :  { %v3370_v43 = vpack.c.bf16 %v1418_v44, %v1410_v34  ;;  %v1474_v23 = vld [vmem:[#allocation19 + $0xf98] sm:$0xff]  ;;  %v1227_v32 = vld [vmem:[#allocation19 + $0x7e0] sm:$0xff]  ;;  %v1473_v44 = vld [vmem:[#allocation19 + $0xf90] sm:$0xff] }
 0x47d   :  { %3417 = vmatpush1.bf16.msra.mxu0 %v3416_v46  ;;  %3353 = vmatpush1.bf16.msra.mxu1 %v3352_v47  ;;  %v1417_v46 = vld [vmem:[#allocation19 + $0xdd0] sm:$0xff]  ;;  %v1172_v47 = vld [vmem:[#allocation19 + $0x628] sm:$0xff] }
 0x47e   :  { %3419 = vmatprep.subr.bf16.mxu0 %v3418_v50  ;;  %3355 = vmatprep.subr.bf16.mxu1 %v3354_v51  ;;  %v1434_v50 = vld [vmem:[#allocation19 + $0xe58] sm:$0xff]  ;;  %v3436_v51 = vpack.c.bf16 %v1163_v41, %v1155_v40  ;;  %v3372_v52 = vpack.c.bf16 %v1417_v46, %v1409_v45  ;;  %v3438_v55 = vpack.c.bf16 %v1180_v48, %v1172_v47  ;;  %v1244_v40 = vld [vmem:[#allocation19 + $0x868] sm:$0xff]  ;;  %v1235_v47 = vld [vmem:[#allocation19 + $0x820] sm:$0xff] }
 0x47f   :  { %v3374_v57 = vpack.c.bf16 %v1434_v50, %v1426_v49  ;;  %v982_v41 = vld [vmem:[#allocation19 + $0x38] sm:$0xff]  ;;  %v1243_v48 = vld [vmem:[#allocation19 + $0x860] sm:$0xff]  ;;  %v981_v50 = vld [vmem:[#allocation19 + $0x30] sm:$0xff] }
 0x481   :  { %3421 = vmatpush1.bf16.msra.mxu0 %v3420_v60  ;;  %3357 = vmatpush1.bf16.msra.mxu1 %v3356_v11  ;;  %v1433_v60 = vld [vmem:[#allocation19 + $0xe50] sm:$0xff]  ;;  %v1188_v11 = vld [vmem:[#allocation19 + $0x6a8] sm:$0xff] }
 0x482   :  { %3423 = vmatprep.subr.bf16.mxu0 %v3422_v63  ;;  %3359 = vmatprep.subr.bf16.mxu1 %v3358_v0  ;;  %v1450_v63 = vld [vmem:[#allocation19 + $0xed8] sm:$0xff]  ;;  %v3440_v0 = vpack.c.bf16 %v1179_v54, %v1171_v53  ;;  %v3376_v1 = vpack.c.bf16 %v1433_v60, %v1425_v58  ;;  %v3442_v3 = vpack.c.bf16 %v1196_v61, %v1188_v11  ;;  %v1260_v53 = vld [vmem:[#allocation19 + $0x8e8] sm:$0xff]  ;;  %v1251_v60 = vld [vmem:[#allocation19 + $0x8a0] sm:$0xff] }
 0x483   :  { %v3378_v4 = vpack.c.bf16 %v1450_v63, %v1442_v62  ;;  %v998_v54 = vld [vmem:[#allocation19 + $0xb8] sm:$0xff]  ;;  %v1259_v11 = vld [vmem:[#allocation19 + $0x8e0] sm:$0xff]  ;;  %v997_v61 = vld [vmem:[#allocation19 + $0xb0] sm:$0xff] }
 0x485   :  { %3425 = vmatpush1.bf16.msra.mxu0 %v3424_v6  ;;  %3361 = vmatpush1.bf16.msra.mxu1 %v3360_v8  ;;  %v1449_v6 = vld [vmem:[#allocation19 + $0xed0] sm:$0xff]  ;;  %v1204_v8 = vld [vmem:[#allocation19 + $0x728] sm:$0xff] }
 0x486   :  { %3427 = vmatprep.subr.bf16.mxu0 %v3426_v12  ;;  %3363 = vmatprep.subr.bf16.mxu1 %v3362_v13  ;;  %v1466_v12 = vld [vmem:[#allocation19 + $0xf58] sm:$0xff]  ;;  %v3444_v13 = vpack.c.bf16 %v1195_v2, %v1187_v15  ;;  %v3380_v14 = vpack.c.bf16 %v1449_v6, %v1441_v5  ;;  %v3446_v7 = vpack.c.bf16 %v1212_v9, %v1204_v8  ;;  %v1276_v15 = vld [vmem:[#allocation19 + $0x968] sm:$0xff]  ;;  %v1267_v8 = vld [vmem:[#allocation19 + $0x920] sm:$0xff] }
 0x487   :  { %v3382_v24 = vpack.c.bf16 %v1466_v12, %v1458_v10  ;;  %v1014_v2 = vld [vmem:[#allocation19 + $0x138] sm:$0xff]  ;;  %v1275_v9 = vld [vmem:[#allocation19 + $0x960] sm:$0xff]  ;;  %v1013_v10 = vld [vmem:[#allocation19 + $0x130] sm:$0xff] }
 0x489   :  { %3429 = vmatpush1.bf16.msra.mxu0 %v3428_v19  ;;  %3365 = vmatpush1.bf16.msra.mxu1 %v3364_v20  ;;  %v1465_v19 = vld [vmem:[#allocation19 + $0xf50] sm:$0xff]  ;;  %v1220_v20 = vld [vmem:[#allocation19 + $0x7a8] sm:$0xff] }
 0x48a   :  { %3431 = vmatprep.subr.bf16.mxu0 %v3430_v25  ;;  %3367 = vmatprep.subr.bf16.mxu1 %v3366_v26  ;;  %v1482_v25 = vld [vmem:[#allocation19 + $0xfd8] sm:$0xff]  ;;  %v3448_v26 = vpack.c.bf16 %v1211_v17, %v1203_v16  ;;  %v3384_v28 = vpack.c.bf16 %v1465_v19, %v1457_v18  ;;  %v3450_v33 = vpack.c.bf16 %v1228_v22, %v1220_v20  ;;  %v1292_v16 = vld [vmem:[#allocation19 + $0x9e8] sm:$0xff]  ;;  %v1291_v20 = vld [vmem:[#allocation19 + $0x9e0] sm:$0xff] }
 0x48b   :  { %v3386_v34 = vpack.c.bf16 %v1482_v25, %v1474_v23  ;;  %v1030_v17 = vld [vmem:[#allocation19 + $0x1b8] sm:$0xff]  ;;  %v1029_v22 = vld [vmem:[#allocation19 + $0x1b0] sm:$0xff] }
 0x48c   :  { %v1037_v25 = vld [vmem:[#allocation19 + $0x1f0] sm:$0xff] }
 0x48d   :  { %3433 = vmatpush1.bf16.msra.mxu0 %v3432_v37  ;;  %3369 = vmatpush1.bf16.msra.mxu1 %v3368_v39  ;;  %v1481_v37 = vld [vmem:[#allocation19 + $0xfd0] sm:$0xff]  ;;  %v1236_v39 = vld [vmem:[#allocation19 + $0x828] sm:$0xff] }
 0x48e   :  { %3435 = vmatprep.subr.bf16.mxu0 %v3434_v42  ;;  %3371 = vmatprep.subr.bf16.mxu1 %v3370_v43  ;;  %v990_v42 = vld [vmem:[#allocation19 + $0x78] sm:$0xff]  ;;  %v3452_v43 = vpack.c.bf16 %v1227_v32, %v1219_v30  ;;  %v3388_v45 = vpack.c.bf16 %v1481_v37, %v1473_v44  ;;  %v3454_v46 = vpack.c.bf16 %v1244_v40, %v1236_v39  ;;  %v1299_v37 = vld [vmem:[#allocation19 + $0xa20] sm:$0xff]  ;;  %v1045_v40 = vld [vmem:[#allocation19 + $0x230] sm:$0xff] }
 0x48f   :  { %v3518_v49 = vpack.c.bf16 %v990_v42, %v982_v41  ;;  %v1046_v30 = vld [vmem:[#allocation19 + $0x238] sm:$0xff]  ;;  %v1307_v39 = vld [vmem:[#allocation19 + $0xa60] sm:$0xff]  ;;  %v1053_v42 = vld [vmem:[#allocation19 + $0x270] sm:$0xff] }
 0x490   :  { %v1054_v32 = vld [vmem:[#allocation19 + $0x278] sm:$0xff] }
 0x491   :  { %3437 = vmatpush1.bf16.msra.mxu0 %v3436_v51  ;;  %3373 = vmatpush1.bf16.msra.mxu1 %v3372_v52  ;;  %v989_v51 = vld [vmem:[#allocation19 + $0x70] sm:$0xff]  ;;  %v1252_v52 = vld [vmem:[#allocation19 + $0x8a8] sm:$0xff]  ;;  %v3534_v41 = vpack.c.bf16 %v1054_v32, %v1046_v30 }
 0x492   :  { %3439 = vmatprep.subr.bf16.mxu0 %v3438_v55  ;;  %3375 = vmatprep.subr.bf16.mxu1 %v3374_v57  ;;  %v1006_v55 = vld [vmem:[#allocation19 + $0xf8] sm:$0xff]  ;;  %v3456_v57 = vpack.c.bf16 %v1243_v48, %v1235_v47  ;;  %v3520_v58 = vpack.c.bf16 %v989_v51, %v981_v50  ;;  %v3458_v62 = vpack.c.bf16 %v1260_v53, %v1252_v52  ;;  %v1315_v51 = vld [vmem:[#allocation19 + $0xaa0] sm:$0xff]  ;;  %v1061_v53 = vld [vmem:[#allocation19 + $0x2b0] sm:$0xff] }
 0x493   :  { %v3522_v63 = vpack.c.bf16 %v1006_v55, %v998_v54  ;;  %v1070_v47 = vld [vmem:[#allocation19 + $0x2f8] sm:$0xff]  ;;  %v3472_v48 = vpack.c.bf16 %v1307_v39, %v1299_v37  ;;  %v1323_v52 = vld [vmem:[#allocation19 + $0xae0] sm:$0xff]  ;;  %v1069_v55 = vld [vmem:[#allocation19 + $0x2f0] sm:$0xff] }
 0x494   :  { %v1117_v32 = vld [vmem:[#allocation19 + $0x470] sm:$0xff]  ;;  %v1134_v37 = vld [vmem:[#allocation19 + $0x4f8] sm:$0xff] }
 0x495   :  { %3441 = vmatpush1.bf16.msra.mxu0 %v3440_v0  ;;  %3377 = vmatpush1.bf16.msra.mxu1 %v3376_v1  ;;  %v1005_v0 = vld [vmem:[#allocation19 + $0xf0] sm:$0xff]  ;;  %v1268_v1 = vld [vmem:[#allocation19 + $0x928] sm:$0xff] }
 0x496   :  { %3443 = vmatprep.subr.bf16.mxu0 %v3442_v3  ;;  %3379 = vmatprep.subr.bf16.mxu1 %v3378_v4  ;;  %v1022_v3 = vld [vmem:[#allocation19 + $0x178] sm:$0xff]  ;;  %v3460_v4 = vpack.c.bf16 %v1259_v11, %v1251_v60  ;;  %v3524_v5 = vpack.c.bf16 %v1005_v0, %v997_v61  ;;  %v3462_v6 = vpack.c.bf16 %v1276_v15, %v1268_v1  ;;  %v1331_v0 = vld [vmem:[#allocation19 + $0xb20] sm:$0xff]  ;;  %v1077_v15 = vld [vmem:[#allocation19 + $0x330] sm:$0xff] }
 0x497   :  { %v3526_v12 = vpack.c.bf16 %v1022_v3, %v1014_v2  ;;  %v1078_v60 = vld [vmem:[#allocation19 + $0x338] sm:$0xff]  ;;  %v3476_v61 = vpack.c.bf16 %v1323_v52, %v1315_v51  ;;  %v1339_v1 = vld [vmem:[#allocation19 + $0xb60] sm:$0xff]  ;;  %v1085_v3 = vld [vmem:[#allocation19 + $0x370] sm:$0xff] }
 0x498   :  { %v1086_v11 = vld [vmem:[#allocation19 + $0x378] sm:$0xff] }
 0x499   :  { %3445 = vmatpush1.bf16.msra.mxu0 %v3444_v13  ;;  %3381 = vmatpush1.bf16.msra.mxu1 %v3380_v14  ;;  %v1021_v13 = vld [vmem:[#allocation19 + $0x170] sm:$0xff]  ;;  %v1284_v14 = vld [vmem:[#allocation19 + $0x9a8] sm:$0xff]  ;;  %v3542_v2 = vpack.c.bf16 %v1086_v11, %v1078_v60  ;;  %v1150_v51 = vld [vmem:[#allocation19 + $0x578] sm:$0xff] }
 0x49a   :  { %3447 = vmatprep.subr.bf16.mxu0 %v3446_v7  ;;  %3383 = vmatprep.subr.bf16.mxu1 %v3382_v24  ;;  %v1038_v7 = vld [vmem:[#allocation19 + $0x1f8] sm:$0xff]  ;;  %v3464_v24 = vpack.c.bf16 %v1275_v9, %v1267_v8  ;;  %v3528_v18 = vpack.c.bf16 %v1021_v13, %v1013_v10  ;;  %v3466_v19 = vpack.c.bf16 %v1292_v16, %v1284_v14  ;;  %v1347_v13 = vld [vmem:[#allocation19 + $0xba0] sm:$0xff]  ;;  %v1093_v16 = vld [vmem:[#allocation19 + $0x3b0] sm:$0xff] }
 0x49b   :  { %v3530_v23 = vpack.c.bf16 %v1038_v7, %v1030_v17  ;;  %v1102_v8 = vld [vmem:[#allocation19 + $0x3f8] sm:$0xff]  ;;  %v3480_v9 = vpack.c.bf16 %v1339_v1, %v1331_v0  ;;  %v3544_v10 = vpack.c.bf16 %v1085_v3, %v1077_v15  ;;  %v1355_v14 = vld [vmem:[#allocation19 + $0xbe0] sm:$0xff]  ;;  %v1101_v7 = vld [vmem:[#allocation19 + $0x3f0] sm:$0xff] }
 0x49c   :  { %v1149_v11 = vld [vmem:[#allocation19 + $0x570] sm:$0xff]  ;;  %v1166_v0 = vld [vmem:[#allocation19 + $0x5f8] sm:$0xff]  ;;  %v1411_v3 = vld [vmem:[#allocation19 + $0xda0] sm:$0xff] }
 0x49d   :  { %3449 = vmatpush1.bf16.msra.mxu0 %v3448_v26  ;;  %3385 = vmatpush1.bf16.msra.mxu1 %v3384_v28  ;;  %v1300_v26 = vld [vmem:[#allocation19 + $0xa28] sm:$0xff] }
 0x49e   :  { %3451 = vmatprep.subr.bf16.mxu0 %v3450_v33  ;;  %3387 = vmatprep.subr.bf16.mxu1 %v3386_v34  ;;  %v1308_v28 = vld [vmem:[#allocation19 + $0xa68] sm:$0xff]  ;;  %v3532_v34 = vpack.c.bf16 %v1037_v25, %v1029_v22  ;;  %v3548_v22 = vpack.c.bf16 %v1101_v7, %v1093_v16  ;;  %v1363_v25 = vld [vmem:[#allocation19 + $0xc20] sm:$0xff] }
 0x49f   :  { %v3470_v44 = vpack.c.bf16 %v1308_v28, %v1300_v26  ;;  %v1371_v26 = vld [vmem:[#allocation19 + $0xc60] sm:$0xff]  ;;  %v1109_v28 = vld [vmem:[#allocation19 + $0x430] sm:$0xff] }
 0x4a0   :  { %v3488_v39 = vpack.c.bf16 %v1371_v26, %v1363_v25  ;;  %v1427_v7 = vld [vmem:[#allocation19 + $0xe20] sm:$0xff]  ;;  %v1198_v25 = vld [vmem:[#allocation19 + $0x6f8] sm:$0xff] }
 0x4a1   :  { %3453 = vmatpush1.bf16.msra.mxu0 %v3452_v43  ;;  %3389 = vmatpush1.bf16.msra.mxu1 %v3388_v45  ;;  %v1316_v43 = vld [vmem:[#allocation19 + $0xaa8] sm:$0xff] }
 0x4a2   :  { %3455 = vmatprep.subr.bf16.mxu0 %v3454_v46  ;;  %3519 = vmatprep.subr.bf16.mxu1 %v3518_v49  ;;  %v1324_v45 = vld [vmem:[#allocation19 + $0xae8] sm:$0xff]  ;;  %v1062_v46 = vld [vmem:[#allocation19 + $0x2b8] sm:$0xff]  ;;  %v3536_v49 = vpack.c.bf16 %v1053_v42, %v1045_v40  ;;  %v3552_v40 = vpack.c.bf16 %v1117_v32, %v1109_v28  ;;  %v1379_v42 = vld [vmem:[#allocation19 + $0xca0] sm:$0xff] }
 0x4a3   :  { %v3474_v50 = vpack.c.bf16 %v1324_v45, %v1316_v43  ;;  %v3538_v54 = vpack.c.bf16 %v1070_v47, %v1062_v46  ;;  %v1387_v43 = vld [vmem:[#allocation19 + $0xce0] sm:$0xff]  ;;  %v1125_v45 = vld [vmem:[#allocation19 + $0x4b0] sm:$0xff] }
 0x4a4   :  { %1878 = vmatmul.mubr.f32.vlgmr.msra.gmra.mrb[4].mxu0 %v4767_v31  ;;  %1807 = vmatmul.mubr.f32.vlgmr.msra.gmra.mrb[8].mxu1 %v4806_v27  ;;  %v1133_v47 = vld [vmem:[#allocation19 + $0x4f0] sm:$0xff]  ;;  %v3492_v52 = vpack.c.bf16 %v1387_v43, %v1379_v42  ;;  %v1443_v32 = vld [vmem:[#allocation19 + $0xea0] sm:$0xff]  ;;  %v1214_v42 = vld [vmem:[#allocation19 + $0x778] sm:$0xff] }
 0x4a5   :  { %3457 = vmatpush1.bf16.msra.mxu0 %v3456_v57  ;;  %1948 = vmatprep.mubr.f32.mxu0 %v4804_v21  ;;  %v1332_v57 = vld [vmem:[#allocation19 + $0xb28] sm:$0xff] }
 0x4a6   :  { %3521 = vmatpush1.bf16.msra.mxu1 %v3520_v58  ;;  %2019 = vmatprep.mubr.f32.mxu1 %v4765_v29  ;;  %v1283_v29 = vld [vmem:[#allocation19 + $0x9a0] sm:$0xff]  ;;  %v1340_v58 = vld [vmem:[#allocation19 + $0xb68] sm:$0xff] }
 0x4a7   :  { %3459 = vmatprep.subr.bf16.mxu0 %v3458_v62  ;;  %3523 = vmatprep.subr.bf16.mxu1 %v3522_v63  ;;  %v3468_v33 = vpack.c.bf16 %v1291_v20, %v1283_v29  ;;  %v3540_v62 = vpack.c.bf16 %v1069_v55, %v1061_v53  ;;  %v3478_v63 = vpack.c.bf16 %v1340_v58, %v1332_v57  ;;  %v1118_v29 = vld [vmem:[#allocation19 + $0x478] sm:$0xff]  ;;  %v1395_v55 = vld [vmem:[#allocation19 + $0xd20] sm:$0xff]  ;;  %v1141_v58 = vld [vmem:[#allocation19 + $0x530] sm:$0xff] }
 0x4a8   :  { %v3484_v20 = vpack.c.bf16 %v1355_v14, %v1347_v13  ;;  %v3556_v53 = vpack.c.bf16 %v1133_v47, %v1125_v45  ;;  %v1403_v57 = vld [vmem:[#allocation19 + $0xd60] sm:$0xff]  ;;  %v3560_v15 = vpack.c.bf16 %v1149_v11, %v1141_v58  ;;  %v1182_v13 = vld [vmem:[#allocation19 + $0x678] sm:$0xff] }
 0x4a9   :  { %3461 = vmatpush1.bf16.msra.mxu0 %v3460_v4  ;;  %v1348_v4 = vld [vmem:[#allocation19 + $0xba8] sm:$0xff]  ;;  %v3496_v1 = vpack.c.bf16 %v1403_v57, %v1395_v55  ;;  %v1459_v47 = vld [vmem:[#allocation19 + $0xf20] sm:$0xff]  ;;  %v1230_v55 = vld [vmem:[#allocation19 + $0x7f8] sm:$0xff] }
 0x4aa   :  { %3525 = vmatpush1.bf16.msra.mxu1 %v3524_v5  ;;  %3463 = vmatprep.subr.bf16.mxu0 %v3462_v6  ;;  %v1356_v5 = vld [vmem:[#allocation19 + $0xbe8] sm:$0xff]  ;;  %v1094_v6 = vld [vmem:[#allocation19 + $0x3b8] sm:$0xff]  ;;  %v1475_v11 = vld [vmem:[#allocation19 + $0xfa0] sm:$0xff] }
 0x4ab   :  { %3527 = vmatprep.subr.bf16.mxu1 %v3526_v12  ;;  %v3482_v12 = vpack.c.bf16 %v1356_v5, %v1348_v4  ;;  %v3546_v17 = vpack.c.bf16 %v1102_v8, %v1094_v6  ;;  %v1419_v4 = vld [vmem:[#allocation19 + $0xde0] sm:$0xff]  ;;  %v1157_v5 = vld [vmem:[#allocation19 + $0x5b0] sm:$0xff] }
 0x4ac   :  { %v1165_v8 = vld [vmem:[#allocation19 + $0x5f0] sm:$0xff]  ;;  %v3500_v14 = vpack.c.bf16 %v1419_v4, %v1411_v3  ;;  %v1246_v3 = vld [vmem:[#allocation19 + $0x878] sm:$0xff] }
 0x4ad   :  { %3465 = vmatpush1.bf16.msra.mxu0 %v3464_v24  ;;  %v1364_v24 = vld [vmem:[#allocation19 + $0xc28] sm:$0xff]  ;;  %v3564_v16 = vpack.c.bf16 %v1165_v8, %v1157_v5  ;;  %v2381_v8 = vld [vmem:[#allocation25] sm:$0xff] }
 0x4ae   :  { %3529 = vmatpush1.bf16.msra.mxu1 %v3528_v18  ;;  %3467 = vmatprep.subr.bf16.mxu0 %v3466_v19  ;;  %v1372_v18 = vld [vmem:[#allocation19 + $0xc68] sm:$0xff]  ;;  %v1110_v19 = vld [vmem:[#allocation19 + $0x438] sm:$0xff] }
 0x4af   :  { %3531 = vmatprep.subr.bf16.mxu1 %v3530_v23  ;;  %v3486_v23 = vpack.c.bf16 %v1372_v18, %v1364_v24  ;;  %v3550_v30 = vpack.c.bf16 %v1118_v29, %v1110_v19  ;;  %v1435_v24 = vld [vmem:[#allocation19 + $0xe60] sm:$0xff]  ;;  %v1173_v18 = vld [vmem:[#allocation19 + $0x630] sm:$0xff] }
 0x4b0   :  { %v1181_v29 = vld [vmem:[#allocation19 + $0x670] sm:$0xff]  ;;  %v3504_v26 = vpack.c.bf16 %v1435_v24, %v1427_v7 }
 0x4b1   :  { %3469 = vmatpush1.bf16.msra.mxu0 %v3468_v33  ;;  %v1380_v33 = vld [vmem:[#allocation19 + $0xca8] sm:$0xff]  ;;  %v3568_v28 = vpack.c.bf16 %v1181_v29, %v1173_v18  ;;  %v2388_v7 = vld [vmem:[#allocation25 + $0x38] sm:$0xff]  ;;  %v2385_v29 = vld [vmem:[#allocation25 + $0x20] sm:$0xff] }
 0x4b2   :  { %3533 = vmatpush1.bf16.msra.mxu1 %v3532_v34  ;;  %3471 = vmatprep.subr.bf16.mxu0 %v3470_v44  ;;  %v1388_v34 = vld [vmem:[#allocation19 + $0xce8] sm:$0xff]  ;;  %v1126_v44 = vld [vmem:[#allocation19 + $0x4b8] sm:$0xff] }
 0x4b3   :  { %3535 = vmatprep.subr.bf16.mxu1 %v3534_v41  ;;  %v3490_v41 = vpack.c.bf16 %v1388_v34, %v1380_v33  ;;  %v3554_v46 = vpack.c.bf16 %v1134_v37, %v1126_v44  ;;  %v1451_v33 = vld [vmem:[#allocation19 + $0xee0] sm:$0xff]  ;;  %v1189_v34 = vld [vmem:[#allocation19 + $0x6b0] sm:$0xff] }
 0x4b4   :  { %v1197_v37 = vld [vmem:[#allocation19 + $0x6f0] sm:$0xff]  ;;  %v3508_v43 = vpack.c.bf16 %v1451_v33, %v1443_v32  ;;  %v1278_v32 = vld [vmem:[#allocation19 + $0x978] sm:$0xff] }
 0x4b5   :  { %3473 = vmatpush1.bf16.msra.mxu0 %v3472_v48  ;;  %v1396_v48 = vld [vmem:[#allocation19 + $0xd28] sm:$0xff]  ;;  %v3572_v45 = vpack.c.bf16 %v1197_v37, %v1189_v34 }
 0x4b6   :  { %3537 = vmatpush1.bf16.msra.mxu1 %v3536_v49  ;;  %3475 = vmatprep.subr.bf16.mxu0 %v3474_v50  ;;  %v1404_v49 = vld [vmem:[#allocation19 + $0xd68] sm:$0xff]  ;;  %v1142_v50 = vld [vmem:[#allocation19 + $0x538] sm:$0xff] }
 0x4b7   :  { %3539 = vmatprep.subr.bf16.mxu1 %v3538_v54  ;;  %v3494_v54 = vpack.c.bf16 %v1404_v49, %v1396_v48  ;;  %v3558_v60 = vpack.c.bf16 %v1150_v51, %v1142_v50  ;;  %v1467_v48 = vld [vmem:[#allocation19 + $0xf60] sm:$0xff]  ;;  %v1205_v49 = vld [vmem:[#allocation19 + $0x730] sm:$0xff] }
 0x4b8   :  { %v1213_v51 = vld [vmem:[#allocation19 + $0x770] sm:$0xff]  ;;  %v3512_v57 = vpack.c.bf16 %v1467_v48, %v1459_v47  ;;  %v1294_v47 = vld [vmem:[#allocation19 + $0x9f8] sm:$0xff] }
 0x4b9   :  { %3477 = vmatpush1.bf16.msra.mxu0 %v3476_v61  ;;  %v1412_v61 = vld [vmem:[#allocation19 + $0xda8] sm:$0xff]  ;;  %v3576_v58 = vpack.c.bf16 %v1213_v51, %v1205_v49  ;;  %v1285_v49 = vld [vmem:[#allocation19 + $0x9b0] sm:$0xff] }
 0x4ba   :  { %3541 = vmatpush1.bf16.msra.mxu1 %v3540_v62  ;;  %3479 = vmatprep.subr.bf16.mxu0 %v3478_v63  ;;  %v1420_v62 = vld [vmem:[#allocation19 + $0xde8] sm:$0xff]  ;;  %v1158_v63 = vld [vmem:[#allocation19 + $0x5b8] sm:$0xff] }
 0x4bb   :  { %3543 = vmatprep.subr.bf16.mxu1 %v3542_v2  ;;  %v3498_v2 = vpack.c.bf16 %v1420_v62, %v1412_v61  ;;  %v3562_v6 = vpack.c.bf16 %v1166_v0, %v1158_v63  ;;  %v1483_v61 = vld [vmem:[#allocation19 + $0xfe0] sm:$0xff]  ;;  %v1221_v62 = vld [vmem:[#allocation19 + $0x7b0] sm:$0xff]  ;;  %v2395_v51 = vld [vmem:[#allocation25 + $0x70] sm:$0xff] }
 0x4bc   :  { %v1229_v0 = vld [vmem:[#allocation19 + $0x7f0] sm:$0xff]  ;;  %v3516_v4 = vpack.c.bf16 %v1483_v61, %v1475_v11 }
 0x4bd   :  { %3481 = vmatpush1.bf16.msra.mxu0 %v3480_v9  ;;  %v1428_v9 = vld [vmem:[#allocation19 + $0xe28] sm:$0xff]  ;;  %v3580_v5 = vpack.c.bf16 %v1229_v0, %v1221_v62  ;;  %v1301_v61 = vld [vmem:[#allocation19 + $0xa30] sm:$0xff] }
 0x4be   :  { %3545 = vmatpush1.bf16.msra.mxu1 %v3544_v10  ;;  %3483 = vmatprep.subr.bf16.mxu0 %v3482_v12  ;;  %v1436_v10 = vld [vmem:[#allocation19 + $0xe68] sm:$0xff]  ;;  %v1174_v12 = vld [vmem:[#allocation19 + $0x638] sm:$0xff] }
 0x4bf   :  { %3547 = vmatprep.subr.bf16.mxu1 %v3546_v17  ;;  %v3502_v17 = vpack.c.bf16 %v1436_v10, %v1428_v9  ;;  %v3566_v19 = vpack.c.bf16 %v1182_v13, %v1174_v12  ;;  %v2383_v9 = vld [vmem:[#allocation25 + $0x10] sm:$0xff]  ;;  %v1237_v12 = vld [vmem:[#allocation19 + $0x830] sm:$0xff] }
 0x4c0   :  { %v1245_v13 = vld [vmem:[#allocation19 + $0x870] sm:$0xff]  ;;  %v3648_v24 = vpack.c.bf16 %v2383_v9, %v2381_v8  ;;  %v2399_v0 = vld [vmem:[#allocation25 + $0x90] sm:$0xff] }
 0x4c1   :  { %3485 = vmatpush1.bf16.msra.mxu0 %v3484_v20  ;;  %v1444_v20 = vld [vmem:[#allocation19 + $0xea8] sm:$0xff]  ;;  %v3584_v18 = vpack.c.bf16 %v1245_v13, %v1237_v12  ;;  %v1317_v9 = vld [vmem:[#allocation19 + $0xab0] sm:$0xff]  ;;  %v2401_v12 = vld [vmem:[#allocation25 + $0xa0] sm:$0xff] }
 0x4c2   :  { %3549 = vmatpush1.bf16.msra.mxu1 %v3548_v22  ;;  %3487 = vmatprep.subr.bf16.mxu0 %v3486_v23  ;;  %v1452_v22 = vld [vmem:[#allocation19 + $0xee8] sm:$0xff]  ;;  %v1190_v23 = vld [vmem:[#allocation19 + $0x6b8] sm:$0xff] }
 0x4c3   :  { %3551 = vmatprep.subr.bf16.mxu1 %v3550_v30  ;;  %v3506_v30 = vpack.c.bf16 %v1452_v22, %v1444_v20  ;;  %v3570_v44 = vpack.c.bf16 %v1198_v25, %v1190_v23  ;;  %v2387_v20 = vld [vmem:[#allocation25 + $0x30] sm:$0xff]  ;;  %v1261_v23 = vld [vmem:[#allocation19 + $0x8f0] sm:$0xff] }
 0x4c4   :  { %v3652_v33 = vpack.c.bf16 %v2387_v20, %v2385_v29  ;;  %v2403_v13 = vld [vmem:[#allocation25 + $0xb0] sm:$0xff]  ;;  %v1333_v20 = vld [vmem:[#allocation19 + $0xb30] sm:$0xff] }
 0x4c5   :  { %3489 = vmatpush1.bf16.msra.mxu0 %v3488_v39  ;;  %v1460_v39 = vld [vmem:[#allocation19 + $0xf28] sm:$0xff] }
 0x4c6   :  { %3553 = vmatpush1.bf16.msra.mxu1 %v3552_v40  ;;  %3491 = vmatprep.subr.bf16.mxu0 %v3490_v41  ;;  %v1468_v40 = vld [vmem:[#allocation19 + $0xf68] sm:$0xff]  ;;  %v1206_v41 = vld [vmem:[#allocation19 + $0x738] sm:$0xff] }
 0x4c7   :  { %3555 = vmatprep.subr.bf16.mxu1 %v3554_v46  ;;  %v3510_v46 = vpack.c.bf16 %v1468_v40, %v1460_v39  ;;  %v3574_v50 = vpack.c.bf16 %v1214_v42, %v1206_v41  ;;  %v2389_v39 = vld [vmem:[#allocation25 + $0x40] sm:$0xff]  ;;  %v2391_v40 = vld [vmem:[#allocation25 + $0x50] sm:$0xff]  ;;  %v1277_v42 = vld [vmem:[#allocation19 + $0x970] sm:$0xff] }
 0x4c9   :  { %3493 = vmatpush1.bf16.msra.mxu0 %v3492_v52  ;;  %v1476_v52 = vld [vmem:[#allocation19 + $0xfa8] sm:$0xff] }
 0x4ca   :  { %3557 = vmatpush1.bf16.msra.mxu1 %v3556_v53  ;;  %3495 = vmatprep.subr.bf16.mxu0 %v3494_v54  ;;  %v1484_v53 = vld [vmem:[#allocation19 + $0xfe8] sm:$0xff]  ;;  %v1222_v54 = vld [vmem:[#allocation19 + $0x7b8] sm:$0xff] }
 0x4cb   :  { %3559 = vmatprep.subr.bf16.mxu1 %v3558_v60  ;;  %v3514_v60 = vpack.c.bf16 %v1484_v53, %v1476_v52  ;;  %v3578_v63 = vpack.c.bf16 %v1230_v55, %v1222_v54  ;;  %v1293_v53 = vld [vmem:[#allocation19 + $0x9f0] sm:$0xff]  ;;  %v2398_v54 = vld [vmem:[#allocation25 + $0x88] sm:$0xff] }
 0x4cc   :  { %v2400_v55 = vld [vmem:[#allocation25 + $0x98] sm:$0xff]  ;;  %v3596_v11 = vpack.c.bf16 %v1293_v53, %v1285_v49  ;;  %v1366_v49 = vld [vmem:[#allocation19 + $0xc38] sm:$0xff] }
 0x4cd   :  { %3497 = vmatpush1.bf16.msra.mxu0 %v3496_v1  ;;  %v2382_v1 = vld [vmem:[#allocation25 + $0x8] sm:$0xff]  ;;  %v3662_v62 = vpack.c.bf16 %v2400_v55, %v2398_v54  ;;  %v2413_v54 = vld [vmem:[#allocation25 + $0x100] sm:$0xff]  ;;  %v2415_v55 = vld [vmem:[#allocation25 + $0x110] sm:$0xff] }
 0x4ce   :  { %3561 = vmatpush1.bf16.msra.mxu1 %v3560_v15  ;;  %3499 = vmatprep.subr.bf16.mxu0 %v3498_v2  ;;  %v2384_v15 = vld [vmem:[#allocation25 + $0x18] sm:$0xff]  ;;  %v1238_v2 = vld [vmem:[#allocation19 + $0x838] sm:$0xff] }
 0x4cf   :  { %3563 = vmatprep.subr.bf16.mxu1 %v3562_v6  ;;  %v3646_v6 = vpack.c.bf16 %v2384_v15, %v2382_v1  ;;  %v3582_v10 = vpack.c.bf16 %v1246_v3, %v1238_v2  ;;  %v1309_v15 = vld [vmem:[#allocation19 + $0xa70] sm:$0xff]  ;;  %v2402_v2 = vld [vmem:[#allocation25 + $0xa8] sm:$0xff] }
 0x4d0   :  { %v2404_v3 = vld [vmem:[#allocation25 + $0xb8] sm:$0xff]  ;;  %v3600_v8 = vpack.c.bf16 %v1309_v15, %v1301_v61  ;;  %v1382_v61 = vld [vmem:[#allocation19 + $0xcb8] sm:$0xff] }
 0x4d1   :  { %3501 = vmatpush1.bf16.msra.mxu0 %v3500_v14  ;;  %v1254_v14 = vld [vmem:[#allocation19 + $0x8b8] sm:$0xff] }
 0x4d2   :  { %3565 = vmatpush1.bf16.msra.mxu1 %v3564_v16  ;;  %3503 = vmatprep.subr.bf16.mxu0 %v3502_v17  ;;  %v1262_v16 = vld [vmem:[#allocation19 + $0x8f8] sm:$0xff]  ;;  %v2386_v17 = vld [vmem:[#allocation25 + $0x28] sm:$0xff] }
 0x4d3   :  { %3567 = vmatprep.subr.bf16.mxu1 %v3566_v19  ;;  %v1253_v19 = vld [vmem:[#allocation19 + $0x8b0] sm:$0xff]  ;;  %v3586_v22 = vpack.c.bf16 %v1262_v16, %v1254_v14  ;;  %v3650_v25 = vpack.c.bf16 %v2388_v7, %v2386_v17  ;;  %v2406_v17 = vld [vmem:[#allocation25 + $0xc8] sm:$0xff] }
 0x4d4   :  { %v3588_v34 = vpack.c.bf16 %v1261_v23, %v1253_v19  ;;  %v1325_v16 = vld [vmem:[#allocation19 + $0xaf0] sm:$0xff]  ;;  %v3668_v19 = vpack.c.bf16 %v2403_v13, %v2401_v12  ;;  %v2405_v23 = vld [vmem:[#allocation25 + $0xc0] sm:$0xff] }
 0x4d5   :  { %3505 = vmatpush1.bf16.msra.mxu0 %v3504_v26  ;;  %v2390_v26 = vld [vmem:[#allocation25 + $0x48] sm:$0xff]  ;;  %v2408_v7 = vld [vmem:[#allocation25 + $0xd8] sm:$0xff]  ;;  %v3604_v29 = vpack.c.bf16 %v1325_v16, %v1317_v9  ;;  %v1398_v9 = vld [vmem:[#allocation19 + $0xd38] sm:$0xff] }
 0x4d6   :  { %3569 = vmatpush1.bf16.msra.mxu1 %v3568_v28  ;;  %3507 = vmatprep.subr.bf16.mxu0 %v3506_v30  ;;  %v2392_v28 = vld [vmem:[#allocation25 + $0x58] sm:$0xff]  ;;  %v1270_v30 = vld [vmem:[#allocation19 + $0x938] sm:$0xff] }
 0x4d7   :  { %3571 = vmatprep.subr.bf16.mxu1 %v3570_v44  ;;  %v1269_v44 = vld [vmem:[#allocation19 + $0x930] sm:$0xff]  ;;  %v3654_v37 = vpack.c.bf16 %v2392_v28, %v2390_v26  ;;  %v3590_v41 = vpack.c.bf16 %v1278_v32, %v1270_v30  ;;  %v2410_v32 = vld [vmem:[#allocation25 + $0xe8] sm:$0xff] }
 0x4d8   :  { %v3592_v48 = vpack.c.bf16 %v1277_v42, %v1269_v44  ;;  %v1341_v30 = vld [vmem:[#allocation19 + $0xb70] sm:$0xff]  ;;  %v1350_v44 = vld [vmem:[#allocation19 + $0xbb8] sm:$0xff] }
 0x4d9   :  { %3509 = vmatpush1.bf16.msra.mxu0 %v3508_v43  ;;  %v2394_v43 = vld [vmem:[#allocation25 + $0x68] sm:$0xff] }
 0x4da   :  { %3573 = vmatpush1.bf16.msra.mxu1 %v3572_v45  ;;  %3511 = vmatprep.subr.bf16.mxu0 %v3510_v46  ;;  %v2396_v45 = vld [vmem:[#allocation25 + $0x78] sm:$0xff]  ;;  %v1286_v46 = vld [vmem:[#allocation19 + $0x9b8] sm:$0xff] }
 0x4db   :  { %3575 = vmatprep.subr.bf16.mxu1 %v3574_v50  ;;  %v2393_v50 = vld [vmem:[#allocation25 + $0x60] sm:$0xff]  ;;  %v3594_v52 = vpack.c.bf16 %v1294_v47, %v1286_v46  ;;  %v1357_v47 = vld [vmem:[#allocation19 + $0xbf0] sm:$0xff] }
 0x4dd   :  { %3513 = vmatpush1.bf16.msra.mxu0 %v3512_v57  ;;  %v1302_v57 = vld [vmem:[#allocation19 + $0xa38] sm:$0xff] }
 0x4de   :  { %3577 = vmatpush1.bf16.msra.mxu1 %v3576_v58  ;;  %3515 = vmatprep.subr.bf16.mxu0 %v3514_v60  ;;  %v1310_v58 = vld [vmem:[#allocation19 + $0xa78] sm:$0xff]  ;;  %v3660_v60 = vpack.c.bf16 %v2395_v51, %v2393_v50 }
 0x4df   :  { %3579 = vmatprep.subr.bf16.mxu1 %v3578_v63  ;;  %v2397_v63 = vld [vmem:[#allocation25 + $0x80] sm:$0xff]  ;;  %v3598_v1 = vpack.c.bf16 %v1310_v58, %v1302_v57  ;;  %v1373_v58 = vld [vmem:[#allocation19 + $0xc70] sm:$0xff] }
 0x4e1   :  { %3517 = vmatpush1.bf16.msra.mxu0 %v3516_v4  ;;  %v1318_v4 = vld [vmem:[#allocation19 + $0xab8] sm:$0xff] }
 0x4e2   :  { %3581 = vmatpush1.bf16.msra.mxu1 %v3580_v5  ;;  %3647 = vmatprep.subr.bf16.mxu0 %v3646_v6  ;;  %v1326_v5 = vld [vmem:[#allocation19 + $0xaf8] sm:$0xff]  ;;  %v3664_v6 = vpack.c.bf16 %v2399_v0, %v2397_v63  ;;  %v3680_v63 = vpack.c.bf16 %v2415_v55, %v2413_v54 }
 0x4e3   :  { %3583 = vmatprep.subr.bf16.mxu1 %v3582_v10  ;;  %v3666_v10 = vpack.c.bf16 %v2404_v3, %v2402_v2  ;;  %v3602_v14 = vpack.c.bf16 %v1326_v5, %v1318_v4  ;;  %v2417_v2 = vld [vmem:[#allocation25 + $0x120] sm:$0xff]  ;;  %v2419_v3 = vld [vmem:[#allocation25 + $0x130] sm:$0xff]  ;;  %v1389_v5 = vld [vmem:[#allocation19 + $0xcf0] sm:$0xff] }
 0x4e4   :  { %1949 = vmatmul.mubr.f32.vlgmr.msra.gmra.mrb[4].mxu0 %v4806_v27  ;;  %v3684_v12 = vpack.c.bf16 %v2419_v3, %v2417_v2 }
 0x4e5   :  { %2020 = vmatmul.mubr.f32.vlgmr.msra.gmra.mrb[10].mxu1 %v4767_v31  ;;  %3649 = vmatpush1.bf16.msra.mxu0 %v3648_v24  ;;  %v3656_v31 = vpack.c.bf16 %v2391_v40, %v2389_v39  ;;  %v1334_v24 = vld [vmem:[#allocation19 + $0xb38] sm:$0xff]  ;;  %v3608_v40 = vpack.c.bf16 %v1341_v30, %v1333_v20 }
 0x4e6   :  { %3585 = vmatpush1.bf16.msra.mxu1 %v3584_v18  ;;  %2090 = vmatprep.mubr.f32.mxu1 %v4804_v21  ;;  %v3658_v21 = vpack.c.bf16 %v2396_v45, %v2394_v43  ;;  %v1342_v18 = vld [vmem:[#allocation19 + $0xb78] sm:$0xff]  ;;  %v2411_v45 = vld [vmem:[#allocation25 + $0xf0] sm:$0xff] }
 0x4e7   :  { %3587 = vmatprep.subr.bf16.mxu1 %v3586_v22  ;;  %3651 = vmatprep.subr.bf16.mxu0 %v3650_v25  ;;  %v3670_v22 = vpack.c.bf16 %v2408_v7, %v2406_v17  ;;  %v2407_v25 = vld [vmem:[#allocation25 + $0xd0] sm:$0xff]  ;;  %v3606_v28 = vpack.c.bf16 %v1342_v18, %v1334_v24  ;;  %v2409_v43 = vld [vmem:[#allocation25 + $0xe0] sm:$0xff]  ;;  %v1405_v18 = vld [vmem:[#allocation19 + $0xd70] sm:$0xff] }
 0x4e8   :  { %v3672_v39 = vpack.c.bf16 %v2407_v25, %v2405_v23  ;;  %v3676_v50 = vpack.c.bf16 %v2411_v45, %v2409_v43  ;;  %v2421_v17 = vld [vmem:[#allocation25 + $0x140] sm:$0xff]  ;;  %v2423_v7 = vld [vmem:[#allocation25 + $0x150] sm:$0xff] }
 0x4e9   :  { %3653 = vmatpush1.bf16.msra.mxu0 %v3652_v33  ;;  %v2412_v33 = vld [vmem:[#allocation25 + $0xf8] sm:$0xff]  ;;  %v1414_v20 = vld [vmem:[#allocation19 + $0xdb8] sm:$0xff]  ;;  %v3688_v23 = vpack.c.bf16 %v2423_v7, %v2421_v17 }
 0x4ea   :  { %3589 = vmatpush1.bf16.msra.mxu1 %v3588_v34  ;;  %3655 = vmatprep.subr.bf16.mxu0 %v3654_v37  ;;  %v1358_v37 = vld [vmem:[#allocation19 + $0xbf8] sm:$0xff]  ;;  %v3674_v42 = vpack.c.bf16 %v2412_v33, %v2410_v32  ;;  %v2427_v33 = vld [vmem:[#allocation25 + $0x170] sm:$0xff] }
 0x4eb   :  { %3591 = vmatprep.subr.bf16.mxu1 %v3590_v41  ;;  %v1349_v41 = vld [vmem:[#allocation19 + $0xbb0] sm:$0xff]  ;;  %v3610_v46 = vpack.c.bf16 %v1358_v37, %v1350_v44  ;;  %v2425_v32 = vld [vmem:[#allocation25 + $0x160] sm:$0xff] }
 0x4ec   :  { %v3612_v51 = vpack.c.bf16 %v1357_v47, %v1349_v41  ;;  %v1421_v37 = vld [vmem:[#allocation19 + $0xdf0] sm:$0xff]  ;;  %v1430_v41 = vld [vmem:[#allocation19 + $0xe38] sm:$0xff]  ;;  %v3692_v43 = vpack.c.bf16 %v2427_v33, %v2425_v32  ;;  %v4825_v33 = vld [vmem:[#allocation21] sm:$0xff] }
 0x4ed   :  { %3657 = vmatpush1.bf16.msra.mxu0 %v3656_v31  ;;  %v2414_v31 = vld [vmem:[#allocation25 + $0x108] sm:$0xff] }
 0x4ee   :  { %3593 = vmatpush1.bf16.msra.mxu1 %v3592_v48  ;;  %3659 = vmatprep.subr.bf16.mxu0 %v3658_v21  ;;  %v2416_v48 = vld [vmem:[#allocation25 + $0x118] sm:$0xff]  ;;  %v1374_v21 = vld [vmem:[#allocation19 + $0xc78] sm:$0xff] }
 0x4ef   :  { %3595 = vmatprep.subr.bf16.mxu1 %v3594_v52  ;;  %v1365_v52 = vld [vmem:[#allocation19 + $0xc30] sm:$0xff]  ;;  %v3678_v53 = vpack.c.bf16 %v2416_v48, %v2414_v31  ;;  %v3614_v57 = vpack.c.bf16 %v1374_v21, %v1366_v49  ;;  %v2429_v31 = vld [vmem:[#allocation25 + $0x180] sm:$0xff]  ;;  %v2431_v48 = vld [vmem:[#allocation25 + $0x190] sm:$0xff] }
 0x4f0   :  { %v3616_v0 = vpack.c.bf16 %v1373_v58, %v1365_v52  ;;  %v1437_v21 = vld [vmem:[#allocation19 + $0xe70] sm:$0xff]  ;;  %v1446_v52 = vld [vmem:[#allocation19 + $0xeb8] sm:$0xff]  ;;  %v3696_v54 = vpack.c.bf16 %v2431_v48, %v2429_v31 }
 0x4f1   :  { %3661 = vmatpush1.bf16.msra.mxu0 %v3660_v60  ;;  %v2418_v60 = vld [vmem:[#allocation25 + $0x128] sm:$0xff] }
 0x4f2   :  { %3597 = vmatpush1.bf16.msra.mxu1 %v3596_v11  ;;  %3663 = vmatprep.subr.bf16.mxu0 %v3662_v62  ;;  %v2420_v11 = vld [vmem:[#allocation25 + $0x138] sm:$0xff]  ;;  %v1390_v62 = vld [vmem:[#allocation19 + $0xcf8] sm:$0xff] }
 0x4f3   :  { %3599 = vmatprep.subr.bf16.mxu1 %v3598_v1  ;;  %v1381_v1 = vld [vmem:[#allocation19 + $0xcb0] sm:$0xff]  ;;  %v3682_v15 = vpack.c.bf16 %v2420_v11, %v2418_v60  ;;  %v3618_v4 = vpack.c.bf16 %v1390_v62, %v1382_v61  ;;  %v2433_v60 = vld [vmem:[#allocation25 + $0x1a0] sm:$0xff]  ;;  %v2435_v11 = vld [vmem:[#allocation25 + $0x1b0] sm:$0xff] }
 0x4f4   :  { %v3620_v13 = vpack.c.bf16 %v1389_v5, %v1381_v1  ;;  %v1453_v62 = vld [vmem:[#allocation19 + $0xef0] sm:$0xff]  ;;  %v1462_v1 = vld [vmem:[#allocation19 + $0xf38] sm:$0xff]  ;;  %v3700_v2 = vpack.c.bf16 %v2435_v11, %v2433_v60 }
 0x4f5   :  { %3665 = vmatpush1.bf16.msra.mxu0 %v3664_v6  ;;  %v2422_v6 = vld [vmem:[#allocation25 + $0x148] sm:$0xff] }
 0x4f6   :  { %3601 = vmatpush1.bf16.msra.mxu1 %v3600_v8  ;;  %3667 = vmatprep.subr.bf16.mxu0 %v3666_v10  ;;  %v2424_v8 = vld [vmem:[#allocation25 + $0x158] sm:$0xff]  ;;  %v1406_v10 = vld [vmem:[#allocation19 + $0xd78] sm:$0xff] }
 0x4f7   :  { %v4820_v26 = vpop.f32.mrb[6].mxu1  ;;  %3603 = vmatprep.subr.bf16.mxu1 %v3602_v14  ;;  %v1397_v14 = vld [vmem:[#allocation19 + $0xd30] sm:$0xff]  ;;  %v3686_v16 = vpack.c.bf16 %v2424_v8, %v2422_v6  ;;  %v3622_v24 = vpack.c.bf16 %v1406_v10, %v1398_v9  ;;  %v2437_v6 = vld [vmem:[#allocation25 + $0x1c0] sm:$0xff]  ;;  %v2439_v8 = vld [vmem:[#allocation25 + $0x1d0] sm:$0xff] }
 0x4f8   :  { %v4822_v34 = vpop.f32.mrb[7].mxu1  ;;  %v3624_v25 = vpack.c.bf16 %v1405_v18, %v1397_v14  ;;  %v1469_v10 = vld [vmem:[#allocation19 + $0xf70] sm:$0xff]  ;;  %v1478_v14 = vld [vmem:[#allocation19 + $0xfb8] sm:$0xff]  ;;  %v3704_v17 = vpack.c.bf16 %v2439_v8, %v2437_v6 }
 0x4f9   :  { %3669 = vmatpush1.bf16.msra.mxu0 %v3668_v19  ;;  %v2426_v19 = vld [vmem:[#allocation25 + $0x168] sm:$0xff] }
 0x4fa   :  { %3605 = vmatpush1.bf16.msra.mxu1 %v3604_v29  ;;  %3671 = vmatprep.subr.bf16.mxu0 %v3670_v22  ;;  %v2428_v29 = vld [vmem:[#allocation25 + $0x178] sm:$0xff]  ;;  %v1422_v22 = vld [vmem:[#allocation19 + $0xdf8] sm:$0xff] }
 0x4fb   :  { %3607 = vmatprep.subr.bf16.mxu1 %v3606_v28  ;;  %v1413_v28 = vld [vmem:[#allocation19 + $0xdb0] sm:$0xff]  ;;  %v3690_v30 = vpack.c.bf16 %v2428_v29, %v2426_v19  ;;  %v3626_v44 = vpack.c.bf16 %v1422_v22, %v1414_v20  ;;  %v2441_v19 = vld [vmem:[#allocation25 + $0x1e0] sm:$0xff]  ;;  %v2443_v29 = vld [vmem:[#allocation25 + $0x1f0] sm:$0xff] }
 0x4fc   :  { %v3628_v45 = vpack.c.bf16 %v1421_v37, %v1413_v28  ;;  %v1485_v22 = vld [vmem:[#allocation19 + $0xff0] sm:$0xff]  ;;  %v3708_v28 = vpack.c.bf16 %v2443_v29, %v2441_v19  ;;  %v1496_v37 = vrot.slane %v4825_v33, %v4735_v38 }
 0x4fd   :  { %3673 = vmatpush1.bf16.msra.mxu0 %v3672_v39  ;;  %v2430_v39 = vld [vmem:[#allocation25 + $0x188] sm:$0xff] }
 0x4fe   :  { %3609 = vmatpush1.bf16.msra.mxu1 %v3608_v40  ;;  %3675 = vmatprep.subr.bf16.mxu0 %v3674_v42  ;;  %v2432_v40 = vld [vmem:[#allocation25 + $0x198] sm:$0xff]  ;;  %v1438_v42 = vld [vmem:[#allocation19 + $0xe78] sm:$0xff] }
 0x4ff   :  { %3611 = vmatprep.subr.bf16.mxu1 %v3610_v46  ;;  %v1429_v46 = vld [vmem:[#allocation19 + $0xe30] sm:$0xff]  ;;  %v3694_v47 = vpack.c.bf16 %v2432_v40, %v2430_v39  ;;  %v3630_v49 = vpack.c.bf16 %v1438_v42, %v1430_v41  ;;  %v1598_v40 = vadd.f32 %v4822_v34, %v1496_v37 }
 0x500   :  { %v3632_v55 = vpack.c.bf16 %v1437_v21, %v1429_v46 }
 0x501   :  { %3677 = vmatpush1.bf16.msra.mxu0 %v3676_v50  ;;  %v2434_v50 = vld [vmem:[#allocation25 + $0x1a8] sm:$0xff] }
 0x502   :  { %3613 = vmatpush1.bf16.msra.mxu1 %v3612_v51  ;;  %3679 = vmatprep.subr.bf16.mxu0 %v3678_v53  ;;  %v2436_v51 = vld [vmem:[#allocation25 + $0x1b8] sm:$0xff]  ;;  %v1454_v53 = vld [vmem:[#allocation19 + $0xef8] sm:$0xff] }
 0x503   :  { %3615 = vmatprep.subr.bf16.mxu1 %v3614_v57  ;;  %v1445_v57 = vld [vmem:[#allocation19 + $0xeb0] sm:$0xff]  ;;  %v3698_v58 = vpack.c.bf16 %v2436_v51, %v2434_v50  ;;  %v3634_v61 = vpack.c.bf16 %v1454_v53, %v1446_v52 }
 0x504   :  { %v3636_v3 = vpack.c.bf16 %v1453_v62, %v1445_v57 }
 0x505   :  { %3681 = vmatpush1.bf16.msra.mxu0 %v3680_v63  ;;  %v2438_v63 = vld [vmem:[#allocation25 + $0x1c8] sm:$0xff] }
 0x506   :  { %3617 = vmatpush1.bf16.msra.mxu1 %v3616_v0  ;;  %3683 = vmatprep.subr.bf16.mxu0 %v3682_v15  ;;  %v2440_v0 = vld [vmem:[#allocation25 + $0x1d8] sm:$0xff]  ;;  %v1470_v15 = vld [vmem:[#allocation19 + $0xf78] sm:$0xff] }
 0x507   :  { %3619 = vmatprep.subr.bf16.mxu1 %v3618_v4  ;;  %v1461_v4 = vld [vmem:[#allocation19 + $0xf30] sm:$0xff]  ;;  %v3702_v5 = vpack.c.bf16 %v2440_v0, %v2438_v63  ;;  %v3638_v9 = vpack.c.bf16 %v1470_v15, %v1462_v1 }
 0x508   :  { %v3640_v7 = vpack.c.bf16 %v1469_v10, %v1461_v4 }
 0x509   :  { %3685 = vmatpush1.bf16.msra.mxu0 %v3684_v12  ;;  %v2442_v12 = vld [vmem:[#allocation25 + $0x1e8] sm:$0xff] }
 0x50a   :  { %3621 = vmatpush1.bf16.msra.mxu1 %v3620_v13  ;;  %3687 = vmatprep.subr.bf16.mxu0 %v3686_v16  ;;  %v2444_v13 = vld [vmem:[#allocation25 + $0x1f8] sm:$0xff]  ;;  %v1486_v16 = vld [vmem:[#allocation19 + $0xff8] sm:$0xff] }
 0x50b   :  { %3623 = vmatprep.subr.bf16.mxu1 %v3622_v24  ;;  %v1477_v24 = vld [vmem:[#allocation19 + $0xfb0] sm:$0xff]  ;;  %v3706_v18 = vpack.c.bf16 %v2444_v13, %v2442_v12  ;;  %v3642_v20 = vpack.c.bf16 %v1486_v16, %v1478_v14  ;;  %v4833_v16 = vld [vmem:[#allocation22] sm:$0xff] }
 0x50c   :  { %v2274_v29 = vrot.slane %v4833_v16, %v4735_v38 }
 0x50d   :  { %3689 = vmatpush1.bf16.msra.mxu0 %v3688_v23  ;;  %v2446_v23 = vld [vmem:[#allocation25 + $0x208] sm:$0xff] }
 0x50e   :  { %3625 = vmatpush1.bf16.msra.mxu1 %v3624_v25  ;;  %3691 = vmatprep.subr.bf16.mxu0 %v3690_v30  ;;  %v2448_v25 = vld [vmem:[#allocation25 + $0x218] sm:$0xff]  ;;  %v3644_v30 = vpack.c.bf16 %v1485_v22, %v1477_v24  ;;  %v2270_v24 = vrot.slane %v4833_v16, %v4732_v36 }
 0x50f   :  { %3627 = vmatprep.subr.bf16.mxu1 %v3626_v44  ;;  %v3710_v32 = vpack.c.bf16 %v2448_v25, %v2446_v23  ;;  %v1492_v44 = vrot.slane %v4825_v33, %v4732_v36 }
 0x511   :  { %3693 = vmatpush1.bf16.msra.mxu0 %v3692_v43  ;;  %v1596_v39 = vadd.f32 %v4820_v26, %v1492_v44 }
 0x512   :  { %3629 = vmatpush1.bf16.msra.mxu1 %v3628_v45  ;;  %3695 = vmatprep.subr.bf16.mxu0 %v3694_v47 }
 0x513   :  { %3631 = vmatprep.subr.bf16.mxu1 %v3630_v49 }
 0x515   :  { %3697 = vmatpush1.bf16.msra.mxu0 %v3696_v54 }
 0x516   :  { %3633 = vmatpush1.bf16.msra.mxu1 %v3632_v55  ;;  %3699 = vmatprep.subr.bf16.mxu0 %v3698_v58 }
 0x517   :  { %3635 = vmatprep.subr.bf16.mxu1 %v3634_v61 }
 0x519   :  { %3701 = vmatpush1.bf16.msra.mxu0 %v3700_v2 }
 0x51a   :  { %3637 = vmatpush1.bf16.msra.mxu1 %v3636_v3  ;;  %3703 = vmatprep.subr.bf16.mxu0 %v3702_v5 }
 0x51b   :  { %3639 = vmatprep.subr.bf16.mxu1 %v3638_v9 }
 0x51d   :  { %3705 = vmatpush1.bf16.msra.mxu0 %v3704_v17  ;;  %v4835_v17 = vld [vmem:[#allocation24] sm:$0xff] }
 0x51e   :  { %3641 = vmatpush1.bf16.msra.mxu1 %v3640_v7  ;;  %3707 = vmatprep.subr.bf16.mxu0 %v3706_v18  ;;  %v2320_v23 = vrot.slane %v4835_v17, %v4732_v36 }
 0x51f   :  { %3643 = vmatprep.subr.bf16.mxu1 %v3642_v20 }
 0x521   :  { %3709 = vmatpush1.bf16.msra.mxu0 %v3708_v28  ;;  %v2324_v28 = vrot.slane %v4835_v17, %v4735_v38 }
 0x522   :  { %3645 = vmatpush1.bf16.msra.mxu1 %v3644_v30  ;;  %3711 = vmatprep.subr.bf16.mxu0 %v3710_v32 }
 0x525   :  { %2091 = vmatmul.mubr.f32.vlgmr.msra.gmra.mrb[10].mxu1 %v4806_v27 }
 0x537   :  { %v1666_v41 = vpop.f32.mrb[2].mxu0 }
 0x538   :  { %v1667_v42 = vadd.f32 %v1666_v41, %v1596_v39  ;;  %v1668_v43 = vpop.f32.mrb[3].mxu0  ;;  %v2447_v41 = vld [vmem:[#allocation25 + $0x210] sm:$0xff] }
 0x539   :  { %v1669_v45 = vadd.f32 %v1668_v43, %v1598_v40  ;;  %v2445_v40 = vld [vmem:[#allocation25 + $0x200] sm:$0xff]  ;;  %v2450_v43 = vld [vmem:[#allocation25 + $0x228] sm:$0xff] }
 0x53a   :  { %v2097_v46 = vrot.slane %v1667_v42, 4  ;;  %v2153_v47 = vmul.f32 %v1667_v42, %v1667_v42 }
 0x53b   :  { %v2103_v31 = vrot.slane %v1669_v45, 4  ;;  %v2154_v27 = vmul.f32 %v1669_v45, %v1669_v45 }
 0x53c   :  { %v2098_v48 = vadd.f32 %v2097_v46, %v1667_v42  ;;  %v2161_v49 = vrot.slane %v2153_v47, 4 }
 0x53d   :  { %v2104_v21 = vadd.f32 %v2103_v31, %v1669_v45  ;;  %v2167_v50 = vrot.slane %v2154_v27, 4 }
 0x53e   :  { %v2099_v51 = vrot.slane %v2098_v48, 2  ;;  %v2162_v52 = vadd.f32 %v2161_v49, %v2153_v47  ;;  %v3712_v47 = vpack.c.bf16 %v2447_v41, %v2445_v40  ;;  %v2451_v49 = vld [vmem:[#allocation25 + $0x230] sm:$0xff] }
 0x53f   :  { %v2105_v53 = vrot.slane %v2104_v21, 2  ;;  %v2168_v54 = vadd.f32 %v2167_v50, %v2154_v27  ;;  %v2456_v50 = vld [vmem:[#allocation25 + $0x258] sm:$0xff]  ;;  %v2475_v40 = vld [vmem:[#allocation25 + $0x2f0] sm:$0xff] }
 0x540   :  { %v2100_v55 = vadd.f32 %v2099_v51, %v2098_v48  ;;  %v2163_v26 = vrot.slane %v2162_v52, 2  ;;  %v2449_v48 = vld [vmem:[#allocation25 + $0x220] sm:$0xff] }
 0x541   :  { %v2106_v57 = vadd.f32 %v2105_v53, %v2104_v21  ;;  %v2169_v34 = vrot.slane %v2168_v54, 2  ;;  %v2454_v21 = vld [vmem:[#allocation25 + $0x248] sm:$0xff]  ;;  %v3716_v51 = vpack.c.bf16 %v2451_v49, %v2449_v48  ;;  %v2453_v53 = vld [vmem:[#allocation25 + $0x240] sm:$0xff] }
 0x542   :  { %v2101_v58 = vrot.slane %v2100_v55, 1  ;;  %v2164_v60 = vadd.f32 %v2163_v26, %v2162_v52  ;;  %v3718_v52 = vpack.c.bf16 %v2456_v50, %v2454_v21  ;;  %v2460_v26 = vld [vmem:[#allocation25 + $0x278] sm:$0xff] }
 0x543   :  { %v2107_v11 = vrot.slane %v2106_v57, 1  ;;  %v2170_v61 = vadd.f32 %v2169_v34, %v2168_v54  ;;  %v2455_v54 = vld [vmem:[#allocation25 + $0x250] sm:$0xff] }
 0x544   :  { %v2102_v62 = vadd.f32 %v2101_v58, %v2100_v55  ;;  %v2165_v63 = vrot.slane %v2164_v60, 1  ;;  %v2458_v55 = vld [vmem:[#allocation25 + $0x268] sm:$0xff]  ;;  %v2457_v58 = vld [vmem:[#allocation25 + $0x260] sm:$0xff] }
 0x545   :  { %v2108_v0 = vadd.f32 %v2107_v11, %v2106_v57  ;;  %v2171_v1 = vrot.slane %v2170_v61, 1  ;;  %v3720_v57 = vpack.c.bf16 %v2455_v54, %v2453_v53  ;;  %v3722_v34 = vpack.c.bf16 %v2460_v26, %v2458_v55  ;;  %v2462_v11 = vld [vmem:[#allocation25 + $0x288] sm:$0xff]  ;;  %v2484_v26 = vld [vmem:[#allocation25 + $0x338] sm:$0xff] }
 0x546   :  { %v2145_v15 = vmul.f32 0.125, %v2102_v62  ;;  %v2166_v2 = vadd.f32 %v2165_v63, %v2164_v60  ;;  %v2459_v60 = vld [vmem:[#allocation25 + $0x270] sm:$0xff]  ;;  %v2482_v55 = vld [vmem:[#allocation25 + $0x328] sm:$0xff] }
 0x547   :  { %v2146_v3 = vmul.f32 0.125, %v2108_v0  ;;  %v2172_v4 = vadd.f32 %v2171_v1, %v2170_v61  ;;  %v2464_v61 = vld [vmem:[#allocation25 + $0x298] sm:$0xff]  ;;  %v3724_v62 = vpack.c.bf16 %v2459_v60, %v2457_v58  ;;  %v2461_v0 = vld [vmem:[#allocation25 + $0x280] sm:$0xff]  ;;  %v2463_v1 = vld [vmem:[#allocation25 + $0x290] sm:$0xff] }
 0x548   :  { %v2209_v5 = vmul.f32 0.125, %v2166_v2  ;;  %v2217_v6 = vmul.f32 %v2145_v15, %v2145_v15  ;;  %v2233_v7 = vsub.f32 %v1667_v42, %v2145_v15  ;;  %v3726_v63 = vpack.c.bf16 %v2464_v61, %v2462_v11  ;;  %v2466_v15 = vld [vmem:[#allocation25 + $0x2a8] sm:$0xff]  ;;  %v2468_v2 = vld [vmem:[#allocation25 + $0x2b8] sm:$0xff] }
 0x549   :  { %v2210_v8 = vmul.f32 0.125, %v2172_v4  ;;  %v2218_v9 = vmul.f32 %v2146_v3, %v2146_v3  ;;  %v2234_v19 = vsub.f32 %v1669_v45, %v2146_v3  ;;  %v2452_v45 = vld [vmem:[#allocation25 + $0x238] sm:$0xff]  ;;  %v3728_v3 = vpack.c.bf16 %v2463_v1, %v2461_v0  ;;  %v2481_v0 = vld [vmem:[#allocation25 + $0x320] sm:$0xff]  ;;  %v2483_v1 = vld [vmem:[#allocation25 + $0x330] sm:$0xff] }
 0x54a   :  { %v2225_v10 = vsub.f32 %v2209_v5, %v2217_v6  ;;  %v3714_v27 = vpack.c.bf16 %v2452_v45, %v2450_v43  ;;  %v3730_v4 = vpack.c.bf16 %v2468_v2, %v2466_v15  ;;  %v2465_v5 = vld [vmem:[#allocation25 + $0x2a0] sm:$0xff]  ;;  %v2467_v6 = vld [vmem:[#allocation25 + $0x2b0] sm:$0xff]  ;;  %v2478_v43 = vld [vmem:[#allocation25 + $0x308] sm:$0xff] }
 0x54b   :  { %v2226_v12 = vsub.f32 %v2210_v8, %v2218_v9  ;;  %v1500_v8 = vrot.slane %v4825_v33, %v4773_v56  ;;  %v2470_v9 = vld [vmem:[#allocation25 + $0x2c8] sm:$0xff]  ;;  %v2480_v45 = vld [vmem:[#allocation25 + $0x318] sm:$0xff] }
 0x54c   :  { %v2241_v13 = vadd.f32 0.8, %v2225_v10  ;;  %v2472_v10 = vld [vmem:[#allocation25 + $0x2d8] sm:$0xff]  ;;  %v3742_v50 = vpack.c.bf16 %v2480_v45, %v2478_v43 }
 0x54d   :  { %v2242_v14 = vadd.f32 0.8, %v2226_v12  ;;  %v1504_v12 = vrot.slane %v4825_v33, %v4776_v59  ;;  %v2496_v43 = vld [vmem:[#allocation25 + $0x398] sm:$0xff] }
 0x54e   :  { %3966 = vrsqrt.f32 %v2241_v13  ;;  %v3732_v13 = vpack.c.bf16 %v2467_v6, %v2465_v5 }
 0x54f   :  { %3968 = vrsqrt.f32 %v2242_v14 }
 0x558   :  { %v3967_v18 = vpop.eup %3966 }
 0x559   :  { %v3969_v20 = vpop.eup %3968  ;;  %v2257_v22 = vmul.f32 %v3967_v18, %v2233_v7  ;;  %v3734_v7 = vpack.c.bf16 %v2472_v10, %v2470_v9  ;;  %v2471_v18 = vld [vmem:[#allocation25 + $0x2d0] sm:$0xff]  ;;  %v3748_v10 = vpack.c.bf16 %v2483_v1, %v2481_v0  ;;  %v2282_v0 = vrot.slane %v4833_v16, %v4776_v59 }
 0x55a   :  { %v2258_v25 = vmul.f32 %v3969_v20, %v2234_v19  ;;  %v2474_v20 = vld [vmem:[#allocation25 + $0x2e8] sm:$0xff] }
 0x55b   :  { %v2307_v30 = vmul.f32 %v2270_v24, %v2257_v22  ;;  %v2469_v24 = vld [vmem:[#allocation25 + $0x2c0] sm:$0xff]  ;;  %v2476_v22 = vld [vmem:[#allocation25 + $0x2f8] sm:$0xff] }
 0x55c   :  { %v2308_v32 = vmul.f32 %v2274_v29, %v2258_v25 }
 0x55d   :  { %v2357_v44 = vadd.f32 %v2320_v23, %v2307_v30  ;;  %v3736_v30 = vpack.c.bf16 %v2471_v18, %v2469_v24  ;;  %v2487_v24 = vld [vmem:[#allocation25 + $0x350] sm:$0xff] }
 0x55e   :  { %v2358_v37 = vadd.f32 %v2324_v28, %v2308_v32 }
 0x55f   :  { %v2365_v39 = vmul.f32 0.2, %v2357_v44 }
 0x560   :  { %v2366_v42 = vmul.f32 0.2, %v2358_v37 }
 0x561   :  { %v2373_v31 = vmax.f32 %v2357_v44, %v2365_v39  ;;  %v2473_v39 = vld [vmem:[#allocation25 + $0x2e0] sm:$0xff] }
 0x562   :  { %v2374_v46 = vmax.f32 %v2358_v37, %v2366_v42  ;;  %v3738_v37 = vpack.c.bf16 %v2476_v22, %v2474_v20  ;;  %v3740_v48 = vpack.c.bf16 %v2475_v40, %v2473_v39  ;;  %v2490_v20 = vld [vmem:[#allocation25 + $0x368] sm:$0xff]  ;;  %v2492_v22 = vld [vmem:[#allocation25 + $0x378] sm:$0xff]  ;;  %v2489_v39 = vld [vmem:[#allocation25 + $0x360] sm:$0xff] }
 0x563   :  { %v2491_v40 = vld [vmem:[#allocation25 + $0x370] sm:$0xff] }
 0x564   :  { %2713 = vmatprep.mubr.f32.mxu0 %v2374_v46 }
 0x565   :  { %2714 = vmatmul.mubr.f32.vlgmr.msra.gmra.mrb[6].mxu0 %v2373_v31 }
 0x566   :  { %3713 = vmatpush1.bf16.msra.mxu0 %v3712_v47 }
 0x567   :  { %3715 = vmatprep.subr.bf16.mxu0 %v3714_v27 }
 0x56a   :  { %3717 = vmatpush1.bf16.msra.mxu0 %v3716_v51  ;;  %v2477_v51 = vld [vmem:[#allocation25 + $0x300] sm:$0xff] }
 0x56b   :  { %3719 = vmatprep.subr.bf16.mxu0 %v3718_v52  ;;  %v2479_v52 = vld [vmem:[#allocation25 + $0x310] sm:$0xff] }
 0x56c   :  { %v3744_v11 = vpack.c.bf16 %v2479_v52, %v2477_v51  ;;  %v2497_v51 = vld [vmem:[#allocation25 + $0x3a0] sm:$0xff]  ;;  %v2499_v52 = vld [vmem:[#allocation25 + $0x3b0] sm:$0xff] }
 0x56e   :  { %3721 = vmatpush1.bf16.msra.mxu0 %v3720_v57 }
 0x56f   :  { %3723 = vmatprep.subr.bf16.mxu0 %v3722_v34 }
 0x572   :  { %3725 = vmatpush1.bf16.msra.mxu0 %v3724_v62 }
 0x573   :  { %3727 = vmatprep.subr.bf16.mxu0 %v3726_v63  ;;  %v3746_v63 = vpack.c.bf16 %v2484_v26, %v2482_v55  ;;  %v3764_v55 = vpack.c.bf16 %v2499_v52, %v2497_v51 }
 0x576   :  { %3729 = vmatpush1.bf16.msra.mxu0 %v3728_v3  ;;  %v2486_v3 = vld [vmem:[#allocation25 + $0x348] sm:$0xff] }
 0x577   :  { %v1808_v14 = vpop.f32.mrb[8].mxu1  ;;  %3731 = vmatprep.subr.bf16.mxu0 %v3730_v4  ;;  %v2488_v4 = vld [vmem:[#allocation25 + $0x358] sm:$0xff] }
 0x578   :  { %v4849_v19 = vadd.f32 %v1808_v14, %v1500_v8  ;;  %v1810_v29 = vpop.f32.mrb[9].mxu1  ;;  %v3750_v14 = vpack.c.bf16 %v2488_v4, %v2486_v3  ;;  %v2332_v4 = vrot.slane %v4835_v17, %v4776_v59  ;;  %v2516_v59 = vld [vmem:[#allocation25 + $0x438] sm:$0xff] }
 0x579   :  { %v4851_v23 = vadd.f32 %v1810_v29, %v1504_v12 }
 0x57a   :  { %v2109_v25 = vrot.slane %v4849_v19, 4  ;;  %v2155_v28 = vmul.f32 %v4849_v19, %v4849_v19  ;;  %3733 = vmatpush1.bf16.msra.mxu0 %v3732_v13 }
 0x57b   :  { %v2115_v32 = vrot.slane %v4851_v23, 4  ;;  %v2156_v44 = vmul.f32 %v4851_v23, %v4851_v23  ;;  %3735 = vmatprep.subr.bf16.mxu0 %v3734_v7  ;;  %v2485_v7 = vld [vmem:[#allocation25 + $0x340] sm:$0xff] }
 0x57c   :  { %v2110_v41 = vadd.f32 %v4849_v19, %v2109_v25  ;;  %v2173_v42 = vrot.slane %v2155_v28, 4 }
 0x57d   :  { %v2116_v46 = vadd.f32 %v4851_v23, %v2115_v32  ;;  %v2179_v47 = vrot.slane %v2156_v44, 4  ;;  %v3752_v32 = vpack.c.bf16 %v2487_v24, %v2485_v7 }
 0x57e   :  { %v2111_v31 = vrot.slane %v2110_v41, 2  ;;  %v2174_v27 = vadd.f32 %v2173_v42, %v2155_v28  ;;  %3737 = vmatpush1.bf16.msra.mxu0 %v3736_v30  ;;  %v2494_v42 = vld [vmem:[#allocation25 + $0x388] sm:$0xff] }
 0x57f   :  { %v2117_v49 = vrot.slane %v2116_v46, 2  ;;  %v2180_v21 = vadd.f32 %v2179_v47, %v2156_v44  ;;  %3739 = vmatprep.subr.bf16.mxu0 %v3738_v37  ;;  %v3754_v37 = vpack.c.bf16 %v2492_v22, %v2490_v20  ;;  %v3758_v47 = vpack.c.bf16 %v2496_v43, %v2494_v42  ;;  %v2514_v22 = vld [vmem:[#allocation25 + $0x428] sm:$0xff]  ;;  %v2517_v43 = vld [vmem:[#allocation25 + $0x440] sm:$0xff] }
 0x580   :  { %v2112_v53 = vadd.f32 %v2111_v31, %v2110_v41  ;;  %v2175_v54 = vrot.slane %v2174_v27, 2  ;;  %v2493_v31 = vld [vmem:[#allocation25 + $0x380] sm:$0xff] }
 0x581   :  { %v2118_v57 = vadd.f32 %v2117_v49, %v2116_v46  ;;  %v2181_v34 = vrot.slane %v2180_v21, 2  ;;  %v3756_v46 = vpack.c.bf16 %v2491_v40, %v2489_v39  ;;  %v2500_v49 = vld [vmem:[#allocation25 + $0x3b8] sm:$0xff]  ;;  %v2518_v39 = vld [vmem:[#allocation25 + $0x448] sm:$0xff] }
 0x582   :  { %v2113_v58 = vrot.slane %v2112_v53, 1  ;;  %v2176_v60 = vadd.f32 %v2175_v54, %v2174_v27  ;;  %3741 = vmatpush1.bf16.msra.mxu0 %v3740_v48  ;;  %v2495_v27 = vld [vmem:[#allocation25 + $0x390] sm:$0xff]  ;;  %v2498_v48 = vld [vmem:[#allocation25 + $0x3a8] sm:$0xff]  ;;  %v2504_v54 = vld [vmem:[#allocation25 + $0x3d8] sm:$0xff] }
 0x583   :  { %v2119_v61 = vrot.slane %v2118_v57, 1  ;;  %v2182_v62 = vadd.f32 %v2181_v34, %v2180_v21  ;;  %3743 = vmatprep.subr.bf16.mxu0 %v3742_v50  ;;  %v3760_v21 = vpack.c.bf16 %v2495_v27, %v2493_v31  ;;  %v3762_v50 = vpack.c.bf16 %v2500_v49, %v2498_v48  ;;  %v2501_v34 = vld [vmem:[#allocation25 + $0x3c0] sm:$0xff]  ;;  %v2520_v40 = vld [vmem:[#allocation25 + $0x458] sm:$0xff]  ;;  %v2523_v49 = vld [vmem:[#allocation25 + $0x470] sm:$0xff] }
 0x584   :  { %v2114_v15 = vadd.f32 %v2113_v58, %v2112_v53  ;;  %v2177_v2 = vrot.slane %v2176_v60, 1  ;;  %v2502_v53 = vld [vmem:[#allocation25 + $0x3c8] sm:$0xff]  ;;  %v2503_v58 = vld [vmem:[#allocation25 + $0x3d0] sm:$0xff]  ;;  %v3782_v42 = vpack.c.bf16 %v2520_v40, %v2518_v39  ;;  %v2521_v48 = vld [vmem:[#allocation25 + $0x460] sm:$0xff] }
 0x585   :  { %v2120_v5 = vadd.f32 %v2119_v61, %v2118_v57  ;;  %v2183_v6 = vrot.slane %v2182_v62, 1  ;;  %v3766_v57 = vpack.c.bf16 %v2504_v54, %v2502_v53  ;;  %v3788_v51 = vpack.c.bf16 %v2523_v49, %v2521_v48  ;;  %v2525_v53 = vld [vmem:[#allocation25 + $0x480] sm:$0xff]  ;;  %v2527_v54 = vld [vmem:[#allocation25 + $0x490] sm:$0xff] }
 0x586   :  { %v2147_v8 = vmul.f32 0.125, %v2114_v15  ;;  %v2178_v9 = vadd.f32 %v2177_v2, %v2176_v60  ;;  %3745 = vmatpush1.bf16.msra.mxu0 %v3744_v11  ;;  %v2278_v60 = vrot.slane %v4833_v16, %v4773_v56  ;;  %v3768_v2 = vpack.c.bf16 %v2503_v58, %v2501_v34 }
 0x587   :  { %v2148_v12 = vmul.f32 0.125, %v2120_v5  ;;  %v2184_v13 = vadd.f32 %v2183_v6, %v2182_v62  ;;  %3747 = vmatprep.subr.bf16.mxu0 %v3746_v63  ;;  %v2506_v62 = vld [vmem:[#allocation25 + $0x3e8] sm:$0xff]  ;;  %v2508_v63 = vld [vmem:[#allocation25 + $0x3f8] sm:$0xff]  ;;  %v2505_v6 = vld [vmem:[#allocation25 + $0x3e0] sm:$0xff]  ;;  %v4875_v34 = vsub.s32 5, %v4729_v35  ;;  %v3792_v58 = vpack.c.bf16 %v2527_v54, %v2525_v53 }
 0x588   :  { %v2211_v18 = vmul.f32 0.125, %v2178_v9  ;;  %v2219_v29 = vmul.f32 %v2147_v8, %v2147_v8  ;;  %v2235_v26 = vsub.f32 %v4849_v19, %v2147_v8  ;;  %v2328_v19 = vrot.slane %v4835_v17, %v4773_v56  ;;  %v2545_v53 = vld [vmem:[#allocation25 + $0x520] sm:$0xff]  ;;  %v2547_v54 = vld [vmem:[#allocation25 + $0x530] sm:$0xff] }
 0x589   :  { %v2212_v25 = vmul.f32 0.125, %v2184_v13  ;;  %v2220_v28 = vmul.f32 %v2148_v12, %v2148_v12  ;;  %v2236_v61 = vsub.f32 %v4851_v23, %v2148_v12  ;;  %v3770_v5 = vpack.c.bf16 %v2508_v63, %v2506_v62  ;;  %v2507_v23 = vld [vmem:[#allocation25 + $0x3f0] sm:$0xff]  ;;  %v2512_v12 = vld [vmem:[#allocation25 + $0x418] sm:$0xff]  ;;  %v2534_v63 = vld [vmem:[#allocation25 + $0x4c8] sm:$0xff] }
 0x58a   :  { %v2227_v30 = vsub.f32 %v2211_v18, %v2219_v29  ;;  %3749 = vmatpush1.bf16.msra.mxu0 %v3748_v10  ;;  %v2510_v10 = vld [vmem:[#allocation25 + $0x408] sm:$0xff]  ;;  %v2509_v18 = vld [vmem:[#allocation25 + $0x400] sm:$0xff]  ;;  %v2511_v29 = vld [vmem:[#allocation25 + $0x410] sm:$0xff] }
 0x58b   :  { %v2228_v44 = vsub.f32 %v2212_v25, %v2220_v28  ;;  %3751 = vmatprep.subr.bf16.mxu0 %v3750_v14  ;;  %v3772_v14 = vpack.c.bf16 %v2507_v23, %v2505_v6  ;;  %v3774_v56 = vpack.c.bf16 %v2512_v12, %v2510_v10  ;;  %v3776_v28 = vpack.c.bf16 %v2511_v29, %v2509_v18  ;;  %v2538_v23 = vld [vmem:[#allocation25 + $0x4e8] sm:$0xff]  ;;  %v2539_v18 = vld [vmem:[#allocation25 + $0x4f0] sm:$0xff] }
 0x58c   :  { %v2243_v41 = vadd.f32 0.8, %v2227_v30 }
 0x58d   :  { %v2244_v45 = vadd.f32 0.8, %v2228_v44  ;;  %v2513_v44 = vld [vmem:[#allocation25 + $0x420] sm:$0xff] }
 0x58e   :  { %3970 = vrsqrt.f32 %v2243_v41  ;;  %3753 = vmatpush1.bf16.msra.mxu0 %v3752_v32  ;;  %v3778_v32 = vpack.c.bf16 %v2516_v59, %v2514_v22  ;;  %v2542_v22 = vld [vmem:[#allocation25 + $0x508] sm:$0xff]  ;;  %v2544_v59 = vld [vmem:[#allocation25 + $0x518] sm:$0xff] }
 0x58f   :  { %3972 = vrsqrt.f32 %v2244_v45  ;;  %3755 = vmatprep.subr.bf16.mxu0 %v3754_v37  ;;  %v2515_v37 = vld [vmem:[#allocation25 + $0x430] sm:$0xff]  ;;  %v3806_v40 = vpack.c.bf16 %v2544_v59, %v2542_v22  ;;  %v2560_v22 = vld [vmem:[#allocation25 + $0x598] sm:$0xff] }
 0x590   :  { %v3780_v41 = vpack.c.bf16 %v2515_v37, %v2513_v44  ;;  %v2519_v45 = vld [vmem:[#allocation25 + $0x450] sm:$0xff] }
 0x591   :  { %v3784_v31 = vpack.c.bf16 %v2519_v45, %v2517_v43 }
 0x592   :  { %3757 = vmatpush1.bf16.msra.mxu0 %v3756_v46  ;;  %v2522_v46 = vld [vmem:[#allocation25 + $0x468] sm:$0xff] }
 0x593   :  { %3759 = vmatprep.subr.bf16.mxu0 %v3758_v47  ;;  %v2524_v47 = vld [vmem:[#allocation25 + $0x478] sm:$0xff] }
 0x594   :  { %v3786_v27 = vpack.c.bf16 %v2524_v47, %v2522_v46  ;;  %v2546_v46 = vld [vmem:[#allocation25 + $0x528] sm:$0xff]  ;;  %v2548_v47 = vld [vmem:[#allocation25 + $0x538] sm:$0xff] }
 0x596   :  { %3761 = vmatpush1.bf16.msra.mxu0 %v3760_v21  ;;  %v2526_v21 = vld [vmem:[#allocation25 + $0x488] sm:$0xff] }
 0x597   :  { %3763 = vmatprep.subr.bf16.mxu0 %v3762_v50  ;;  %v2528_v50 = vld [vmem:[#allocation25 + $0x498] sm:$0xff] }
 0x598   :  { %v3971_v11 = vpop.eup %3970  ;;  %v3790_v52 = vpack.c.bf16 %v2528_v50, %v2526_v21 }
 0x599   :  { %v3973_v1 = vpop.eup %3972  ;;  %v2259_v15 = vmul.f32 %v3971_v11, %v2235_v26  ;;  %v2530_v26 = vld [vmem:[#allocation25 + $0x4a8] sm:$0xff]  ;;  %v2529_v11 = vld [vmem:[#allocation25 + $0x4a0] sm:$0xff] }
 0x59a   :  { %3765 = vmatpush1.bf16.msra.mxu0 %v3764_v55  ;;  %v2260_v3 = vmul.f32 %v3973_v1, %v2236_v61  ;;  %v4872_v55 = vsub.s32 4, %v4729_v35  ;;  %v2531_v61 = vld [vmem:[#allocation25 + $0x4b0] sm:$0xff]  ;;  %v1512_v1 = vrot.slane %v4825_v33, %v4875_v34 }
 0x59b   :  { %3767 = vmatprep.subr.bf16.mxu0 %v3766_v57  ;;  %v2309_v8 = vmul.f32 %v2278_v60, %v2259_v15  ;;  %v2532_v57 = vld [vmem:[#allocation25 + $0x4b8] sm:$0xff]  ;;  %v3796_v15 = vpack.c.bf16 %v2531_v61, %v2529_v11 }
 0x59c   :  { %v2310_v9 = vmul.f32 %v2282_v0, %v2260_v3  ;;  %v3794_v60 = vpack.c.bf16 %v2532_v57, %v2530_v26  ;;  %v1508_v62 = vrot.slane %v4825_v33, %v4872_v55  ;;  %v2536_v0 = vld [vmem:[#allocation25 + $0x4d8] sm:$0xff]  ;;  %v2533_v3 = vld [vmem:[#allocation25 + $0x4c0] sm:$0xff] }
 0x59d   :  { %v2359_v13 = vadd.f32 %v2328_v19, %v2309_v8  ;;  %v2540_v8 = vld [vmem:[#allocation25 + $0x4f8] sm:$0xff] }
 0x59e   :  { %3769 = vmatpush1.bf16.msra.mxu0 %v3768_v2  ;;  %v2360_v7 = vadd.f32 %v2332_v4, %v2310_v9  ;;  %v3798_v2 = vpack.c.bf16 %v2536_v0, %v2534_v63  ;;  %v2535_v4 = vld [vmem:[#allocation25 + $0x4d0] sm:$0xff]  ;;  %v3812_v0 = vpack.c.bf16 %v2547_v54, %v2545_v53  ;;  %v2290_v53 = vrot.slane %v4833_v16, %v4875_v34 }
 0x59f   :  { %3771 = vmatprep.subr.bf16.mxu0 %v3770_v5  ;;  %v2367_v24 = vmul.f32 0.2, %v2359_v13 }
 0x5a0   :  { %v2368_v20 = vmul.f32 0.2, %v2360_v7 }
 0x5a1   :  { %v2375_v30 = vmax.f32 %v2359_v13, %v2367_v24  ;;  %v3800_v13 = vpack.c.bf16 %v2535_v4, %v2533_v3  ;;  %v2537_v24 = vld [vmem:[#allocation25 + $0x4e0] sm:$0xff]  ;;  %v2551_v3 = vld [vmem:[#allocation25 + $0x550] sm:$0xff] }
 0x5a2   :  { %3773 = vmatpush1.bf16.msra.mxu0 %v3772_v14  ;;  %v2376_v25 = vmax.f32 %v2360_v7, %v2368_v20  ;;  %v3804_v44 = vpack.c.bf16 %v2539_v18, %v2537_v24  ;;  %v2553_v24 = vld [vmem:[#allocation25 + $0x560] sm:$0xff]  ;;  %v2555_v18 = vld [vmem:[#allocation25 + $0x570] sm:$0xff] }
 0x5a3   :  { %3775 = vmatprep.subr.bf16.mxu0 %v3774_v56  ;;  %v3802_v56 = vpack.c.bf16 %v2540_v8, %v2538_v23  ;;  %v2554_v23 = vld [vmem:[#allocation25 + $0x568] sm:$0xff]  ;;  %v2556_v8 = vld [vmem:[#allocation25 + $0x578] sm:$0xff] }
 0x5a4   :  { %2784 = vmatprep.mubr.f32.mxu0 %v2376_v25 }
 0x5a5   :  { %2785 = vmatmul.mubr.f32.vlgmr.msra.gmra.mrb[6].mxu0 %v2375_v30 }
 0x5a6   :  { %3777 = vmatpush1.bf16.msra.mxu0 %v3776_v28 }
 0x5a7   :  { %3779 = vmatprep.subr.bf16.mxu0 %v3778_v32 }
 0x5aa   :  { %3781 = vmatpush1.bf16.msra.mxu0 %v3780_v41  ;;  %v2541_v41 = vld [vmem:[#allocation25 + $0x500] sm:$0xff] }
 0x5ab   :  { %3783 = vmatprep.subr.bf16.mxu0 %v3782_v42  ;;  %v2543_v42 = vld [vmem:[#allocation25 + $0x510] sm:$0xff] }
 0x5ac   :  { %v3808_v21 = vpack.c.bf16 %v2543_v42, %v2541_v41  ;;  %v2561_v41 = vld [vmem:[#allocation25 + $0x5a0] sm:$0xff]  ;;  %v2563_v42 = vld [vmem:[#allocation25 + $0x5b0] sm:$0xff] }
 0x5ae   :  { %3785 = vmatpush1.bf16.msra.mxu0 %v3784_v31 }
 0x5af   :  { %3787 = vmatprep.subr.bf16.mxu0 %v3786_v27 }
 0x5b2   :  { %3789 = vmatpush1.bf16.msra.mxu0 %v3788_v51 }
 0x5b3   :  { %3791 = vmatprep.subr.bf16.mxu0 %v3790_v52  ;;  %v3810_v52 = vpack.c.bf16 %v2548_v47, %v2546_v46  ;;  %v3828_v46 = vpack.c.bf16 %v2563_v42, %v2561_v41  ;;  %v2589_v41 = vld [vmem:[#allocation25 + $0x680] sm:$0xff]  ;;  %v2591_v42 = vld [vmem:[#allocation25 + $0x690] sm:$0xff] }
 0x5b6   :  { %3793 = vmatpush1.bf16.msra.mxu0 %v3792_v58  ;;  %v2550_v58 = vld [vmem:[#allocation25 + $0x548] sm:$0xff] }
 0x5b7   :  { %v1950_v19 = vpop.f32.mrb[4].mxu0  ;;  %3795 = vmatprep.subr.bf16.mxu0 %v3794_v60  ;;  %v2552_v60 = vld [vmem:[#allocation25 + $0x558] sm:$0xff] }
 0x5b8   :  { %v4881_v5 = vadd.f32 %v1950_v19, %v1508_v62  ;;  %v1952_v6 = vpop.f32.mrb[5].mxu0  ;;  %v3814_v19 = vpack.c.bf16 %v2552_v60, %v2550_v58  ;;  %v2340_v60 = vrot.slane %v4835_v17, %v4875_v34 }
 0x5b9   :  { %v4883_v9 = vadd.f32 %v1952_v6, %v1512_v1 }
 0x5ba   :  { %v2121_v10 = vrot.slane %v4881_v5, 4  ;;  %v2157_v12 = vmul.f32 %v4881_v5, %v4881_v5  ;;  %3797 = vmatpush1.bf16.msra.mxu0 %v3796_v15 }
 0x5bb   :  { %v2127_v14 = vrot.slane %v4883_v9, 4  ;;  %v2158_v7 = vmul.f32 %v4883_v9, %v4883_v9  ;;  %3799 = vmatprep.subr.bf16.mxu0 %v3798_v2  ;;  %v2549_v2 = vld [vmem:[#allocation25 + $0x540] sm:$0xff] }
 0x5bc   :  { %v2122_v29 = vadd.f32 %v4881_v5, %v2121_v10  ;;  %v2185_v20 = vrot.slane %v2157_v12, 4 }
 0x5bd   :  { %v2128_v25 = vadd.f32 %v4883_v9, %v2127_v14  ;;  %v2191_v28 = vrot.slane %v2158_v7, 4  ;;  %v3816_v14 = vpack.c.bf16 %v2551_v3, %v2549_v2  ;;  %v2573_v3 = vld [vmem:[#allocation25 + $0x600] sm:$0xff] }
 0x5be   :  { %v2123_v30 = vrot.slane %v2122_v29, 2  ;;  %v2186_v32 = vadd.f32 %v2185_v20, %v2157_v12  ;;  %3801 = vmatpush1.bf16.msra.mxu0 %v3800_v13  ;;  %v2558_v20 = vld [vmem:[#allocation25 + $0x588] sm:$0xff] }
 0x5bf   :  { %v2129_v37 = vrot.slane %v2128_v25, 2  ;;  %v2192_v39 = vadd.f32 %v2191_v28, %v2158_v7  ;;  %3803 = vmatprep.subr.bf16.mxu0 %v3802_v56  ;;  %v3818_v56 = vpack.c.bf16 %v2556_v8, %v2554_v23  ;;  %v3822_v28 = vpack.c.bf16 %v2560_v22, %v2558_v20  ;;  %v2578_v23 = vld [vmem:[#allocation25 + $0x628] sm:$0xff]  ;;  %v2583_v20 = vld [vmem:[#allocation25 + $0x650] sm:$0xff] }
 0x5c0   :  { %v2124_v43 = vadd.f32 %v2123_v30, %v2122_v29  ;;  %v2187_v45 = vrot.slane %v2186_v32, 2  ;;  %v2557_v30 = vld [vmem:[#allocation25 + $0x580] sm:$0xff]  ;;  %v2586_v22 = vld [vmem:[#allocation25 + $0x668] sm:$0xff] }
 0x5c1   :  { %v2130_v31 = vadd.f32 %v2129_v37, %v2128_v25  ;;  %v2193_v27 = vrot.slane %v2192_v39, 2  ;;  %v3820_v25 = vpack.c.bf16 %v2555_v18, %v2553_v24  ;;  %v2564_v37 = vld [vmem:[#allocation25 + $0x5b8] sm:$0xff] }
 0x5c2   :  { %v2125_v48 = vrot.slane %v2124_v43, 1  ;;  %v2188_v49 = vadd.f32 %v2187_v45, %v2186_v32  ;;  %3805 = vmatpush1.bf16.msra.mxu0 %v3804_v44  ;;  %v2559_v32 = vld [vmem:[#allocation25 + $0x590] sm:$0xff]  ;;  %v2562_v44 = vld [vmem:[#allocation25 + $0x5a8] sm:$0xff]  ;;  %v2568_v45 = vld [vmem:[#allocation25 + $0x5d8] sm:$0xff] }
 0x5c3   :  { %v2131_v50 = vrot.slane %v2130_v31, 1  ;;  %v2194_v51 = vadd.f32 %v2193_v27, %v2192_v39  ;;  %3807 = vmatprep.subr.bf16.mxu0 %v3806_v40  ;;  %v3824_v39 = vpack.c.bf16 %v2559_v32, %v2557_v30  ;;  %v3826_v40 = vpack.c.bf16 %v2564_v37, %v2562_v44  ;;  %v2585_v30 = vld [vmem:[#allocation25 + $0x660] sm:$0xff]  ;;  %v2587_v32 = vld [vmem:[#allocation25 + $0x670] sm:$0xff]  ;;  %v2590_v44 = vld [vmem:[#allocation25 + $0x688] sm:$0xff] }
 0x5c4   :  { %v2126_v26 = vadd.f32 %v2125_v48, %v2124_v43  ;;  %v2189_v57 = vrot.slane %v2188_v49, 1  ;;  %v2566_v43 = vld [vmem:[#allocation25 + $0x5c8] sm:$0xff]  ;;  %v2565_v48 = vld [vmem:[#allocation25 + $0x5c0] sm:$0xff]  ;;  %v2592_v37 = vld [vmem:[#allocation25 + $0x698] sm:$0xff] }
 0x5c5   :  { %v2132_v11 = vadd.f32 %v2131_v50, %v2130_v31  ;;  %v2195_v61 = vrot.slane %v2194_v51, 1  ;;  %v2286_v31 = vrot.slane %v4833_v16, %v4872_v55  ;;  %v3830_v27 = vpack.c.bf16 %v2568_v45, %v2566_v43  ;;  %v2594_v43 = vld [vmem:[#allocation25 + $0x6a8] sm:$0xff]  ;;  %v2596_v45 = vld [vmem:[#allocation25 + $0x6b8] sm:$0xff] }
 0x5c6   :  { %v2149_v62 = vmul.f32 0.125, %v2126_v26  ;;  %v2190_v63 = vadd.f32 %v2189_v57, %v2188_v49  ;;  %3809 = vmatpush1.bf16.msra.mxu0 %v3808_v21  ;;  %v2567_v49 = vld [vmem:[#allocation25 + $0x5d0] sm:$0xff] }
 0x5c7   :  { %v2150_v1 = vmul.f32 0.125, %v2132_v11  ;;  %v2196_v15 = vadd.f32 %v2195_v61, %v2194_v51  ;;  %3811 = vmatprep.subr.bf16.mxu0 %v3810_v52  ;;  %v2570_v51 = vld [vmem:[#allocation25 + $0x5e8] sm:$0xff]  ;;  %v2572_v52 = vld [vmem:[#allocation25 + $0x5f8] sm:$0xff]  ;;  %v3832_v57 = vpack.c.bf16 %v2567_v49, %v2565_v48  ;;  %v2569_v61 = vld [vmem:[#allocation25 + $0x5e0] sm:$0xff] }
 0x5c8   :  { %v2213_v4 = vmul.f32 0.125, %v2190_v63  ;;  %v2221_v6 = vmul.f32 %v2149_v62, %v2149_v62  ;;  %v2237_v47 = vsub.f32 %v4881_v5, %v2149_v62  ;;  %v2336_v5 = vrot.slane %v4835_v17, %v4872_v55  ;;  %v2580_v17 = vld [vmem:[#allocation25 + $0x638] sm:$0xff]  ;;  %v2593_v48 = vld [vmem:[#allocation25 + $0x6a0] sm:$0xff]  ;;  %v2595_v49 = vld [vmem:[#allocation25 + $0x6b0] sm:$0xff] }
 0x5c9   :  { %v2214_v10 = vmul.f32 0.125, %v2196_v15  ;;  %v2222_v12 = vmul.f32 %v2150_v1, %v2150_v1  ;;  %v2238_v50 = vsub.f32 %v4883_v9, %v2150_v1  ;;  %v3834_v11 = vpack.c.bf16 %v2572_v52, %v2570_v51  ;;  %v2571_v9 = vld [vmem:[#allocation25 + $0x5f0] sm:$0xff]  ;;  %v2576_v1 = vld [vmem:[#allocation25 + $0x618] sm:$0xff] }
 0x5ca   :  { %v2229_v13 = vsub.f32 %v2213_v4, %v2221_v6  ;;  %3813 = vmatpush1.bf16.msra.mxu0 %v3812_v0  ;;  %v2574_v0 = vld [vmem:[#allocation25 + $0x608] sm:$0xff]  ;;  %v3836_v15 = vpack.c.bf16 %v2571_v9, %v2569_v61  ;;  %v2575_v4 = vld [vmem:[#allocation25 + $0x610] sm:$0xff] }
 0x5cb   :  { %v2230_v7 = vsub.f32 %v2214_v10, %v2222_v12  ;;  %3815 = vmatprep.subr.bf16.mxu0 %v3814_v19  ;;  %v3838_v2 = vpack.c.bf16 %v2576_v1, %v2574_v0  ;;  %v3840_v8 = vpack.c.bf16 %v2575_v4, %v2573_v3  ;;  %v3842_v12 = vpack.c.bf16 %v2580_v17, %v2578_v23  ;;  %v2601_v0 = vld [vmem:[#allocation25 + $0x6e0] sm:$0xff]  ;;  %v2603_v1 = vld [vmem:[#allocation25 + $0x6f0] sm:$0xff] }
 0x5cc   :  { %v2245_v29 = vadd.f32 0.8, %v2229_v13  ;;  %v2577_v13 = vld [vmem:[#allocation25 + $0x620] sm:$0xff]  ;;  %v3868_v23 = vpack.c.bf16 %v2603_v1, %v2601_v0  ;;  %v2622_v0 = vld [vmem:[#allocation25 + $0x788] sm:$0xff]  ;;  %v2624_v1 = vld [vmem:[#allocation25 + $0x798] sm:$0xff] }
 0x5cd   :  { %v2246_v59 = vadd.f32 0.8, %v2230_v7  ;;  %v2582_v7 = vld [vmem:[#allocation25 + $0x648] sm:$0xff] }
 0x5ce   :  { %3974 = vrsqrt.f32 %v2245_v29  ;;  %3817 = vmatpush1.bf16.msra.mxu0 %v3816_v14  ;;  %v2579_v14 = vld [vmem:[#allocation25 + $0x630] sm:$0xff]  ;;  %v2581_v29 = vld [vmem:[#allocation25 + $0x640] sm:$0xff] }
 0x5cf   :  { %3976 = vrsqrt.f32 %v2246_v59  ;;  %3819 = vmatprep.subr.bf16.mxu0 %v3818_v56  ;;  %v2584_v56 = vld [vmem:[#allocation25 + $0x658] sm:$0xff]  ;;  %v3844_v24 = vpack.c.bf16 %v2579_v14, %v2577_v13 }
 0x5d0   :  { %v3846_v18 = vpack.c.bf16 %v2584_v56, %v2582_v7  ;;  %v2588_v59 = vld [vmem:[#allocation25 + $0x678] sm:$0xff]  ;;  %v2610_v7 = vld [vmem:[#allocation25 + $0x728] sm:$0xff] }
 0x5d1   :  { %v2612_v56 = vld [vmem:[#allocation25 + $0x738] sm:$0xff] }
 0x5d2   :  { %3821 = vmatpush1.bf16.msra.mxu0 %v3820_v25  ;;  %v3848_v25 = vpack.c.bf16 %v2583_v20, %v2581_v29 }
 0x5d3   :  { %3823 = vmatprep.subr.bf16.mxu0 %v3822_v28  ;;  %v3850_v28 = vpack.c.bf16 %v2588_v59, %v2586_v22 }
 0x5d6   :  { %3825 = vmatpush1.bf16.msra.mxu0 %v3824_v39  ;;  %v3852_v39 = vpack.c.bf16 %v2587_v32, %v2585_v30  ;;  %v2609_v30 = vld [vmem:[#allocation25 + $0x720] sm:$0xff]  ;;  %v2611_v32 = vld [vmem:[#allocation25 + $0x730] sm:$0xff] }
 0x5d7   :  { %3827 = vmatprep.subr.bf16.mxu0 %v3826_v40  ;;  %v3854_v40 = vpack.c.bf16 %v2592_v37, %v2590_v44 }
 0x5d8   :  { %v3975_v21 = vpop.eup %3974 }
 0x5d9   :  { %v3977_v54 = vpop.eup %3976  ;;  %v2261_v26 = vmul.f32 %v3975_v21, %v2237_v47  ;;  %v3856_v47 = vpack.c.bf16 %v2591_v42, %v2589_v41  ;;  %v2598_v21 = vld [vmem:[#allocation25 + $0x6c8] sm:$0xff] }
 0x5da   :  { %3829 = vmatpush1.bf16.msra.mxu0 %v3828_v46  ;;  %v2262_v58 = vmul.f32 %v3977_v54, %v2238_v50  ;;  %v4904_v46 = vsub.s32 6, %v4729_v35  ;;  %v2600_v50 = vld [vmem:[#allocation25 + $0x6d8] sm:$0xff] }
 0x5db   :  { %3831 = vmatprep.subr.bf16.mxu0 %v3830_v27  ;;  %v2311_v62 = vmul.f32 %v2286_v31, %v2261_v26  ;;  %v4907_v31 = vsub.s32 7, %v4729_v35  ;;  %v3858_v27 = vpack.c.bf16 %v2596_v45, %v2594_v43  ;;  %v3862_v54 = vpack.c.bf16 %v2600_v50, %v2598_v21  ;;  %v2597_v26 = vld [vmem:[#allocation25 + $0x6c0] sm:$0xff]  ;;  %v2615_v50 = vld [vmem:[#allocation25 + $0x750] sm:$0xff] }
 0x5dc   :  { %v2312_v63 = vmul.f32 %v2290_v53, %v2262_v58  ;;  %v1516_v51 = vrot.slane %v4825_v33, %v4904_v46  ;;  %v3860_v53 = vpack.c.bf16 %v2595_v49, %v2593_v48  ;;  %v2604_v58 = vld [vmem:[#allocation25 + $0x6f8] sm:$0xff]  ;;  %v2613_v21 = vld [vmem:[#allocation25 + $0x740] sm:$0xff] }
 0x5dd   :  { %v2361_v16 = vadd.f32 %v2336_v5, %v2311_v62  ;;  %v1520_v52 = vrot.slane %v4825_v33, %v4907_v31  ;;  %v2599_v5 = vld [vmem:[#allocation25 + $0x6d0] sm:$0xff] }
 0x5de   :  { %3833 = vmatpush1.bf16.msra.mxu0 %v3832_v57  ;;  %v2362_v19 = vadd.f32 %v2340_v60, %v2312_v63  ;;  %v2602_v57 = vld [vmem:[#allocation25 + $0x6e8] sm:$0xff]  ;;  %v3864_v9 = vpack.c.bf16 %v2599_v5, %v2597_v26 }
 0x5df   :  { %3835 = vmatprep.subr.bf16.mxu0 %v3834_v11  ;;  %v2369_v55 = vmul.f32 0.2, %v2361_v16  ;;  %v3866_v63 = vpack.c.bf16 %v2604_v58, %v2602_v57  ;;  %v3880_v58 = vpack.c.bf16 %v2615_v50, %v2613_v21 }
 0x5e0   :  { %v2370_v6 = vmul.f32 0.2, %v2362_v19 }
 0x5e1   :  { %v2377_v10 = vmax.f32 %v2361_v16, %v2369_v55  ;;  %v2608_v55 = vld [vmem:[#allocation25 + $0x718] sm:$0xff] }
 0x5e2   :  { %3837 = vmatpush1.bf16.msra.mxu0 %v3836_v15  ;;  %v2378_v34 = vmax.f32 %v2362_v19, %v2370_v6  ;;  %v2606_v19 = vld [vmem:[#allocation25 + $0x708] sm:$0xff] }
 0x5e3   :  { %3839 = vmatprep.subr.bf16.mxu0 %v3838_v2 }
 0x5e4   :  { %2855 = vmatprep.mubr.f32.mxu0 %v2378_v34 }
 0x5e5   :  { %2856 = vmatmul.mubr.f32.vlgmr.msra.gmra.mrb[6].mxu0 %v2377_v10  ;;  %v2605_v10 = vld [vmem:[#allocation25 + $0x700] sm:$0xff] }
 0x5e6   :  { %3841 = vmatpush1.bf16.msra.mxu0 %v3840_v8  ;;  %v3870_v8 = vpack.c.bf16 %v2608_v55, %v2606_v19  ;;  %v3886_v55 = vpack.c.bf16 %v2624_v1, %v2622_v0 }
 0x5e7   :  { %3843 = vmatprep.subr.bf16.mxu0 %v3842_v12  ;;  %v2607_v12 = vld [vmem:[#allocation25 + $0x710] sm:$0xff] }
 0x5e8   :  { %v3872_v22 = vpack.c.bf16 %v2607_v12, %v2605_v10  ;;  %v2630_v10 = vld [vmem:[#allocation25 + $0x7c8] sm:$0xff]  ;;  %v2632_v12 = vld [vmem:[#allocation25 + $0x7d8] sm:$0xff] }
 0x5ea   :  { %3845 = vmatpush1.bf16.msra.mxu0 %v3844_v24 }
 0x5eb   :  { %3847 = vmatprep.subr.bf16.mxu0 %v3846_v18 }
 0x5ee   :  { %3849 = vmatpush1.bf16.msra.mxu0 %v3848_v25 }
 0x5ef   :  { %3851 = vmatprep.subr.bf16.mxu0 %v3850_v28  ;;  %v3874_v28 = vpack.c.bf16 %v2612_v56, %v2610_v7  ;;  %v2629_v7 = vld [vmem:[#allocation25 + $0x7c0] sm:$0xff]  ;;  %v2631_v56 = vld [vmem:[#allocation25 + $0x7d0] sm:$0xff] }
 0x5f2   :  { %3853 = vmatpush1.bf16.msra.mxu0 %v3852_v39  ;;  %v2614_v39 = vld [vmem:[#allocation25 + $0x748] sm:$0xff] }
 0x5f3   :  { %3855 = vmatprep.subr.bf16.mxu0 %v3854_v40  ;;  %v2616_v40 = vld [vmem:[#allocation25 + $0x758] sm:$0xff] }
 0x5f4   :  { %v3878_v49 = vpack.c.bf16 %v2616_v40, %v2614_v39  ;;  %v2633_v40 = vld [vmem:[#allocation25 + $0x7e0] sm:$0xff] }
 0x5f6   :  { %3857 = vmatpush1.bf16.msra.mxu0 %v3856_v47  ;;  %v3876_v47 = vpack.c.bf16 %v2611_v32, %v2609_v30 }
 0x5f7   :  { %3859 = vmatprep.subr.bf16.mxu0 %v3858_v27 }
 0x5f8   :  { %v2092_v35 = vpop.f32.mrb[10].mxu1 }
 0x5f9   :  { %v4913_v60 = vadd.f32 %v2092_v35, %v1516_v51  ;;  %v2094_v11 = vpop.f32.mrb[11].mxu1 }
 0x5fa   :  { %v4915_v61 = vadd.f32 %v2094_v11, %v1520_v52  ;;  %3861 = vmatpush1.bf16.msra.mxu0 %v3860_v53  ;;  %v2618_v53 = vld [vmem:[#allocation25 + $0x768] sm:$0xff] }
 0x5fb   :  { %v2133_v62 = vrot.slane %v4913_v60, 4  ;;  %v2159_v33 = vmul.f32 %v4913_v60, %v4913_v60  ;;  %3863 = vmatprep.subr.bf16.mxu0 %v3862_v54  ;;  %v2620_v54 = vld [vmem:[#allocation25 + $0x778] sm:$0xff] }
 0x5fc   :  { %v2139_v16 = vrot.slane %v4915_v61, 4  ;;  %v2160_v15 = vmul.f32 %v4915_v61, %v4915_v61 }
 0x5fd   :  { %v2134_v2 = vadd.f32 %v4913_v60, %v2133_v62  ;;  %v2197_v3 = vrot.slane %v2159_v33, 4  ;;  %v2617_v62 = vld [vmem:[#allocation25 + $0x760] sm:$0xff] }
 0x5fe   :  { %v2140_v4 = vadd.f32 %v4915_v61, %v2139_v16  ;;  %v2203_v6 = vrot.slane %v2160_v15, 4  ;;  %3865 = vmatpush1.bf16.msra.mxu0 %v3864_v9  ;;  %v3882_v9 = vpack.c.bf16 %v2620_v54, %v2618_v53 }
 0x5ff   :  { %v2135_v17 = vrot.slane %v2134_v2, 2  ;;  %v2198_v34 = vadd.f32 %v2197_v3, %v2159_v33  ;;  %3867 = vmatprep.subr.bf16.mxu0 %v3866_v63  ;;  %v2619_v33 = vld [vmem:[#allocation25 + $0x770] sm:$0xff] }
 0x600   :  { %v2141_v13 = vrot.slane %v2140_v4, 2  ;;  %v2204_v14 = vadd.f32 %v2203_v6, %v2160_v15  ;;  %v3884_v19 = vpack.c.bf16 %v2619_v33, %v2617_v62  ;;  %v2623_v3 = vld [vmem:[#allocation25 + $0x790] sm:$0xff]  ;;  %v2628_v6 = vld [vmem:[#allocation25 + $0x7b8] sm:$0xff] }
 0x601   :  { %v2136_v24 = vadd.f32 %v2135_v17, %v2134_v2  ;;  %v2199_v18 = vrot.slane %v2198_v34, 2  ;;  %v2621_v2 = vld [vmem:[#allocation25 + $0x780] sm:$0xff] }
 0x602   :  { %v2142_v29 = vadd.f32 %v2141_v13, %v2140_v4  ;;  %v2205_v20 = vrot.slane %v2204_v14, 2  ;;  %3869 = vmatpush1.bf16.msra.mxu0 %v3868_v23  ;;  %v2626_v4 = vld [vmem:[#allocation25 + $0x7a8] sm:$0xff]  ;;  %v3888_v23 = vpack.c.bf16 %v2623_v3, %v2621_v2 }
 0x603   :  { %v2137_v59 = vrot.slane %v2136_v24, 1  ;;  %v2200_v25 = vadd.f32 %v2199_v18, %v2198_v34  ;;  %3871 = vmatprep.subr.bf16.mxu0 %v3870_v8  ;;  %v3890_v17 = vpack.c.bf16 %v2628_v6, %v2626_v4  ;;  %v2625_v34 = vld [vmem:[#allocation25 + $0x7a0] sm:$0xff]  ;;  %v2627_v8 = vld [vmem:[#allocation25 + $0x7b0] sm:$0xff] }
 0x604   :  { %v2143_v44 = vrot.slane %v2142_v29, 1  ;;  %v2206_v37 = vadd.f32 %v2205_v20, %v2204_v14  ;;  %v3892_v13 = vpack.c.bf16 %v2627_v8, %v2625_v34  ;;  %v3894_v14 = vpack.c.bf16 %v2632_v12, %v2630_v10  ;;  %v3986_v18 = vld [vmem:[#allocation22] sm:$0xff]  ;;  %v2634_v20 = vld [vmem:[#allocation25 + $0x7e8] sm:$0xff] }
 0x605   :  { %v2138_v41 = vadd.f32 %v2137_v59, %v2136_v24  ;;  %v2201_v42 = vrot.slane %v2200_v25, 1 }
 0x606   :  { %v2144_v43 = vadd.f32 %v2143_v44, %v2142_v29  ;;  %v2207_v45 = vrot.slane %v2206_v37, 1  ;;  %3873 = vmatpush1.bf16.msra.mxu0 %v3872_v22  ;;  %v2294_v29 = vrot.slane %v3986_v18, %v4904_v46  ;;  %v2636_v22 = vld [vmem:[#allocation25 + $0x7f8] sm:$0xff]  ;;  %v3896_v44 = vpack.c.bf16 %v2631_v56, %v2629_v7 }
 0x607   :  { %v2151_v27 = vmul.f32 0.125, %v2138_v41  ;;  %v2202_v48 = vadd.f32 %v2201_v42, %v2200_v25  ;;  %3875 = vmatprep.subr.bf16.mxu0 %v3874_v28  ;;  %v2298_v28 = vrot.slane %v3986_v18, %v4907_v31  ;;  %v2635_v41 = vld [vmem:[#allocation25 + $0x7f0] sm:$0xff] }
 0x608   :  { %v4925_v51 = vmul.f32 0.125, %v2144_v43  ;;  %v2208_v52 = vadd.f32 %v2207_v45, %v2206_v37  ;;  %v3987_v37 = vld [vmem:[#allocation24] sm:$0xff] }
 0x609   :  { %v2215_v26 = vmul.f32 0.125, %v2202_v48  ;;  %v2223_v5 = vmul.f32 %v2151_v27, %v2151_v27  ;;  %v2239_v24 = vsub.f32 %v4913_v60, %v2151_v27  ;;  %v2344_v39 = vrot.slane %v3987_v37, %v4904_v46  ;;  %v2637_v46 = vld [vmem:[#allocation27] sm:$0x3] }
 0x60a   :  { %v2216_v35 = vmul.f32 0.125, %v2208_v52  ;;  %v2224_v57 = vmul.f32 %v4925_v51, %v4925_v51  ;;  %3877 = vmatpush1.bf16.msra.mxu0 %v3876_v47  ;;  %v2240_v25 = vsub.f32 %v4915_v61, %v4925_v51  ;;  %v3898_v60 = vpack.c.bf16 %v2636_v22, %v2634_v20 }
 0x60b   :  { %v2231_v11 = vsub.f32 %v2215_v26, %v2223_v5  ;;  %3879 = vmatprep.subr.bf16.mxu0 %v3878_v49  ;;  %v2348_v43 = vrot.slane %v3987_v37, %v4907_v31  ;;  %v3900_v61 = vpack.c.bf16 %v2635_v41, %v2633_v40  ;;  %v2642_v52 = vrot.slane %v2637_v46, %v4732_v36 }
 0x60c   :  { %v2232_v63 = vsub.f32 %v2216_v35, %v2224_v57  ;;  %v2646_v53 = vrot.slane %v2637_v46, %v4735_v38 }
 0x60d   :  { %v2247_v16 = vadd.f32 0.8, %v2231_v11 }
 0x60e   :  { %v2248_v15 = vadd.f32 0.8, %v2232_v63  ;;  %3881 = vmatpush1.bf16.msra.mxu0 %v3880_v58 }
 0x60f   :  { %3978 = vrsqrt.f32 %v2247_v16  ;;  %3883 = vmatprep.subr.bf16.mxu0 %v3882_v9 }
 0x610   :  { %3980 = vrsqrt.f32 %v2248_v15 }
 0x612   :  { %3885 = vmatpush1.bf16.msra.mxu0 %v3884_v19 }
 0x613   :  { %3887 = vmatprep.subr.bf16.mxu0 %v3886_v55 }
 0x616   :  { %3889 = vmatpush1.bf16.msra.mxu0 %v3888_v23 }
 0x617   :  { %3891 = vmatprep.subr.bf16.mxu0 %v3890_v17 }
 0x619   :  { %v3979_v59 = vpop.eup %3978 }
 0x61a   :  { %v3981_v30 = vpop.eup %3980  ;;  %v2263_v32 = vmul.f32 %v3979_v59, %v2239_v24  ;;  %3893 = vmatpush1.bf16.msra.mxu0 %v3892_v13 }
 0x61b   :  { %3895 = vmatprep.subr.bf16.mxu0 %v3894_v14  ;;  %v2264_v42 = vmul.f32 %v3981_v30, %v2240_v25 }
 0x61c   :  { %v2313_v45 = vmul.f32 %v2294_v29, %v2263_v32 }
 0x61d   :  { %v2314_v47 = vmul.f32 %v2298_v28, %v2264_v42 }
 0x61e   :  { %3897 = vmatpush1.bf16.msra.mxu0 %v3896_v44  ;;  %v2363_v27 = vadd.f32 %v2344_v39, %v2313_v45 }
 0x61f   :  { %3899 = vmatprep.subr.bf16.mxu0 %v3898_v60  ;;  %v2364_v48 = vadd.f32 %v2348_v43, %v2314_v47 }
 0x620   :  { %v2371_v49 = vmul.f32 0.2, %v2363_v27 }
 0x621   :  { %v2372_v21 = vmul.f32 0.2, %v2364_v48 }
 0x622   :  { %3901 = vmatpush1.bf16.msra.mxu0 %v3900_v61  ;;  %v2379_v51 = vmax.f32 %v2363_v27, %v2371_v49 }
 0x623   :  { %v2380_v50 = vmax.f32 %v2364_v48, %v2372_v21 }
 0x625   :  { %2926 = vmatprep.mubr.f32.mxu0 %v2380_v50 }
 0x626   :  { %2927 = vmatmul.mubr.f32.vlgmr.msra.gmra.mrb[6].mxu0 %v2379_v51 }
 0x6f9   :  { %v2928_v31 = vpop.f32.mrb[6].mxu0 }
 0x6fa   :  { %v3912_v54 = vadd.f32 %v2928_v31, %v2642_v52  ;;  %v2930_v26 = vpop.f32.mrb[7].mxu0 }
 0x6fb   :  { %v3913_v5 = vadd.f32 %v2930_v26, %v2646_v53 }
 0x6fc   :  { %3982 = vtanh.f32 %v3912_v54 }
 0x6fd   :  { %3984 = vtanh.f32 %v3913_v5 }
 0x706   :  { %v3983_v35 = vpop.eup %3982 }
 0x707   :  { %v3985_v57 = vpop.eup %3984  ;;  %2935 = vst [vmem:[%s4970_s17] sm:$0xff] %v3983_v35 }
 0x708   :  { %2936 = vst [vmem:[%s4970_s17 + $0x8] sm:$0xff] %v3985_v57 }
 0x709   :  { %2941 = vsyncpa [#allocation3], 1 }
 0x70a   :  { %2942 = vsyncpa [#allocation5], 1 }
 0x70b   :  { %2943 = vsyncpa [#allocation8], 1 }
 0x70c   :  { %2944 = vsyncpa [#allocation11], 1 }
 0x70d   :  { %2945 = vsyncpa [#allocation14], 1 }
 0x70e   :  { %2946 = vsyncpa [#allocation17], 1 }
 0x70f   :  { %2947 = vsyncpa [#allocation20], 1 }
 0x710   :  { %2948 = vsyncpa [#allocation23], 1 }
 0x711   :  { %2949 = vsyncpa [#allocation26], 1 }

</bundles_post_ra>
